<compile_context>
chip_gen: v7x
topology: tpu7x:2x2x1
jax: 0.10.0
libtpu: 0.0.40
codegen_flags: <defaults>
</compile_context>

<pallas_src>
import functools

import jax
import jax.numpy as jnp
from jax.experimental import pallas as pl
from jax.experimental.pallas import tpu as pltpu


def _round_up(x, m):
    return (x + m - 1) // m * m


def fm_kernel(x_ref, o_ref, *, num_fields, embed_dim):
    """x_ref: (bt, F*D) VMEM tile (fields-major, flat); o_ref: (bt, D)."""
    # Single pass over fields.  F is small and static -> unrolled Python loop.
    x0 = x_ref[:, 0:embed_dim].astype(jnp.float32)
    acc_sum = x0
    acc_sq = x0 * x0
    for f in range(1, num_fields):
        xf = x_ref[:, f * embed_dim:(f + 1) * embed_dim].astype(jnp.float32)
        acc_sum = acc_sum + xf
        acc_sq = acc_sq + xf * xf
    cross = 0.5 * (acc_sum * acc_sum - acc_sq)
    o_ref[...] = cross.astype(o_ref.dtype)


def _choose_batch_tile(B, F, D, in_itemsize, out_itemsize,
                       target_block_bytes=2 << 20,    # ~2 MiB of input / block
                       vmem_block_budget=20 << 20,    # safe for v7x 64 MiB/TC
                       min_rows=256,                  # amortize ~0.35us/step
                       min_steps=8):                  # pipeline + 2 TCs (v7x)
    lanes_in = _round_up(F * D, 128)
    lanes_out = _round_up(D, 128)
    # double-buffered input + output blocks + two f32 accumulators, per row
    vmem_per_row = (2 * lanes_in * in_itemsize
                    + 2 * lanes_out * out_itemsize
                    + 2 * lanes_out * 4)
    bt = min(target_block_bytes // max(1, F * D * in_itemsize),
             vmem_block_budget // vmem_per_row)
    # For large batches, force at least `min_steps` grid steps so the
    # double-buffered DMA pipeline overlaps and both TensorCores get work,
    # but never shrink blocks below ~min_rows rows.
    if B >= min_steps * min_rows:
        bt = min(bt, _round_up(pl.cdiv(B, min_steps), 8))
    bt = int(max(8, min(bt, B)))
    if bt >= B:
        return B                      # single full-extent block (no 8-align needed)
    return (bt // 8) * 8              # sublane granularity for partial blocks


def fm_forward(x, *, batch_tile=None):
    """x: (B, F, D) float32/bfloat16 -> (B, D) in the same dtype."""
    B, F, D = x.shape
    in_itemsize = jnp.dtype(x.dtype).itemsize
    out_dtype = x.dtype
    out_itemsize = jnp.dtype(out_dtype).itemsize

    # Free row-major collapse of the (F, D) minor dims -> lane-dense, long
    # contiguous DMA rows, no sublane padding of the F axis.
    x2 = x.reshape(B, F * D)

    if batch_tile is None:
        bt = _choose_batch_tile(B, F, D, in_itemsize, out_itemsize)
    else:
        bt = int(min(batch_tile, B))
        if bt < B and bt % 8 != 0:
            raise ValueError("batch_tile must be a multiple of 8 (sublane granularity)")

    grid = (pl.cdiv(B, bt),)  # ragged batches OK: OOB output rows are masked

    lanes_in = _round_up(F * D, 128)
    lanes_out = _round_up(D, 128)
    block_vmem = (2 * bt * lanes_in * in_itemsize
                  + 2 * bt * lanes_out * out_itemsize
                  + 2 * bt * lanes_out * 4)
    # Explicit scoped-VMEM limit: enough for the pipeline + temporaries, but
    # capped below v7x's 64 MiB physical VMEM per TensorCore.
    vmem_limit = int(min(48 << 20, max(32 << 20, block_vmem + (8 << 20))))

    kernel = functools.partial(fm_kernel, num_fields=F, embed_dim=D)
    flops = 3 * B * F * D
    bytes_accessed = B * F * D * in_itemsize + B * D * out_itemsize

    return pl.pallas_call(
        kernel,
        out_shape=jax.ShapeDtypeStruct((B, D), out_dtype),
        grid_spec=pltpu.PrefetchScalarGridSpec(
            num_scalar_prefetch=0,
            grid=grid,
            in_specs=[pl.BlockSpec((bt, F * D), lambda i: (i, 0))],
            out_specs=pl.BlockSpec((bt, D), lambda i: (i, 0)),
        ),
        compiler_params=pltpu.CompilerParams(
            dimension_semantics=("parallel",),
            vmem_limit_bytes=vmem_limit,
        ),
        cost_estimate=pl.CostEstimate(
            flops=flops, transcendentals=0, bytes_accessed=bytes_accessed),
    )(x2)


def fm_reference(x):
    xf = x.astype(jnp.float32)
    s = jnp.sum(xf, axis=1)
    return 0.5 * (s * s - jnp.sum(xf * xf, axis=1))


if __name__ == "__main__":
    key = jax.random.PRNGKey(0)
    B, F, D = 256, 10, 32  # batch, num sparse fields, embedding dim
    x = jax.random.normal(key, (B, F, D), dtype=jnp.float32)

    # Auto-sized tile (single block for this small B).
    out = jax.block_until_ready(fm_forward(x))
    ref = fm_reference(x)
    assert out.shape == (B, D)
    assert jnp.allclose(out, ref, atol=1e-5, rtol=1e-5), "auto-tile mismatch"

    # Multi-step grid + ragged batch (B not a multiple of the tile).
    xr = x[:200]
    out_r = jax.block_until_ready(fm_forward(xr, batch_tile=64))
    assert jnp.allclose(out_r, fm_reference(xr), atol=1e-5, rtol=1e-5), "ragged mismatch"

    # Larger batch: exercises the multi-step auto-tile path (>= 8 grid steps,
    # megacore-parallel, pipelined DMA).
    kb = jax.random.PRNGKey(1)
    xL = jax.random.normal(kb, (4096, F, D), dtype=jnp.float32)
    out_L = jax.block_until_ready(fm_forward(xL))
    assert jnp.allclose(out_L, fm_reference(xL), atol=1e-4, rtol=1e-4), "large-B mismatch"

    # bf16 ingestion (kernel is HBM-bound: halving bytes ~2x wall-clock).
    xb = x.astype(jnp.bfloat16)
    out_b = jax.block_until_ready(fm_forward(xb))
    assert out_b.shape == (B, D) and out_b.dtype == jnp.bfloat16
    assert jnp.allclose(out_b.astype(jnp.float32), fm_reference(xb),
                        atol=0.5, rtol=5e-2), "bf16 mismatch"

    print("KERNEL_OK")
</pallas_src>

<mosaic_0001>
module attributes {stable_mosaic.version = 11 : i64} {
  func.func @fm_kernel(%arg0: i32, %arg1: memref<256x320xf32, #tpu.memory_space<vmem>>, %arg2: memref<256x32xf32, #tpu.memory_space<vmem>>) attributes {dimension_semantics = [#tpu.dimension_semantics<parallel>], iteration_bounds = array<i64: 1>, scalar_prefetch = 0 : i64, scratch_operands = 0 : i64, tpu.core_type = #tpu.core_type<tc>, window_params = [{transform_indices = @transform_0, window_bounds = array<i64: 256, 320>}, {transform_indices = @transform_1, window_bounds = array<i64: 256, 32>}]} {
    %c0 = arith.constant 0 : index
    %c0_0 = arith.constant 0 : index
    %0 = vector.load %arg1[%c0, %c0_0] : memref<256x320xf32, #tpu.memory_space<vmem>>, vector<256x32xf32>
    %1 = arith.mulf %0, %0 : vector<256x32xf32>
    %c0_1 = arith.constant 0 : index
    %c32 = arith.constant 32 : index
    %2 = vector.load %arg1[%c0_1, %c32] : memref<256x320xf32, #tpu.memory_space<vmem>>, vector<256x32xf32>
    %3 = arith.addf %0, %2 : vector<256x32xf32>
    %4 = arith.mulf %2, %2 : vector<256x32xf32>
    %5 = arith.addf %1, %4 : vector<256x32xf32>
    %c0_2 = arith.constant 0 : index
    %c64 = arith.constant 64 : index
    %6 = vector.load %arg1[%c0_2, %c64] : memref<256x320xf32, #tpu.memory_space<vmem>>, vector<256x32xf32>
    %7 = arith.addf %3, %6 : vector<256x32xf32>
    %8 = arith.mulf %6, %6 : vector<256x32xf32>
    %9 = arith.addf %5, %8 : vector<256x32xf32>
    %c0_3 = arith.constant 0 : index
    %c96 = arith.constant 96 : index
    %10 = vector.load %arg1[%c0_3, %c96] : memref<256x320xf32, #tpu.memory_space<vmem>>, vector<256x32xf32>
    %11 = arith.addf %7, %10 : vector<256x32xf32>
    %12 = arith.mulf %10, %10 : vector<256x32xf32>
    %13 = arith.addf %9, %12 : vector<256x32xf32>
    %c0_4 = arith.constant 0 : index
    %c128 = arith.constant 128 : index
    %14 = vector.load %arg1[%c0_4, %c128] : memref<256x320xf32, #tpu.memory_space<vmem>>, vector<256x32xf32>
    %15 = arith.addf %11, %14 : vector<256x32xf32>
    %16 = arith.mulf %14, %14 : vector<256x32xf32>
    %17 = arith.addf %13, %16 : vector<256x32xf32>
    %c0_5 = arith.constant 0 : index
    %c160 = arith.constant 160 : index
    %18 = vector.load %arg1[%c0_5, %c160] : memref<256x320xf32, #tpu.memory_space<vmem>>, vector<256x32xf32>
    %19 = arith.addf %15, %18 : vector<256x32xf32>
    %20 = arith.mulf %18, %18 : vector<256x32xf32>
    %21 = arith.addf %17, %20 : vector<256x32xf32>
    %c0_6 = arith.constant 0 : index
    %c192 = arith.constant 192 : index
    %22 = vector.load %arg1[%c0_6, %c192] : memref<256x320xf32, #tpu.memory_space<vmem>>, vector<256x32xf32>
    %23 = arith.addf %19, %22 : vector<256x32xf32>
    %24 = arith.mulf %22, %22 : vector<256x32xf32>
    %25 = arith.addf %21, %24 : vector<256x32xf32>
    %c0_7 = arith.constant 0 : index
    %c224 = arith.constant 224 : index
    %26 = vector.load %arg1[%c0_7, %c224] : memref<256x320xf32, #tpu.memory_space<vmem>>, vector<256x32xf32>
    %27 = arith.addf %23, %26 : vector<256x32xf32>
    %28 = arith.mulf %26, %26 : vector<256x32xf32>
    %29 = arith.addf %25, %28 : vector<256x32xf32>
    %c0_8 = arith.constant 0 : index
    %c256 = arith.constant 256 : index
    %30 = vector.load %arg1[%c0_8, %c256] : memref<256x320xf32, #tpu.memory_space<vmem>>, vector<256x32xf32>
    %31 = arith.addf %27, %30 : vector<256x32xf32>
    %32 = arith.mulf %30, %30 : vector<256x32xf32>
    %33 = arith.addf %29, %32 : vector<256x32xf32>
    %c0_9 = arith.constant 0 : index
    %c288 = arith.constant 288 : index
    %34 = vector.load %arg1[%c0_9, %c288] : memref<256x320xf32, #tpu.memory_space<vmem>>, vector<256x32xf32>
    %35 = arith.addf %31, %34 : vector<256x32xf32>
    %36 = arith.mulf %34, %34 : vector<256x32xf32>
    %37 = arith.addf %33, %36 : vector<256x32xf32>
    %38 = arith.mulf %35, %35 : vector<256x32xf32>
    %39 = arith.subf %38, %37 : vector<256x32xf32>
    %cst = arith.constant 5.000000e-01 : f32
    %40 = vector.broadcast %cst : f32 to vector<256x32xf32>
    %41 = arith.mulf %40, %39 : vector<256x32xf32>
    %c0_10 = arith.constant 0 : index
    %c0_11 = arith.constant 0 : index
    %42 = vector.load %arg2[%c0_10, %c0_11] : memref<256x32xf32, #tpu.memory_space<vmem>>, vector<256x32xf32>
    tpu.vector_store %arg2[%c0_10, %c0_11], %41 {strides = array<i32>} : memref<256x32xf32, #tpu.memory_space<vmem>>, vector<256x32xf32>,
    return
  }
  func.func @transform_0(%arg0: i32) -> (i32, i32) {
    %c0_i32 = arith.constant 0 : i32
    %c0_i32_0 = arith.constant 0 : i32
    return %arg0, %c0_i32 : i32, i32
  }
  func.func @transform_1(%arg0: i32) -> (i32, i32) {
    %c0_i32 = arith.constant 0 : i32
    %c0_i32_0 = arith.constant 0 : i32
    return %arg0, %c0_i32 : i32, i32
  }
}

</mosaic_0001>

<bundles_post_ra>
// kernel: tpu_custom_call.1
= control target key start
LH: loop header
LB: loop body
LE: loop exit
PB: predicated region body
PF: predicated region fallthrough
CT: control target
= control target key end

     0   :  { %s2544_s10 = smov 96   ;;  %s2545_s15 = smov 64   ;;  %vm2408_vm0 = vcmask 261120   ;;  %s6306_s0 = inlined_call_operand.vmem [shape: f32[256,320], index: 0, kind: input, shape index: {}]   ;;  %s6307_s1 = inlined_call_operand.vmem [shape: f32[256,32], index: 1, kind: output, shape index: {}]  }
   0x1   :  { %v2560_v0 = vld [vmem:[%s6306_s0 + $0x30] sm:$0xff]  ;;  %v2565_v1 = vld [vmem:[%s6306_s0] sm:$0xff]  ;;  %v2574_v2 = vld [vmem:[%s6306_s0 + $0x48] sm:$0xff]  ;;  %s2546_s16 = smov 32  }
   0x2   :  { %6403 = vst [vmem:[#allocation2_spill] sm:$0xff] %v2565_v1  ;;  %108 = vrot.lane.b32.xlu1 %v2560_v0, %s2544_s10  ;;  %104 = vrot.lane.b32.xlu0 %v2565_v1, %s2544_s10  ;;  %v2579_v3 = vld [vmem:[%s6306_s0 + $0x18] sm:$0xff]  ;;  %v2593_v5 = vld [vmem:[%s6306_s0 + $0x60] sm:$0xff]  ;;  %v2787_v33 = vmul.f32 %v2565_v1, %v2565_v1  ;;  %v2795_v34 = vmul.f32 %v2574_v2, %v2574_v2 }
   0x3   :  { %v2588_v4 = vld [vmem:[%s6306_s0 + $0x78] sm:$0xff]  ;;  %v2602_v6 = vld [vmem:[%s6306_s0 + $0xa8] sm:$0xff]  ;;  %v2607_v7 = vld [vmem:[%s6306_s0 + $0x90] sm:$0xff]  ;;  %v2783_v32 = vmul.f32 %v2579_v3, %v2579_v3  ;;  %v2799_v35 = vmul.f32 %v2560_v0, %v2560_v0  ;;  %v2811_v37 = vmul.f32 %v2593_v5, %v2593_v5 }
   0x4   :  { %v2616_v8 = vld [vmem:[%s6306_s0 + $0xd8] sm:$0xff]  ;;  %v2621_v9 = vld [vmem:[%s6306_s0 + $0xc0] sm:$0xff]  ;;  %v2630_v10 = vld [vmem:[%s6306_s0 + $0x108] sm:$0xff]  ;;  %6405 = vst [vmem:[#allocation4_spill] sm:$0xff] %v2787_v33  ;;  %v2807_v36 = vmul.f32 %v2588_v4, %v2588_v4  ;;  %v2819_v38 = vmul.f32 %v2602_v6, %v2602_v6  ;;  %v2823_v39 = vmul.f32 %v2607_v7, %v2607_v7 }
   0x5   :  { %v2635_v11 = vld [vmem:[%s6306_s0 + $0xf0] sm:$0xff]  ;;  %v2644_v12 = vld [vmem:[%s6306_s0 + $0x138] sm:$0xff]  ;;  %v2649_v13 = vld [vmem:[%s6306_s0 + $0x120] sm:$0xff]  ;;  %6404 = vst [vmem:[#allocation3_spill] sm:$0xff] %v2783_v32  ;;  %v2831_v40 = vmul.f32 %v2616_v8, %v2616_v8  ;;  %v2835_v41 = vmul.f32 %v2621_v9, %v2621_v9  ;;  %v2843_v42 = vmul.f32 %v2630_v10, %v2630_v10 }
   0x6   :  { %110 = vrot.lane.b32.xlu1 %v2574_v2, %s2544_s10  ;;  %106 = vrot.lane.b32.xlu0 %v2579_v3, %s2544_s10  ;;  %v2658_v14 = vld [vmem:[%s6306_s0 + $0x168] sm:$0xff]  ;;  %v2663_v15 = vld [vmem:[%s6306_s0 + $0x150] sm:$0xff]  ;;  %6406 = vst [vmem:[#allocation5_spill] sm:$0xff] %v2795_v34  ;;  %6407 = vst [vmem:[#allocation6_spill] sm:$0xff] %v2799_v35  ;;  %v2847_v43 = vmul.f32 %v2635_v11, %v2635_v11  ;;  %v2855_v44 = vmul.f32 %v2644_v12, %v2644_v12 }
   0x7   :  { %v2672_v16 = vld [vmem:[%s6306_s0 + $0x198] sm:$0xff]  ;;  %v2677_v17 = vld [vmem:[%s6306_s0 + $0x180] sm:$0xff]  ;;  %v2686_v18 = vld [vmem:[%s6306_s0 + $0x1c8] sm:$0xff]  ;;  %6408 = vst [vmem:[#allocation7_spill] sm:$0xff] %v2807_v36  ;;  %v2859_v45 = vmul.f32 %v2649_v13, %v2649_v13  ;;  %v2867_v46 = vmul.f32 %v2658_v14, %v2658_v14  ;;  %v2871_v47 = vmul.f32 %v2663_v15, %v2663_v15 }
   0x8   :  { %v2691_v19 = vld [vmem:[%s6306_s0 + $0x1b0] sm:$0xff]  ;;  %v2700_v20 = vld [vmem:[%s6306_s0 + $0x1f8] sm:$0xff]  ;;  %v2705_v21 = vld [vmem:[%s6306_s0 + $0x1e0] sm:$0xff]  ;;  %6409 = vst [vmem:[#allocation8_spill] sm:$0xff] %v2811_v37  ;;  %v2879_v48 = vmul.f32 %v2672_v16, %v2672_v16  ;;  %v2883_v49 = vmul.f32 %v2677_v17, %v2677_v17  ;;  %v2891_v50 = vmul.f32 %v2686_v18, %v2686_v18 }
   0x9   :  { %v2714_v22 = vld [vmem:[%s6306_s0 + $0x228] sm:$0xff]  ;;  %v2719_v23 = vld [vmem:[%s6306_s0 + $0x210] sm:$0xff]  ;;  %v2728_v24 = vld [vmem:[%s6306_s0 + $0x258] sm:$0xff]  ;;  %6410 = vst [vmem:[#allocation9_spill] sm:$0xff] %v2819_v38  ;;  %v2895_v51 = vmul.f32 %v2691_v19, %v2691_v19  ;;  %v2903_v52 = vmul.f32 %v2700_v20, %v2700_v20  ;;  %v2907_v53 = vmul.f32 %v2705_v21, %v2705_v21 }
   0xa   :  { %114 = vrot.lane.b32.xlu1 %v2588_v4, %s2544_s10  ;;  %112 = vrot.lane.b32.xlu0 %v2593_v5, %s2544_s10  ;;  %v2733_v25 = vld [vmem:[%s6306_s0 + $0x240] sm:$0xff]  ;;  %v2742_v26 = vld [vmem:[%s6306_s0 + $0x288] sm:$0xff]  ;;  %6411 = vst [vmem:[#allocation10_spill] sm:$0xff] %v2823_v39  ;;  %6412 = vst [vmem:[#allocation11_spill] sm:$0xff] %v2831_v40  ;;  %v2915_v54 = vmul.f32 %v2714_v22, %v2714_v22  ;;  %v2919_v55 = vmul.f32 %v2719_v23, %v2719_v23 }
   0xb   :  { %v2747_v27 = vld [vmem:[%s6306_s0 + $0x270] sm:$0xff]  ;;  %v2756_v28 = vld [vmem:[%s6306_s0 + $0x2b8] sm:$0xff]  ;;  %v2761_v29 = vld [vmem:[%s6306_s0 + $0x2a0] sm:$0xff]  ;;  %6413 = vst [vmem:[#allocation12_spill] sm:$0xff] %v2835_v41  ;;  %v2927_v56 = vmul.f32 %v2728_v24, %v2728_v24  ;;  %v2931_v57 = vmul.f32 %v2733_v25, %v2733_v25  ;;  %v2939_v58 = vmul.f32 %v2742_v26, %v2742_v26 }
   0xc   :  { %v2770_v30 = vld [vmem:[%s6306_s0 + $0x2e8] sm:$0xff]  ;;  %v2775_v31 = vld [vmem:[%s6306_s0 + $0x2d0] sm:$0xff]  ;;  %6414 = vst [vmem:[#allocation13_spill] sm:$0xff] %v2843_v42  ;;  %6415 = vst [vmem:[#allocation14_spill] sm:$0xff] %v2847_v43  ;;  %v2943_v59 = vmul.f32 %v2747_v27, %v2747_v27  ;;  %v2955_v62 = vmul.f32 %v2756_v28, %v2756_v28  ;;  %v2959_v63 = vmul.f32 %v2761_v29, %v2761_v29 }
   0xd   :  { %6416 = vst [vmem:[#allocation15_spill] sm:$0xff] %v2855_v44  ;;  %6417 = vst [vmem:[#allocation16_spill] sm:$0xff] %v2859_v45 }
   0xe   :  { %118 = vrot.lane.b32.xlu1 %v2602_v6, %s2544_s10  ;;  %116 = vrot.lane.b32.xlu0 %v2607_v7, %s2544_s10  ;;  %6418 = vst [vmem:[#allocation17_spill] sm:$0xff] %v2867_v46  ;;  %6419 = vst [vmem:[#allocation18_spill] sm:$0xff] %v2871_v47 }
   0xf   :  { %6420 = vst [vmem:[#allocation19_spill] sm:$0xff] %v2879_v48  ;;  %6421 = vst [vmem:[#allocation20_spill] sm:$0xff] %v2883_v49 }
  0x10   :  { %6422 = vst [vmem:[#allocation21_spill] sm:$0xff] %v2891_v50  ;;  %6423 = vst [vmem:[#allocation22_spill] sm:$0xff] %v2895_v51 }
  0x11   :  { %6424 = vst [vmem:[#allocation23_spill] sm:$0xff] %v2903_v52  ;;  %6425 = vst [vmem:[#allocation24_spill] sm:$0xff] %v2907_v53 }
  0x12   :  { %122 = vrot.lane.b32.xlu1 %v2616_v8, %s2544_s10  ;;  %120 = vrot.lane.b32.xlu0 %v2621_v9, %s2544_s10  ;;  %6426 = vst [vmem:[#allocation25_spill] sm:$0xff] %v2915_v54  ;;  %6427 = vst [vmem:[#allocation26_spill] sm:$0xff] %v2919_v55 }
  0x13   :  { %6428 = vst [vmem:[#allocation27_spill] sm:$0xff] %v2927_v56  ;;  %6429 = vst [vmem:[#allocation28_spill] sm:$0xff] %v2931_v57 }
  0x14   :  { %6430 = vst [vmem:[#allocation29_spill] sm:$0xff] %v2939_v58  ;;  %6431 = vst [vmem:[#allocation30_spill] sm:$0xff] %v2943_v59 }
  0x15   :  { %6434 = vst [vmem:[#allocation33_spill] sm:$0xff] %v2955_v62  ;;  %6435 = vst [vmem:[#allocation34_spill] sm:$0xff] %v2959_v63 }
  0x16   :  { %126 = vrot.lane.b32.xlu1 %v2630_v10, %s2544_s10  ;;  %124 = vrot.lane.b32.xlu0 %v2635_v11, %s2544_s10 }
  0x1a   :  { %130 = vrot.lane.b32.xlu1 %v2644_v12, %s2544_s10  ;;  %128 = vrot.lane.b32.xlu0 %v2649_v13, %s2544_s10 }
  0x1e   :  { %134 = vrot.lane.b32.xlu1 %v2658_v14, %s2544_s10  ;;  %132 = vrot.lane.b32.xlu0 %v2663_v15, %s2544_s10 }
  0x22   :  { %138 = vrot.lane.b32.xlu1 %v2672_v16, %s2544_s10  ;;  %136 = vrot.lane.b32.xlu0 %v2677_v17, %s2544_s10 }
  0x26   :  { %142 = vrot.lane.b32.xlu1 %v2686_v18, %s2544_s10  ;;  %140 = vrot.lane.b32.xlu0 %v2691_v19, %s2544_s10 }
  0x2a   :  { %146 = vrot.lane.b32.xlu1 %v2700_v20, %s2544_s10  ;;  %144 = vrot.lane.b32.xlu0 %v2705_v21, %s2544_s10 }
  0x2e   :  { %150 = vrot.lane.b32.xlu1 %v2714_v22, %s2544_s10  ;;  %148 = vrot.lane.b32.xlu0 %v2719_v23, %s2544_s10 }
  0x32   :  { %154 = vrot.lane.b32.xlu1 %v2728_v24, %s2544_s10  ;;  %152 = vrot.lane.b32.xlu0 %v2733_v25, %s2544_s10 }
  0x36   :  { %158 = vrot.lane.b32.xlu1 %v2742_v26, %s2544_s10  ;;  %156 = vrot.lane.b32.xlu0 %v2747_v27, %s2544_s10 }
  0x3a   :  { %162 = vrot.lane.b32.xlu1 %v2756_v28, %s2544_s10  ;;  %160 = vrot.lane.b32.xlu0 %v2761_v29, %s2544_s10 }
  0x3e   :  { %166 = vrot.lane.b32.xlu1 %v2770_v30, %s2544_s10  ;;  %164 = vrot.lane.b32.xlu0 %v2775_v31, %s2544_s10 }
  0x42   :  { %266 = vrot.lane.b32.xlu1 %v2783_v32, %s2544_s10  ;;  %264 = vrot.lane.b32.xlu0 %v2787_v33, %s2544_s10 }
  0x46   :  { %270 = vrot.lane.b32.xlu1 %v2795_v34, %s2544_s10  ;;  %268 = vrot.lane.b32.xlu0 %v2799_v35, %s2544_s10 }
  0x4a   :  { %274 = vrot.lane.b32.xlu1 %v2807_v36, %s2544_s10  ;;  %272 = vrot.lane.b32.xlu0 %v2811_v37, %s2544_s10 }
  0x4e   :  { %278 = vrot.lane.b32.xlu1 %v2819_v38, %s2544_s10  ;;  %276 = vrot.lane.b32.xlu0 %v2823_v39, %s2544_s10 }
  0x52   :  { %282 = vrot.lane.b32.xlu1 %v2831_v40, %s2544_s10  ;;  %280 = vrot.lane.b32.xlu0 %v2835_v41, %s2544_s10 }
  0x56   :  { %286 = vrot.lane.b32.xlu1 %v2843_v42, %s2544_s10  ;;  %284 = vrot.lane.b32.xlu0 %v2847_v43, %s2544_s10 }
  0x5a   :  { %290 = vrot.lane.b32.xlu1 %v2855_v44, %s2544_s10  ;;  %288 = vrot.lane.b32.xlu0 %v2859_v45, %s2544_s10 }
  0x5e   :  { %294 = vrot.lane.b32.xlu1 %v2867_v46, %s2544_s10  ;;  %292 = vrot.lane.b32.xlu0 %v2871_v47, %s2544_s10 }
  0x62   :  { %298 = vrot.lane.b32.xlu1 %v2879_v48, %s2544_s10  ;;  %296 = vrot.lane.b32.xlu0 %v2883_v49, %s2544_s10 }
  0x66   :  { %302 = vrot.lane.b32.xlu1 %v2891_v50, %s2544_s10  ;;  %300 = vrot.lane.b32.xlu0 %v2895_v51, %s2544_s10 }
  0x6a   :  { %306 = vrot.lane.b32.xlu1 %v2903_v52, %s2544_s10  ;;  %304 = vrot.lane.b32.xlu0 %v2907_v53, %s2544_s10 }
  0x6e   :  { %310 = vrot.lane.b32.xlu1 %v2915_v54, %s2544_s10  ;;  %308 = vrot.lane.b32.xlu0 %v2919_v55, %s2544_s10 }
  0x72   :  { %314 = vrot.lane.b32.xlu1 %v2927_v56, %s2544_s10  ;;  %312 = vrot.lane.b32.xlu0 %v2931_v57, %s2544_s10 }
  0x74   :  { %v2945_v60 = vpop.permute.xlu1 %108  ;;  %v2947_v61 = vpop.permute.xlu0 %104 }
  0x75   :  { %6432 = vst [vmem:[#allocation31_spill] sm:$0xff] %v2945_v60  ;;  %6433 = vst [vmem:[#allocation32_spill] sm:$0xff] %v2947_v61  ;;  %v2971_v61 = vmul.f32 %v2770_v30, %v2770_v30  ;;  %v2975_v60 = vmul.f32 %v2775_v31, %v2775_v31 }
  0x76   :  { %318 = vrot.lane.b32.xlu1 %v2939_v58, %s2544_s10  ;;  %316 = vrot.lane.b32.xlu0 %v2943_v59, %s2544_s10 }
  0x77   :  { %6438 = vst [vmem:[#allocation37_spill] sm:$0xff] %v2971_v61  ;;  %6439 = vst [vmem:[#allocation38_spill] sm:$0xff] %v2975_v60 }
  0x78   :  { %v2961_v57 = vpop.permute.xlu1 %110  ;;  %v2963_v56 = vpop.permute.xlu0 %106 }
  0x79   :  { %6436 = vst [vmem:[#allocation35_spill] sm:$0xff] %v2961_v57  ;;  %6437 = vst [vmem:[#allocation36_spill] sm:$0xff] %v2963_v56 }
  0x7a   :  { %322 = vrot.lane.b32.xlu1 %v2955_v62, %s2544_s10  ;;  %320 = vrot.lane.b32.xlu0 %v2959_v63, %s2544_s10 }
  0x7c   :  { %v2977_v59 = vpop.permute.xlu1 %114  ;;  %v2979_v58 = vpop.permute.xlu0 %112 }
  0x7d   :  { %6440 = vst [vmem:[#allocation39_spill] sm:$0xff] %v2977_v59  ;;  %6441 = vst [vmem:[#allocation40_spill] sm:$0xff] %v2979_v58 }
  0x7e   :  { %326 = vrot.lane.b32.xlu1 %v2971_v61, %s2544_s10  ;;  %324 = vrot.lane.b32.xlu0 %v2975_v60, %s2544_s10 }
  0x80   :  { %v2985_v56 = vpop.permute.xlu1 %118  ;;  %v2987_v57 = vpop.permute.xlu0 %116 }
  0x81   :  { %6442 = vst [vmem:[#allocation41_spill] sm:$0xff] %v2985_v56  ;;  %6443 = vst [vmem:[#allocation42_spill] sm:$0xff] %v2987_v57 }
  0x82   :  { %394 = vrot.lane.b32.xlu1 %v2579_v3, %s2545_s15  ;;  %392 = vrot.lane.b32.xlu0 %v2565_v1, %s2545_s15 }
  0x84   :  { %v2993_v59 = vpop.permute.xlu1 %122  ;;  %v2995_v58 = vpop.permute.xlu0 %120 }
  0x85   :  { %6444 = vst [vmem:[#allocation43_spill] sm:$0xff] %v2993_v59  ;;  %6445 = vst [vmem:[#allocation44_spill] sm:$0xff] %v2995_v58 }
  0x86   :  { %398 = vrot.lane.b32.xlu1 %v2574_v2, %s2545_s15  ;;  %396 = vrot.lane.b32.xlu0 %v2560_v0, %s2545_s15 }
  0x88   :  { %v3001_v56 = vpop.permute.xlu1 %126  ;;  %v3003_v57 = vpop.permute.xlu0 %124 }
  0x89   :  { %6446 = vst [vmem:[#allocation45_spill] sm:$0xff] %v3001_v56  ;;  %6447 = vst [vmem:[#allocation46_spill] sm:$0xff] %v3003_v57 }
  0x8a   :  { %402 = vrot.lane.b32.xlu1 %v2588_v4, %s2545_s15  ;;  %400 = vrot.lane.b32.xlu0 %v2593_v5, %s2545_s15 }
  0x8c   :  { %v3009_v1 = vpop.permute.xlu1 %130  ;;  %v3011_v59 = vpop.permute.xlu0 %128 }
  0x8d   :  { %6448 = vst [vmem:[#allocation47_spill] sm:$0xff] %v3009_v1  ;;  %6449 = vst [vmem:[#allocation48_spill] sm:$0xff] %v3011_v59 }
  0x8e   :  { %406 = vrot.lane.b32.xlu1 %v2602_v6, %s2545_s15  ;;  %404 = vrot.lane.b32.xlu0 %v2607_v7, %s2545_s15 }
  0x90   :  { %v3017_v58 = vpop.permute.xlu1 %134  ;;  %v3019_v56 = vpop.permute.xlu0 %132 }
  0x91   :  { %6450 = vst [vmem:[#allocation49_spill] sm:$0xff] %v3017_v58  ;;  %6451 = vst [vmem:[#allocation50_spill] sm:$0xff] %v3019_v56 }
  0x92   :  { %410 = vrot.lane.b32.xlu1 %v2616_v8, %s2545_s15  ;;  %408 = vrot.lane.b32.xlu0 %v2621_v9, %s2545_s15 }
  0x94   :  { %v3025_v57 = vpop.permute.xlu1 %138  ;;  %v3027_v1 = vpop.permute.xlu0 %136 }
  0x95   :  { %6452 = vst [vmem:[#allocation51_spill] sm:$0xff] %v3025_v57  ;;  %6453 = vst [vmem:[#allocation52_spill] sm:$0xff] %v3027_v1 }
  0x96   :  { %414 = vrot.lane.b32.xlu1 %v2630_v10, %s2545_s15  ;;  %412 = vrot.lane.b32.xlu0 %v2635_v11, %s2545_s15 }
  0x98   :  { %v3033_v59 = vpop.permute.xlu1 %142  ;;  %v3035_v58 = vpop.permute.xlu0 %140 }
  0x99   :  { %6454 = vst [vmem:[#allocation53_spill] sm:$0xff] %v3033_v59  ;;  %6455 = vst [vmem:[#allocation54_spill] sm:$0xff] %v3035_v58 }
  0x9a   :  { %418 = vrot.lane.b32.xlu1 %v2644_v12, %s2545_s15  ;;  %416 = vrot.lane.b32.xlu0 %v2649_v13, %s2545_s15 }
  0x9c   :  { %v3041_v56 = vpop.permute.xlu1 %146  ;;  %v3043_v57 = vpop.permute.xlu0 %144 }
  0x9d   :  { %6456 = vst [vmem:[#allocation55_spill] sm:$0xff] %v3041_v56  ;;  %6457 = vst [vmem:[#allocation56_spill] sm:$0xff] %v3043_v57 }
  0x9e   :  { %422 = vrot.lane.b32.xlu1 %v2658_v14, %s2545_s15  ;;  %420 = vrot.lane.b32.xlu0 %v2663_v15, %s2545_s15 }
  0xa0   :  { %v3049_v1 = vpop.permute.xlu1 %150  ;;  %v3051_v59 = vpop.permute.xlu0 %148 }
  0xa1   :  { %6458 = vst [vmem:[#allocation57_spill] sm:$0xff] %v3049_v1  ;;  %6459 = vst [vmem:[#allocation58_spill] sm:$0xff] %v3051_v59 }
  0xa2   :  { %426 = vrot.lane.b32.xlu1 %v2672_v16, %s2545_s15  ;;  %424 = vrot.lane.b32.xlu0 %v2677_v17, %s2545_s15 }
  0xa4   :  { %v3057_v58 = vpop.permute.xlu1 %154  ;;  %v3059_v56 = vpop.permute.xlu0 %152 }
  0xa5   :  { %6460 = vst [vmem:[#allocation59_spill] sm:$0xff] %v3057_v58  ;;  %6461 = vst [vmem:[#allocation60_spill] sm:$0xff] %v3059_v56 }
  0xa6   :  { %430 = vrot.lane.b32.xlu1 %v2686_v18, %s2545_s15  ;;  %428 = vrot.lane.b32.xlu0 %v2691_v19, %s2545_s15 }
  0xa8   :  { %v3065_v57 = vpop.permute.xlu1 %158  ;;  %v3067_v1 = vpop.permute.xlu0 %156 }
  0xa9   :  { %6462 = vst [vmem:[#allocation61_spill] sm:$0xff] %v3065_v57  ;;  %6463 = vst [vmem:[#allocation62_spill] sm:$0xff] %v3067_v1 }
  0xaa   :  { %434 = vrot.lane.b32.xlu1 %v2700_v20, %s2545_s15  ;;  %432 = vrot.lane.b32.xlu0 %v2705_v21, %s2545_s15 }
  0xac   :  { %v3073_v59 = vpop.permute.xlu1 %162  ;;  %v3075_v58 = vpop.permute.xlu0 %160 }
  0xad   :  { %6464 = vst [vmem:[#allocation63_spill] sm:$0xff] %v3073_v59  ;;  %6465 = vst [vmem:[#allocation64_spill] sm:$0xff] %v3075_v58 }
  0xae   :  { %438 = vrot.lane.b32.xlu1 %v2714_v22, %s2545_s15  ;;  %436 = vrot.lane.b32.xlu0 %v2719_v23, %s2545_s15 }
  0xb0   :  { %v3081_v56 = vpop.permute.xlu1 %166  ;;  %v3083_v57 = vpop.permute.xlu0 %164 }
  0xb1   :  { %6466 = vst [vmem:[#allocation65_spill] sm:$0xff] %v3081_v56  ;;  %6467 = vst [vmem:[#allocation66_spill] sm:$0xff] %v3083_v57 }
  0xb2   :  { %442 = vrot.lane.b32.xlu1 %v2728_v24, %s2545_s15  ;;  %440 = vrot.lane.b32.xlu0 %v2733_v25, %s2545_s15 }
  0xb4   :  { %v3089_v1 = vpop.permute.xlu1 %266  ;;  %v3091_v59 = vpop.permute.xlu0 %264 }
  0xb5   :  { %6468 = vst [vmem:[#allocation67_spill] sm:$0xff] %v3089_v1  ;;  %6469 = vst [vmem:[#allocation68_spill] sm:$0xff] %v3091_v59 }
  0xb6   :  { %446 = vrot.lane.b32.xlu1 %v2742_v26, %s2545_s15  ;;  %444 = vrot.lane.b32.xlu0 %v2747_v27, %s2545_s15 }
  0xb8   :  { %v3097_v58 = vpop.permute.xlu1 %270  ;;  %v3099_v56 = vpop.permute.xlu0 %268 }
  0xb9   :  { %6470 = vst [vmem:[#allocation69_spill] sm:$0xff] %v3097_v58  ;;  %6471 = vst [vmem:[#allocation70_spill] sm:$0xff] %v3099_v56 }
  0xba   :  { %450 = vrot.lane.b32.xlu1 %v2756_v28, %s2545_s15  ;;  %448 = vrot.lane.b32.xlu0 %v2761_v29, %s2545_s15 }
  0xbc   :  { %v3105_v57 = vpop.permute.xlu1 %274  ;;  %v3107_v1 = vpop.permute.xlu0 %272 }
  0xbd   :  { %6472 = vst [vmem:[#allocation71_spill] sm:$0xff] %v3105_v57  ;;  %6473 = vst [vmem:[#allocation72_spill] sm:$0xff] %v3107_v1 }
  0xbe   :  { %454 = vrot.lane.b32.xlu1 %v2770_v30, %s2545_s15  ;;  %452 = vrot.lane.b32.xlu0 %v2775_v31, %s2545_s15 }
  0xc0   :  { %v3113_v59 = vpop.permute.xlu1 %278  ;;  %v3115_v58 = vpop.permute.xlu0 %276 }
  0xc1   :  { %6474 = vst [vmem:[#allocation73_spill] sm:$0xff] %v3113_v59  ;;  %6475 = vst [vmem:[#allocation74_spill] sm:$0xff] %v3115_v58 }
  0xc2   :  { %522 = vrot.lane.b32.xlu1 %v2783_v32, %s2545_s15  ;;  %520 = vrot.lane.b32.xlu0 %v2787_v33, %s2545_s15 }
  0xc4   :  { %v3121_v56 = vpop.permute.xlu1 %282  ;;  %v3123_v57 = vpop.permute.xlu0 %280 }
  0xc5   :  { %6476 = vst [vmem:[#allocation75_spill] sm:$0xff] %v3121_v56  ;;  %6477 = vst [vmem:[#allocation76_spill] sm:$0xff] %v3123_v57 }
  0xc6   :  { %526 = vrot.lane.b32.xlu1 %v2795_v34, %s2545_s15  ;;  %524 = vrot.lane.b32.xlu0 %v2799_v35, %s2545_s15 }
  0xc8   :  { %v3129_v1 = vpop.permute.xlu1 %286  ;;  %v3131_v59 = vpop.permute.xlu0 %284 }
  0xc9   :  { %6478 = vst [vmem:[#allocation77_spill] sm:$0xff] %v3129_v1  ;;  %6479 = vst [vmem:[#allocation78_spill] sm:$0xff] %v3131_v59 }
  0xca   :  { %530 = vrot.lane.b32.xlu1 %v2807_v36, %s2545_s15  ;;  %528 = vrot.lane.b32.xlu0 %v2811_v37, %s2545_s15 }
  0xcc   :  { %v3137_v58 = vpop.permute.xlu1 %290  ;;  %v3139_v56 = vpop.permute.xlu0 %288 }
  0xcd   :  { %6480 = vst [vmem:[#allocation79_spill] sm:$0xff] %v3137_v58  ;;  %6481 = vst [vmem:[#allocation80_spill] sm:$0xff] %v3139_v56 }
  0xce   :  { %534 = vrot.lane.b32.xlu1 %v2819_v38, %s2545_s15  ;;  %532 = vrot.lane.b32.xlu0 %v2823_v39, %s2545_s15 }
  0xd0   :  { %v3145_v57 = vpop.permute.xlu1 %294  ;;  %v3147_v1 = vpop.permute.xlu0 %292 }
  0xd1   :  { %6482 = vst [vmem:[#allocation81_spill] sm:$0xff] %v3145_v57  ;;  %6483 = vst [vmem:[#allocation82_spill] sm:$0xff] %v3147_v1 }
  0xd2   :  { %538 = vrot.lane.b32.xlu1 %v2831_v40, %s2545_s15  ;;  %536 = vrot.lane.b32.xlu0 %v2835_v41, %s2545_s15 }
  0xd4   :  { %v3153_v59 = vpop.permute.xlu1 %298  ;;  %v3155_v58 = vpop.permute.xlu0 %296 }
  0xd5   :  { %6484 = vst [vmem:[#allocation83_spill] sm:$0xff] %v3153_v59  ;;  %6485 = vst [vmem:[#allocation84_spill] sm:$0xff] %v3155_v58 }
  0xd6   :  { %542 = vrot.lane.b32.xlu1 %v2843_v42, %s2545_s15  ;;  %540 = vrot.lane.b32.xlu0 %v2847_v43, %s2545_s15 }
  0xd8   :  { %v3161_v56 = vpop.permute.xlu1 %302  ;;  %v3163_v57 = vpop.permute.xlu0 %300 }
  0xd9   :  { %6486 = vst [vmem:[#allocation85_spill] sm:$0xff] %v3161_v56  ;;  %6487 = vst [vmem:[#allocation86_spill] sm:$0xff] %v3163_v57 }
  0xda   :  { %546 = vrot.lane.b32.xlu1 %v2855_v44, %s2545_s15  ;;  %544 = vrot.lane.b32.xlu0 %v2859_v45, %s2545_s15 }
  0xdc   :  { %v3169_v1 = vpop.permute.xlu1 %306  ;;  %v3171_v59 = vpop.permute.xlu0 %304 }
  0xdd   :  { %6488 = vst [vmem:[#allocation87_spill] sm:$0xff] %v3169_v1  ;;  %6489 = vst [vmem:[#allocation88_spill] sm:$0xff] %v3171_v59 }
  0xde   :  { %550 = vrot.lane.b32.xlu1 %v2867_v46, %s2545_s15  ;;  %548 = vrot.lane.b32.xlu0 %v2871_v47, %s2545_s15 }
  0xe0   :  { %v3177_v58 = vpop.permute.xlu1 %310  ;;  %v3179_v56 = vpop.permute.xlu0 %308 }
  0xe1   :  { %6490 = vst [vmem:[#allocation89_spill] sm:$0xff] %v3177_v58  ;;  %6491 = vst [vmem:[#allocation90_spill] sm:$0xff] %v3179_v56 }
  0xe2   :  { %554 = vrot.lane.b32.xlu1 %v2879_v48, %s2545_s15  ;;  %552 = vrot.lane.b32.xlu0 %v2883_v49, %s2545_s15 }
  0xe4   :  { %v3185_v57 = vpop.permute.xlu1 %314  ;;  %v3187_v1 = vpop.permute.xlu0 %312 }
  0xe5   :  { %6492 = vst [vmem:[#allocation91_spill] sm:$0xff] %v3185_v57  ;;  %6493 = vst [vmem:[#allocation92_spill] sm:$0xff] %v3187_v1 }
  0xe6   :  { %558 = vrot.lane.b32.xlu1 %v2891_v50, %s2545_s15  ;;  %556 = vrot.lane.b32.xlu0 %v2895_v51, %s2545_s15 }
  0xe8   :  { %v3193_v59 = vpop.permute.xlu1 %318  ;;  %v3195_v58 = vpop.permute.xlu0 %316 }
  0xe9   :  { %6494 = vst [vmem:[#allocation93_spill] sm:$0xff] %v3193_v59  ;;  %6495 = vst [vmem:[#allocation94_spill] sm:$0xff] %v3195_v58  ;;  %v6500_v58 = vld [vmem:[#allocation27_spill] sm:$0xff] }
  0xea   :  { %562 = vrot.lane.b32.xlu1 %v2903_v52, %s2545_s15  ;;  %560 = vrot.lane.b32.xlu0 %v2907_v53, %s2545_s15  ;;  %v6501_v52 = vld [vmem:[#allocation28_spill] sm:$0xff] }
  0xec   :  { %v3201_v56 = vpop.permute.xlu1 %322  ;;  %v3203_v57 = vpop.permute.xlu0 %320 }
  0xed   :  { %6496 = vst [vmem:[#allocation95_spill] sm:$0xff] %v3201_v56  ;;  %6497 = vst [vmem:[#allocation96_spill] sm:$0xff] %v3203_v57  ;;  %v6504_v57 = vld [vmem:[#allocation29_spill] sm:$0xff] }
  0xee   :  { %566 = vrot.lane.b32.xlu1 %v2915_v54, %s2545_s15  ;;  %564 = vrot.lane.b32.xlu0 %v2919_v55, %s2545_s15  ;;  %v6505_v54 = vld [vmem:[#allocation30_spill] sm:$0xff] }
  0xf0   :  { %v3209_v1 = vpop.permute.xlu1 %326  ;;  %v3211_v59 = vpop.permute.xlu0 %324 }
  0xf1   :  { %6498 = vst [vmem:[#allocation97_spill] sm:$0xff] %v3209_v1  ;;  %6499 = vst [vmem:[#allocation98_spill] sm:$0xff] %v3211_v59 }
  0xf2   :  { %570 = vrot.lane.b32.xlu1 %v6500_v58, %s2545_s15  ;;  %568 = vrot.lane.b32.xlu0 %v6501_v52, %s2545_s15 }
  0xf4   :  { %v3217_v53 = vpop.permute.xlu1 %394  ;;  %v3219_v56 = vpop.permute.xlu0 %392 }
  0xf5   :  { %6502 = vst [vmem:[#allocation99_spill] sm:$0xff] %v3217_v53  ;;  %6503 = vst [vmem:[#allocation100_spill] sm:$0xff] %v3219_v56 }
  0xf6   :  { %574 = vrot.lane.b32.xlu1 %v6504_v57, %s2545_s15  ;;  %572 = vrot.lane.b32.xlu0 %v6505_v54, %s2545_s15 }
  0xf8   :  { %v3225_v55 = vpop.permute.xlu1 %398  ;;  %v3227_v1 = vpop.permute.xlu0 %396 }
  0xf9   :  { %6506 = vst [vmem:[#allocation101_spill] sm:$0xff] %v3225_v55  ;;  %6507 = vst [vmem:[#allocation102_spill] sm:$0xff] %v3227_v1  ;;  %v6512_v1 = vld [vmem:[#allocation2_spill] sm:$0xff] }
  0xfa   :  { %578 = vrot.lane.b32.xlu1 %v2955_v62, %s2545_s15  ;;  %576 = vrot.lane.b32.xlu0 %v2959_v63, %s2545_s15 }
  0xfc   :  { %v3233_v59 = vpop.permute.xlu1 %402  ;;  %v3235_v53 = vpop.permute.xlu0 %400 }
  0xfd   :  { %6508 = vst [vmem:[#allocation103_spill] sm:$0xff] %v3233_v59  ;;  %6509 = vst [vmem:[#allocation104_spill] sm:$0xff] %v3235_v53 }
  0xfe   :  { %582 = vrot.lane.b32.xlu1 %v2971_v61, %s2545_s15  ;;  %580 = vrot.lane.b32.xlu0 %v2975_v60, %s2545_s15 }
 0x100   :  { %v3241_v56 = vpop.permute.xlu1 %406  ;;  %v3243_v55 = vpop.permute.xlu0 %404 }
 0x101   :  { %6510 = vst [vmem:[#allocation105_spill] sm:$0xff] %v3241_v56  ;;  %6511 = vst [vmem:[#allocation106_spill] sm:$0xff] %v3243_v55 }
 0x102   :  { %650 = vrot.lane.b32.xlu1 %v2579_v3, %s2546_s16  ;;  %648 = vrot.lane.b32.xlu0 %v6512_v1, %s2546_s16 }
 0x104   :  { %v3249_v59 = vpop.permute.xlu1 %410  ;;  %v3251_v53 = vpop.permute.xlu0 %408 }
 0x105   :  { %6513 = vst [vmem:[#allocation2_spill] sm:$0xff] %v3249_v59  ;;  %6514 = vst [vmem:[#allocation107_spill] sm:$0xff] %v3251_v53 }
 0x106   :  { %654 = vrot.lane.b32.xlu1 %v2574_v2, %s2546_s16  ;;  %652 = vrot.lane.b32.xlu0 %v2560_v0, %s2546_s16 }
 0x108   :  { %v3257_v56 = vpop.permute.xlu1 %414  ;;  %v3259_v55 = vpop.permute.xlu0 %412 }
 0x109   :  { %6515 = vst [vmem:[#allocation108_spill] sm:$0xff] %v3257_v56  ;;  %6516 = vst [vmem:[#allocation109_spill] sm:$0xff] %v3259_v55  ;;  %v6569_v55 = vld [vmem:[#allocation25_spill] sm:$0xff]  ;;  %v6570_v56 = vld [vmem:[#allocation26_spill] sm:$0xff] }
 0x10a   :  { %658 = vrot.lane.b32.xlu1 %v2588_v4, %s2546_s16  ;;  %656 = vrot.lane.b32.xlu0 %v2593_v5, %s2546_s16 }
 0x10c   :  { %v3265_v1 = vpop.permute.xlu1 %418  ;;  %v3267_v3 = vpop.permute.xlu0 %416 }
 0x10d   :  { %6517 = vst [vmem:[#allocation110_spill] sm:$0xff] %v3265_v1  ;;  %6518 = vst [vmem:[#allocation111_spill] sm:$0xff] %v3267_v3 }
 0x10e   :  { %662 = vrot.lane.b32.xlu1 %v2602_v6, %s2546_s16  ;;  %660 = vrot.lane.b32.xlu0 %v2607_v7, %s2546_s16 }
 0x110   :  { %v3273_v0 = vpop.permute.xlu1 %422  ;;  %v3275_v2 = vpop.permute.xlu0 %420 }
 0x111   :  { %6519 = vst [vmem:[#allocation112_spill] sm:$0xff] %v3273_v0  ;;  %6520 = vst [vmem:[#allocation113_spill] sm:$0xff] %v3275_v2  ;;  %v6565_v2 = vld [vmem:[#allocation23_spill] sm:$0xff]  ;;  %v6566_v0 = vld [vmem:[#allocation24_spill] sm:$0xff] }
 0x112   :  { %666 = vrot.lane.b32.xlu1 %v2616_v8, %s2546_s16  ;;  %664 = vrot.lane.b32.xlu0 %v2621_v9, %s2546_s16 }
 0x114   :  { %v3281_v4 = vpop.permute.xlu1 %426  ;;  %v3283_v5 = vpop.permute.xlu0 %424 }
 0x115   :  { %6521 = vst [vmem:[#allocation114_spill] sm:$0xff] %v3281_v4  ;;  %6522 = vst [vmem:[#allocation115_spill] sm:$0xff] %v3283_v5 }
 0x116   :  { %670 = vrot.lane.b32.xlu1 %v2630_v10, %s2546_s16  ;;  %668 = vrot.lane.b32.xlu0 %v2635_v11, %s2546_s16 }
 0x118   :  { %v3289_v6 = vpop.permute.xlu1 %430  ;;  %v3291_v7 = vpop.permute.xlu0 %428 }
 0x119   :  { %6523 = vst [vmem:[#allocation116_spill] sm:$0xff] %v3289_v6  ;;  %6524 = vst [vmem:[#allocation117_spill] sm:$0xff] %v3291_v7 }
 0x11a   :  { %674 = vrot.lane.b32.xlu1 %v2644_v12, %s2546_s16  ;;  %672 = vrot.lane.b32.xlu0 %v2649_v13, %s2546_s16 }
 0x11c   :  { %v3297_v8 = vpop.permute.xlu1 %434  ;;  %v3299_v9 = vpop.permute.xlu0 %432 }
 0x11d   :  { %6525 = vst [vmem:[#allocation118_spill] sm:$0xff] %v3297_v8  ;;  %6526 = vst [vmem:[#allocation119_spill] sm:$0xff] %v3299_v9 }
 0x11e   :  { %678 = vrot.lane.b32.xlu1 %v2658_v14, %s2546_s16  ;;  %676 = vrot.lane.b32.xlu0 %v2663_v15, %s2546_s16 }
 0x120   :  { %v3305_v10 = vpop.permute.xlu1 %438  ;;  %v3307_v11 = vpop.permute.xlu0 %436 }
 0x121   :  { %6527 = vst [vmem:[#allocation120_spill] sm:$0xff] %v3305_v10  ;;  %6528 = vst [vmem:[#allocation121_spill] sm:$0xff] %v3307_v11 }
 0x122   :  { %682 = vrot.lane.b32.xlu1 %v2672_v16, %s2546_s16  ;;  %680 = vrot.lane.b32.xlu0 %v2677_v17, %s2546_s16 }
 0x124   :  { %v3313_v12 = vpop.permute.xlu1 %442  ;;  %v3315_v13 = vpop.permute.xlu0 %440 }
 0x125   :  { %6529 = vst [vmem:[#allocation122_spill] sm:$0xff] %v3313_v12  ;;  %6530 = vst [vmem:[#allocation123_spill] sm:$0xff] %v3315_v13 }
 0x126   :  { %686 = vrot.lane.b32.xlu1 %v2686_v18, %s2546_s16  ;;  %684 = vrot.lane.b32.xlu0 %v2691_v19, %s2546_s16 }
 0x128   :  { %v3321_v14 = vpop.permute.xlu1 %446  ;;  %v3323_v15 = vpop.permute.xlu0 %444 }
 0x129   :  { %6531 = vst [vmem:[#allocation124_spill] sm:$0xff] %v3321_v14  ;;  %6532 = vst [vmem:[#allocation125_spill] sm:$0xff] %v3323_v15 }
 0x12a   :  { %690 = vrot.lane.b32.xlu1 %v2700_v20, %s2546_s16  ;;  %688 = vrot.lane.b32.xlu0 %v2705_v21, %s2546_s16 }
 0x12c   :  { %v3329_v16 = vpop.permute.xlu1 %450  ;;  %v3331_v17 = vpop.permute.xlu0 %448 }
 0x12d   :  { %6533 = vst [vmem:[#allocation126_spill] sm:$0xff] %v3329_v16  ;;  %6534 = vst [vmem:[#allocation127_spill] sm:$0xff] %v3331_v17 }
 0x12e   :  { %694 = vrot.lane.b32.xlu1 %v2714_v22, %s2546_s16  ;;  %692 = vrot.lane.b32.xlu0 %v2719_v23, %s2546_s16 }
 0x130   :  { %v3337_v18 = vpop.permute.xlu1 %454  ;;  %v3339_v19 = vpop.permute.xlu0 %452 }
 0x131   :  { %6535 = vst [vmem:[#allocation128_spill] sm:$0xff] %v3337_v18  ;;  %6536 = vst [vmem:[#allocation129_spill] sm:$0xff] %v3339_v19 }
 0x132   :  { %698 = vrot.lane.b32.xlu1 %v2728_v24, %s2546_s16  ;;  %696 = vrot.lane.b32.xlu0 %v2733_v25, %s2546_s16 }
 0x134   :  { %v3345_v20 = vpop.permute.xlu1 %522  ;;  %v3347_v21 = vpop.permute.xlu0 %520 }
 0x135   :  { %6537 = vst [vmem:[#allocation130_spill] sm:$0xff] %v3345_v20  ;;  %6538 = vst [vmem:[#allocation131_spill] sm:$0xff] %v3347_v21 }
 0x136   :  { %702 = vrot.lane.b32.xlu1 %v2742_v26, %s2546_s16  ;;  %700 = vrot.lane.b32.xlu0 %v2747_v27, %s2546_s16 }
 0x138   :  { %v3353_v22 = vpop.permute.xlu1 %526  ;;  %v3355_v23 = vpop.permute.xlu0 %524 }
 0x139   :  { %6539 = vst [vmem:[#allocation132_spill] sm:$0xff] %v3353_v22  ;;  %6540 = vst [vmem:[#allocation133_spill] sm:$0xff] %v3355_v23  ;;  %v3743_v22 = vld [vmem:[%s6306_s0 + $0x278] sm:$0xff] }
 0x13a   :  { %706 = vrot.lane.b32.xlu1 %v2756_v28, %s2546_s16  ;;  %704 = vrot.lane.b32.xlu0 %v2761_v29, %s2546_s16 }
 0x13c   :  { %v3361_v24 = vpop.permute.xlu1 %530  ;;  %v3363_v25 = vpop.permute.xlu0 %528 }
 0x13d   :  { %6541 = vst [vmem:[#allocation134_spill] sm:$0xff] %v3361_v24  ;;  %6542 = vst [vmem:[#allocation135_spill] sm:$0xff] %v3363_v25  ;;  %v3725_v24 = vld [vmem:[%s6306_s0 + $0x248] sm:$0xff] }
 0x13e   :  { %710 = vrot.lane.b32.xlu1 %v2770_v30, %s2546_s16  ;;  %708 = vrot.lane.b32.xlu0 %v2775_v31, %s2546_s16 }
 0x140   :  { %v3369_v26 = vpop.permute.xlu1 %534  ;;  %v3371_v27 = vpop.permute.xlu0 %532 }
 0x141   :  { %6543 = vst [vmem:[#allocation136_spill] sm:$0xff] %v3369_v26  ;;  %6544 = vst [vmem:[#allocation137_spill] sm:$0xff] %v3371_v27  ;;  %v3707_v26 = vld [vmem:[%s6306_s0 + $0x218] sm:$0xff] }
 0x142   :  { %778 = vrot.lane.b32.xlu1 %v2783_v32, %s2546_s16  ;;  %776 = vrot.lane.b32.xlu0 %v2787_v33, %s2546_s16 }
 0x144   :  { %v3377_v28 = vpop.permute.xlu1 %538  ;;  %v3379_v29 = vpop.permute.xlu0 %536 }
 0x145   :  { %6545 = vst [vmem:[#allocation138_spill] sm:$0xff] %v3377_v28  ;;  %6546 = vst [vmem:[#allocation139_spill] sm:$0xff] %v3379_v29  ;;  %v3689_v28 = vld [vmem:[%s6306_s0 + $0x1e8] sm:$0xff] }
 0x146   :  { %782 = vrot.lane.b32.xlu1 %v2795_v34, %s2546_s16  ;;  %780 = vrot.lane.b32.xlu0 %v2799_v35, %s2546_s16 }
 0x148   :  { %v3385_v30 = vpop.permute.xlu1 %542  ;;  %v3387_v31 = vpop.permute.xlu0 %540 }
 0x149   :  { %6547 = vst [vmem:[#allocation140_spill] sm:$0xff] %v3385_v30  ;;  %6548 = vst [vmem:[#allocation141_spill] sm:$0xff] %v3387_v31  ;;  %v3671_v30 = vld [vmem:[%s6306_s0 + $0x1b8] sm:$0xff] }
 0x14a   :  { %786 = vrot.lane.b32.xlu1 %v2807_v36, %s2546_s16  ;;  %784 = vrot.lane.b32.xlu0 %v2811_v37, %s2546_s16 }
 0x14c   :  { %v3393_v19 = vpop.permute.xlu1 %546  ;;  %v3395_v18 = vpop.permute.xlu0 %544 }
 0x14d   :  { %6549 = vst [vmem:[#allocation142_spill] sm:$0xff] %v3393_v19  ;;  %6550 = vst [vmem:[#allocation143_spill] sm:$0xff] %v3395_v18  ;;  %v3653_v19 = vld [vmem:[%s6306_s0 + $0x188] sm:$0xff] }
 0x14e   :  { %790 = vrot.lane.b32.xlu1 %v2819_v38, %s2546_s16  ;;  %788 = vrot.lane.b32.xlu0 %v2823_v39, %s2546_s16 }
 0x150   :  { %v3401_v17 = vpop.permute.xlu1 %550  ;;  %v3403_v16 = vpop.permute.xlu0 %548 }
 0x151   :  { %6551 = vst [vmem:[#allocation144_spill] sm:$0xff] %v3401_v17  ;;  %6552 = vst [vmem:[#allocation145_spill] sm:$0xff] %v3403_v16  ;;  %v3635_v17 = vld [vmem:[%s6306_s0 + $0x158] sm:$0xff] }
 0x152   :  { %794 = vrot.lane.b32.xlu1 %v2831_v40, %s2546_s16  ;;  %792 = vrot.lane.b32.xlu0 %v2835_v41, %s2546_s16 }
 0x154   :  { %v3409_v15 = vpop.permute.xlu1 %554  ;;  %v3411_v14 = vpop.permute.xlu0 %552 }
 0x155   :  { %6553 = vst [vmem:[#allocation146_spill] sm:$0xff] %v3409_v15  ;;  %6554 = vst [vmem:[#allocation147_spill] sm:$0xff] %v3411_v14  ;;  %v3617_v15 = vld [vmem:[%s6306_s0 + $0x128] sm:$0xff] }
 0x156   :  { %798 = vrot.lane.b32.xlu1 %v2843_v42, %s2546_s16  ;;  %796 = vrot.lane.b32.xlu0 %v2847_v43, %s2546_s16 }
 0x158   :  { %v3417_v13 = vpop.permute.xlu1 %558  ;;  %v3419_v12 = vpop.permute.xlu0 %556 }
 0x159   :  { %6555 = vst [vmem:[#allocation148_spill] sm:$0xff] %v3417_v13  ;;  %6556 = vst [vmem:[#allocation149_spill] sm:$0xff] %v3419_v12  ;;  %v3599_v13 = vld [vmem:[%s6306_s0 + $0xf8] sm:$0xff] }
 0x15a   :  { %802 = vrot.lane.b32.xlu1 %v2855_v44, %s2546_s16  ;;  %800 = vrot.lane.b32.xlu0 %v2859_v45, %s2546_s16 }
 0x15c   :  { %v3425_v11 = vpop.permute.xlu1 %562  ;;  %v3427_v10 = vpop.permute.xlu0 %560 }
 0x15d   :  { %6557 = vst [vmem:[#allocation150_spill] sm:$0xff] %v3425_v11  ;;  %6558 = vst [vmem:[#allocation151_spill] sm:$0xff] %v3427_v10  ;;  %v3581_v11 = vld [vmem:[%s6306_s0 + $0xc8] sm:$0xff] }
 0x15e   :  { %806 = vrot.lane.b32.xlu1 %v2867_v46, %s2546_s16  ;;  %804 = vrot.lane.b32.xlu0 %v2871_v47, %s2546_s16 }
 0x160   :  { %v3433_v9 = vpop.permute.xlu1 %566  ;;  %v3435_v8 = vpop.permute.xlu0 %564 }
 0x161   :  { %6559 = vst [vmem:[#allocation152_spill] sm:$0xff] %v3433_v9  ;;  %6560 = vst [vmem:[#allocation153_spill] sm:$0xff] %v3435_v8  ;;  %v3563_v9 = vld [vmem:[%s6306_s0 + $0x98] sm:$0xff] }
 0x162   :  { %810 = vrot.lane.b32.xlu1 %v2879_v48, %s2546_s16  ;;  %808 = vrot.lane.b32.xlu0 %v2883_v49, %s2546_s16 }
 0x164   :  { %v3441_v7 = vpop.permute.xlu1 %570  ;;  %v3443_v6 = vpop.permute.xlu0 %568 }
 0x165   :  { %6561 = vst [vmem:[#allocation154_spill] sm:$0xff] %v3441_v7  ;;  %6562 = vst [vmem:[#allocation155_spill] sm:$0xff] %v3443_v6  ;;  %v3545_v7 = vld [vmem:[%s6306_s0 + $0x68] sm:$0xff] }
 0x166   :  { %814 = vrot.lane.b32.xlu1 %v2891_v50, %s2546_s16  ;;  %812 = vrot.lane.b32.xlu0 %v2895_v51, %s2546_s16 }
 0x168   :  { %v3449_v5 = vpop.permute.xlu1 %574  ;;  %v3451_v4 = vpop.permute.xlu0 %572 }
 0x169   :  { %6563 = vst [vmem:[#allocation156_spill] sm:$0xff] %v3449_v5  ;;  %6564 = vst [vmem:[#allocation157_spill] sm:$0xff] %v3451_v4  ;;  %v3527_v5 = vld [vmem:[%s6306_s0 + $0x38] sm:$0xff] }
 0x16a   :  { %818 = vrot.lane.b32.xlu1 %v6565_v2, %s2546_s16  ;;  %816 = vrot.lane.b32.xlu0 %v6566_v0, %s2546_s16 }
 0x16c   :  { %v3457_v3 = vpop.permute.xlu1 %578  ;;  %v3459_v1 = vpop.permute.xlu0 %576 }
 0x16d   :  { %6567 = vst [vmem:[#allocation158_spill] sm:$0xff] %v3457_v3  ;;  %6568 = vst [vmem:[#allocation159_spill] sm:$0xff] %v3459_v1 }
 0x16e   :  { %822 = vrot.lane.b32.xlu1 %v6569_v55, %s2546_s16  ;;  %820 = vrot.lane.b32.xlu0 %v6570_v56, %s2546_s16 }
 0x170   :  { %v3465_v53 = vpop.permute.xlu1 %582  ;;  %v3467_v59 = vpop.permute.xlu0 %580 }
 0x171   :  { %6571 = vst [vmem:[#allocation160_spill] sm:$0xff] %v3465_v53  ;;  %6572 = vst [vmem:[#allocation161_spill] sm:$0xff] %v3467_v59 }
 0x172   :  { %826 = vrot.lane.b32.xlu1 %v6500_v58, %s2546_s16  ;;  %824 = vrot.lane.b32.xlu0 %v6501_v52, %s2546_s16 }
 0x174   :  { %v3473_v4 = vpop.permute.xlu1 %650  ;;  %v3475_v3 = vpop.permute.xlu0 %648 }
 0x175   :  { %6573 = vst [vmem:[#allocation162_spill] sm:$0xff] %v3473_v4  ;;  %6574 = vst [vmem:[#allocation163_spill] sm:$0xff] %v3475_v3 }
 0x176   :  { %830 = vrot.lane.b32.xlu1 %v6504_v57, %s2546_s16  ;;  %828 = vrot.lane.b32.xlu0 %v6505_v54, %s2546_s16 }
 0x178   :  { %v3481_v1 = vpop.permute.xlu1 %654  ;;  %v3483_v53 = vpop.permute.xlu0 %652 }
 0x179   :  { %6575 = vst [vmem:[#allocation164_spill] sm:$0xff] %v3481_v1  ;;  %6576 = vst [vmem:[#allocation165_spill] sm:$0xff] %v3483_v53  ;;  %v3504_v53 = vld [vmem:[%s6306_s0 + $0x20] sm:$0xff] }
 0x17a   :  { %834 = vrot.lane.b32.xlu1 %v2955_v62, %s2546_s16  ;;  %832 = vrot.lane.b32.xlu0 %v2959_v63, %s2546_s16  ;;  %v3779_v62 = vld [vmem:[%s6306_s0 + $0x2d8] sm:$0xff] }
 0x17c   :  { %v3489_v59 = vpop.permute.xlu1 %658  ;;  %v3491_v4 = vpop.permute.xlu0 %656 }
 0x17d   :  { %6577 = vst [vmem:[#allocation166_spill] sm:$0xff] %v3489_v59  ;;  %6578 = vst [vmem:[#allocation167_spill] sm:$0xff] %v3491_v4  ;;  %v3509_v59 = vld [vmem:[%s6306_s0 + $0x8] sm:$0xff] }
 0x17e   :  { %838 = vrot.lane.b32.xlu1 %v2971_v61, %s2546_s16  ;;  %836 = vrot.lane.b32.xlu0 %v2975_v60, %s2546_s16  ;;  %v3761_v61 = vld [vmem:[%s6306_s0 + $0x2a8] sm:$0xff]  ;;  %v3795_v20 = vmul.f32 %v3509_v59, %v3509_v59 }
 0x180   :  { %v3497_v3 = vpop.permute.xlu1 %662  ;;  %v3499_v1 = vpop.permute.xlu0 %660 }
 0x181   :  { %6579 = vst [vmem:[#allocation168_spill] sm:$0xff] %v3497_v3  ;;  %6580 = vst [vmem:[#allocation169_spill] sm:$0xff] %v3499_v1  ;;  %v3522_v1 = vld [vmem:[%s6306_s0 + $0x50] sm:$0xff] }
 0x182   :  { %1066 = vrot.lane.b32.xlu1 %v3504_v53, %s2544_s10  ;;  %1064 = vrot.lane.b32.xlu0 %v3509_v59, %s2544_s10 }
 0x184   :  { %v3515_v4 = vpop.permute.xlu1 %666  ;;  %v3517_v3 = vpop.permute.xlu0 %664 }
 0x185   :  { %6581 = vst [vmem:[#allocation170_spill] sm:$0xff] %v3515_v4  ;;  %6582 = vst [vmem:[#allocation171_spill] sm:$0xff] %v3517_v3  ;;  %v3540_v3 = vld [vmem:[%s6306_s0 + $0x80] sm:$0xff] }
 0x186   :  { %1070 = vrot.lane.b32.xlu1 %v3522_v1, %s2544_s10  ;;  %1068 = vrot.lane.b32.xlu0 %v3527_v5, %s2544_s10 }
 0x188   :  { %v3533_v6 = vpop.permute.xlu1 %670  ;;  %v3535_v4 = vpop.permute.xlu0 %668 }
 0x189   :  { %6583 = vst [vmem:[#allocation172_spill] sm:$0xff] %v3533_v6  ;;  %6584 = vst [vmem:[#allocation173_spill] sm:$0xff] %v3535_v4  ;;  %v3558_v4 = vld [vmem:[%s6306_s0 + $0xb0] sm:$0xff] }
 0x18a   :  { %1074 = vrot.lane.b32.xlu1 %v3540_v3, %s2544_s10  ;;  %1072 = vrot.lane.b32.xlu0 %v3545_v7, %s2544_s10 }
 0x18c   :  { %v3551_v8 = vpop.permute.xlu1 %674  ;;  %v3553_v6 = vpop.permute.xlu0 %672 }
 0x18d   :  { %6585 = vst [vmem:[#allocation174_spill] sm:$0xff] %v3551_v8  ;;  %6586 = vst [vmem:[#allocation175_spill] sm:$0xff] %v3553_v6  ;;  %v3576_v6 = vld [vmem:[%s6306_s0 + $0xe0] sm:$0xff] }
 0x18e   :  { %1078 = vrot.lane.b32.xlu1 %v3558_v4, %s2544_s10  ;;  %1076 = vrot.lane.b32.xlu0 %v3563_v9, %s2544_s10 }
 0x190   :  { %v3569_v10 = vpop.permute.xlu1 %678  ;;  %v3571_v8 = vpop.permute.xlu0 %676 }
 0x191   :  { %6587 = vst [vmem:[#allocation176_spill] sm:$0xff] %v3569_v10  ;;  %6588 = vst [vmem:[#allocation177_spill] sm:$0xff] %v3571_v8  ;;  %v3594_v8 = vld [vmem:[%s6306_s0 + $0x110] sm:$0xff] }
 0x192   :  { %1082 = vrot.lane.b32.xlu1 %v3576_v6, %s2544_s10  ;;  %1080 = vrot.lane.b32.xlu0 %v3581_v11, %s2544_s10 }
 0x194   :  { %v3587_v12 = vpop.permute.xlu1 %682  ;;  %v3589_v10 = vpop.permute.xlu0 %680 }
 0x195   :  { %6589 = vst [vmem:[#allocation178_spill] sm:$0xff] %v3587_v12  ;;  %6590 = vst [vmem:[#allocation179_spill] sm:$0xff] %v3589_v10  ;;  %v3612_v10 = vld [vmem:[%s6306_s0 + $0x140] sm:$0xff] }
 0x196   :  { %1086 = vrot.lane.b32.xlu1 %v3594_v8, %s2544_s10  ;;  %1084 = vrot.lane.b32.xlu0 %v3599_v13, %s2544_s10 }
 0x198   :  { %v3605_v14 = vpop.permute.xlu1 %686  ;;  %v3607_v12 = vpop.permute.xlu0 %684 }
 0x199   :  { %6591 = vst [vmem:[#allocation180_spill] sm:$0xff] %v3605_v14  ;;  %6592 = vst [vmem:[#allocation181_spill] sm:$0xff] %v3607_v12  ;;  %v3630_v12 = vld [vmem:[%s6306_s0 + $0x170] sm:$0xff] }
 0x19a   :  { %1090 = vrot.lane.b32.xlu1 %v3612_v10, %s2544_s10  ;;  %1088 = vrot.lane.b32.xlu0 %v3617_v15, %s2544_s10 }
 0x19c   :  { %v3623_v16 = vpop.permute.xlu1 %690  ;;  %v3625_v14 = vpop.permute.xlu0 %688 }
 0x19d   :  { %6593 = vst [vmem:[#allocation182_spill] sm:$0xff] %v3623_v16  ;;  %6594 = vst [vmem:[#allocation183_spill] sm:$0xff] %v3625_v14  ;;  %v3648_v14 = vld [vmem:[%s6306_s0 + $0x1a0] sm:$0xff] }
 0x19e   :  { %1094 = vrot.lane.b32.xlu1 %v3630_v12, %s2544_s10  ;;  %1092 = vrot.lane.b32.xlu0 %v3635_v17, %s2544_s10 }
 0x1a0   :  { %v3641_v18 = vpop.permute.xlu1 %694  ;;  %v3643_v16 = vpop.permute.xlu0 %692 }
 0x1a1   :  { %6595 = vst [vmem:[#allocation184_spill] sm:$0xff] %v3641_v18  ;;  %6596 = vst [vmem:[#allocation185_spill] sm:$0xff] %v3643_v16  ;;  %v3666_v16 = vld [vmem:[%s6306_s0 + $0x1d0] sm:$0xff] }
 0x1a2   :  { %1098 = vrot.lane.b32.xlu1 %v3648_v14, %s2544_s10  ;;  %1096 = vrot.lane.b32.xlu0 %v3653_v19, %s2544_s10 }
 0x1a4   :  { %v3659_v31 = vpop.permute.xlu1 %698  ;;  %v3661_v18 = vpop.permute.xlu0 %696 }
 0x1a5   :  { %6597 = vst [vmem:[#allocation186_spill] sm:$0xff] %v3659_v31  ;;  %6598 = vst [vmem:[#allocation187_spill] sm:$0xff] %v3661_v18  ;;  %v3684_v18 = vld [vmem:[%s6306_s0 + $0x200] sm:$0xff] }
 0x1a6   :  { %1102 = vrot.lane.b32.xlu1 %v3666_v16, %s2544_s10  ;;  %1100 = vrot.lane.b32.xlu0 %v3671_v30, %s2544_s10 }
 0x1a8   :  { %v3677_v29 = vpop.permute.xlu1 %702  ;;  %v3679_v31 = vpop.permute.xlu0 %700 }
 0x1a9   :  { %6599 = vst [vmem:[#allocation188_spill] sm:$0xff] %v3677_v29  ;;  %6600 = vst [vmem:[#allocation189_spill] sm:$0xff] %v3679_v31  ;;  %v3702_v31 = vld [vmem:[%s6306_s0 + $0x230] sm:$0xff] }
 0x1aa   :  { %1106 = vrot.lane.b32.xlu1 %v3684_v18, %s2544_s10  ;;  %1104 = vrot.lane.b32.xlu0 %v3689_v28, %s2544_s10 }
 0x1ac   :  { %v3695_v27 = vpop.permute.xlu1 %706  ;;  %v3697_v29 = vpop.permute.xlu0 %704 }
 0x1ad   :  { %6601 = vst [vmem:[#allocation190_spill] sm:$0xff] %v3695_v27  ;;  %6602 = vst [vmem:[#allocation191_spill] sm:$0xff] %v3697_v29  ;;  %v3720_v29 = vld [vmem:[%s6306_s0 + $0x260] sm:$0xff] }
 0x1ae   :  { %1110 = vrot.lane.b32.xlu1 %v3702_v31, %s2544_s10  ;;  %1108 = vrot.lane.b32.xlu0 %v3707_v26, %s2544_s10 }
 0x1b0   :  { %v3713_v25 = vpop.permute.xlu1 %710  ;;  %v3715_v27 = vpop.permute.xlu0 %708 }
 0x1b1   :  { %6603 = vst [vmem:[#allocation192_spill] sm:$0xff] %v3713_v25  ;;  %6604 = vst [vmem:[#allocation193_spill] sm:$0xff] %v3715_v27  ;;  %v3738_v27 = vld [vmem:[%s6306_s0 + $0x290] sm:$0xff] }
 0x1b2   :  { %1114 = vrot.lane.b32.xlu1 %v3720_v29, %s2544_s10  ;;  %1112 = vrot.lane.b32.xlu0 %v3725_v24, %s2544_s10 }
 0x1b4   :  { %v3731_v23 = vpop.permute.xlu1 %778  ;;  %v3733_v25 = vpop.permute.xlu0 %776 }
 0x1b5   :  { %6605 = vst [vmem:[#allocation194_spill] sm:$0xff] %v3731_v23  ;;  %6606 = vst [vmem:[#allocation195_spill] sm:$0xff] %v3733_v25  ;;  %v3756_v25 = vld [vmem:[%s6306_s0 + $0x2c0] sm:$0xff] }
 0x1b6   :  { %1118 = vrot.lane.b32.xlu1 %v3738_v27, %s2544_s10  ;;  %1116 = vrot.lane.b32.xlu0 %v3743_v22, %s2544_s10 }
 0x1b8   :  { %v3749_v60 = vpop.permute.xlu1 %782  ;;  %v3751_v23 = vpop.permute.xlu0 %780 }
 0x1b9   :  { %6607 = vst [vmem:[#allocation196_spill] sm:$0xff] %v3749_v60  ;;  %6608 = vst [vmem:[#allocation197_spill] sm:$0xff] %v3751_v23  ;;  %v3774_v23 = vld [vmem:[%s6306_s0 + $0x2f0] sm:$0xff] }
 0x1ba   :  { %1122 = vrot.lane.b32.xlu1 %v3756_v25, %s2544_s10  ;;  %1120 = vrot.lane.b32.xlu0 %v3761_v61, %s2544_s10 }
 0x1bc   :  { %v3767_v63 = vpop.permute.xlu1 %786  ;;  %v3769_v60 = vpop.permute.xlu0 %784 }
 0x1bd   :  { %6609 = vst [vmem:[#allocation198_spill] sm:$0xff] %v3767_v63  ;;  %6610 = vst [vmem:[#allocation199_spill] sm:$0xff] %v3769_v60  ;;  %v3791_v60 = vmul.f32 %v3504_v53, %v3504_v53 }
 0x1be   :  { %1126 = vrot.lane.b32.xlu1 %v3774_v23, %s2544_s10  ;;  %1124 = vrot.lane.b32.xlu0 %v3779_v62, %s2544_s10 }
 0x1c0   :  { %v3785_v21 = vpop.permute.xlu1 %790  ;;  %v3787_v63 = vpop.permute.xlu0 %788 }
 0x1c1   :  { %6611 = vst [vmem:[#allocation200_spill] sm:$0xff] %v3785_v21  ;;  %6612 = vst [vmem:[#allocation201_spill] sm:$0xff] %v3787_v63  ;;  %v3807_v63 = vmul.f32 %v3522_v1, %v3522_v1  ;;  %v3811_v21 = vmul.f32 %v3527_v5, %v3527_v5 }
 0x1c2   :  { %1226 = vrot.lane.b32.xlu1 %v3791_v60, %s2544_s10  ;;  %1224 = vrot.lane.b32.xlu0 %v3795_v20, %s2544_s10 }
 0x1c4   :  { %v3801_v54 = vpop.permute.xlu1 %794  ;;  %v3803_v57 = vpop.permute.xlu0 %792 }
 0x1c5   :  { %6613 = vst [vmem:[#allocation202_spill] sm:$0xff] %v3801_v54  ;;  %6614 = vst [vmem:[#allocation203_spill] sm:$0xff] %v3803_v57  ;;  %v3823_v57 = vmul.f32 %v3540_v3, %v3540_v3  ;;  %v3827_v54 = vmul.f32 %v3545_v7, %v3545_v7 }
 0x1c6   :  { %1230 = vrot.lane.b32.xlu1 %v3807_v63, %s2544_s10  ;;  %1228 = vrot.lane.b32.xlu0 %v3811_v21, %s2544_s10 }
 0x1c8   :  { %v3817_v52 = vpop.permute.xlu1 %798  ;;  %v3819_v58 = vpop.permute.xlu0 %796 }
 0x1c9   :  { %6615 = vst [vmem:[#allocation204_spill] sm:$0xff] %v3817_v52  ;;  %6616 = vst [vmem:[#allocation205_spill] sm:$0xff] %v3819_v58  ;;  %v3839_v58 = vmul.f32 %v3558_v4, %v3558_v4  ;;  %v3843_v52 = vmul.f32 %v3563_v9, %v3563_v9 }
 0x1ca   :  { %1234 = vrot.lane.b32.xlu1 %v3823_v57, %s2544_s10  ;;  %1232 = vrot.lane.b32.xlu0 %v3827_v54, %s2544_s10 }
 0x1cc   :  { %v3833_v56 = vpop.permute.xlu1 %802  ;;  %v3835_v55 = vpop.permute.xlu0 %800 }
 0x1cd   :  { %6617 = vst [vmem:[#allocation206_spill] sm:$0xff] %v3833_v56  ;;  %6618 = vst [vmem:[#allocation207_spill] sm:$0xff] %v3835_v55  ;;  %v3855_v55 = vmul.f32 %v3576_v6, %v3576_v6  ;;  %v3859_v56 = vmul.f32 %v3581_v11, %v3581_v11 }
 0x1ce   :  { %1238 = vrot.lane.b32.xlu1 %v3839_v58, %s2544_s10  ;;  %1236 = vrot.lane.b32.xlu0 %v3843_v52, %s2544_s10 }
 0x1d0   :  { %v3849_v0 = vpop.permute.xlu1 %806  ;;  %v3851_v2 = vpop.permute.xlu0 %804 }
 0x1d1   :  { %6619 = vst [vmem:[#allocation208_spill] sm:$0xff] %v3849_v0  ;;  %6620 = vst [vmem:[#allocation209_spill] sm:$0xff] %v3851_v2  ;;  %v3871_v2 = vmul.f32 %v3594_v8, %v3594_v8  ;;  %v3875_v0 = vmul.f32 %v3599_v13, %v3599_v13 }
 0x1d2   :  { %1242 = vrot.lane.b32.xlu1 %v3855_v55, %s2544_s10  ;;  %1240 = vrot.lane.b32.xlu0 %v3859_v56, %s2544_s10 }
 0x1d3   :  { %6623 = vst [vmem:[#allocation212_spill] sm:$0xff] %v3871_v2  ;;  %6624 = vst [vmem:[#allocation213_spill] sm:$0xff] %v3875_v0 }
 0x1d4   :  { %v3865_v51 = vpop.permute.xlu1 %810  ;;  %v3867_v50 = vpop.permute.xlu0 %808 }
 0x1d5   :  { %6621 = vst [vmem:[#allocation210_spill] sm:$0xff] %v3865_v51  ;;  %6622 = vst [vmem:[#allocation211_spill] sm:$0xff] %v3867_v50  ;;  %v3887_v50 = vmul.f32 %v3612_v10, %v3612_v10  ;;  %v3891_v51 = vmul.f32 %v3617_v15, %v3617_v15 }
 0x1d6   :  { %1246 = vrot.lane.b32.xlu1 %v3871_v2, %s2544_s10  ;;  %1244 = vrot.lane.b32.xlu0 %v3875_v0, %s2544_s10 }
 0x1d7   :  { %6627 = vst [vmem:[#allocation216_spill] sm:$0xff] %v3887_v50  ;;  %6628 = vst [vmem:[#allocation217_spill] sm:$0xff] %v3891_v51 }
 0x1d8   :  { %v3881_v49 = vpop.permute.xlu1 %814  ;;  %v3883_v48 = vpop.permute.xlu0 %812 }
 0x1d9   :  { %6625 = vst [vmem:[#allocation214_spill] sm:$0xff] %v3881_v49  ;;  %6626 = vst [vmem:[#allocation215_spill] sm:$0xff] %v3883_v48  ;;  %v3903_v48 = vmul.f32 %v3630_v12, %v3630_v12  ;;  %v3907_v49 = vmul.f32 %v3635_v17, %v3635_v17 }
 0x1da   :  { %1250 = vrot.lane.b32.xlu1 %v3887_v50, %s2544_s10  ;;  %1248 = vrot.lane.b32.xlu0 %v3891_v51, %s2544_s10 }
 0x1db   :  { %6631 = vst [vmem:[#allocation220_spill] sm:$0xff] %v3903_v48  ;;  %6632 = vst [vmem:[#allocation221_spill] sm:$0xff] %v3907_v49 }
 0x1dc   :  { %v3897_v47 = vpop.permute.xlu1 %818  ;;  %v3899_v46 = vpop.permute.xlu0 %816 }
 0x1dd   :  { %6629 = vst [vmem:[#allocation218_spill] sm:$0xff] %v3897_v47  ;;  %6630 = vst [vmem:[#allocation219_spill] sm:$0xff] %v3899_v46  ;;  %v3919_v46 = vmul.f32 %v3648_v14, %v3648_v14  ;;  %v3923_v47 = vmul.f32 %v3653_v19, %v3653_v19 }
 0x1de   :  { %1254 = vrot.lane.b32.xlu1 %v3903_v48, %s2544_s10  ;;  %1252 = vrot.lane.b32.xlu0 %v3907_v49, %s2544_s10 }
 0x1df   :  { %6635 = vst [vmem:[#allocation224_spill] sm:$0xff] %v3919_v46  ;;  %6636 = vst [vmem:[#allocation225_spill] sm:$0xff] %v3923_v47 }
 0x1e0   :  { %v3913_v45 = vpop.permute.xlu1 %822  ;;  %v3915_v44 = vpop.permute.xlu0 %820 }
 0x1e1   :  { %6633 = vst [vmem:[#allocation222_spill] sm:$0xff] %v3913_v45  ;;  %6634 = vst [vmem:[#allocation223_spill] sm:$0xff] %v3915_v44  ;;  %v3935_v44 = vmul.f32 %v3666_v16, %v3666_v16  ;;  %v3939_v45 = vmul.f32 %v3671_v30, %v3671_v30 }
 0x1e2   :  { %1258 = vrot.lane.b32.xlu1 %v3919_v46, %s2544_s10  ;;  %1256 = vrot.lane.b32.xlu0 %v3923_v47, %s2544_s10 }
 0x1e3   :  { %6639 = vst [vmem:[#allocation228_spill] sm:$0xff] %v3935_v44  ;;  %6640 = vst [vmem:[#allocation229_spill] sm:$0xff] %v3939_v45 }
 0x1e4   :  { %v3929_v43 = vpop.permute.xlu1 %826  ;;  %v3931_v42 = vpop.permute.xlu0 %824 }
 0x1e5   :  { %6637 = vst [vmem:[#allocation226_spill] sm:$0xff] %v3929_v43  ;;  %6638 = vst [vmem:[#allocation227_spill] sm:$0xff] %v3931_v42  ;;  %v3951_v42 = vmul.f32 %v3684_v18, %v3684_v18  ;;  %v3955_v43 = vmul.f32 %v3689_v28, %v3689_v28 }
 0x1e6   :  { %1262 = vrot.lane.b32.xlu1 %v3935_v44, %s2544_s10  ;;  %1260 = vrot.lane.b32.xlu0 %v3939_v45, %s2544_s10 }
 0x1e7   :  { %6643 = vst [vmem:[#allocation232_spill] sm:$0xff] %v3951_v42  ;;  %6644 = vst [vmem:[#allocation233_spill] sm:$0xff] %v3955_v43 }
 0x1e8   :  { %v3945_v41 = vpop.permute.xlu1 %830  ;;  %v3947_v40 = vpop.permute.xlu0 %828 }
 0x1e9   :  { %6641 = vst [vmem:[#allocation230_spill] sm:$0xff] %v3945_v41  ;;  %6642 = vst [vmem:[#allocation231_spill] sm:$0xff] %v3947_v40  ;;  %v3967_v40 = vmul.f32 %v3702_v31, %v3702_v31  ;;  %v3971_v41 = vmul.f32 %v3707_v26, %v3707_v26 }
 0x1ea   :  { %1266 = vrot.lane.b32.xlu1 %v3951_v42, %s2544_s10  ;;  %1264 = vrot.lane.b32.xlu0 %v3955_v43, %s2544_s10 }
 0x1eb   :  { %6647 = vst [vmem:[#allocation236_spill] sm:$0xff] %v3967_v40  ;;  %6648 = vst [vmem:[#allocation237_spill] sm:$0xff] %v3971_v41 }
 0x1ec   :  { %v3961_v39 = vpop.permute.xlu1 %834  ;;  %v3963_v38 = vpop.permute.xlu0 %832 }
 0x1ed   :  { %6645 = vst [vmem:[#allocation234_spill] sm:$0xff] %v3961_v39  ;;  %6646 = vst [vmem:[#allocation235_spill] sm:$0xff] %v3963_v38  ;;  %v3983_v38 = vmul.f32 %v3720_v29, %v3720_v29  ;;  %v3987_v39 = vmul.f32 %v3725_v24, %v3725_v24 }
 0x1ee   :  { %1270 = vrot.lane.b32.xlu1 %v3967_v40, %s2544_s10  ;;  %1268 = vrot.lane.b32.xlu0 %v3971_v41, %s2544_s10 }
 0x1ef   :  { %6651 = vst [vmem:[#allocation240_spill] sm:$0xff] %v3983_v38  ;;  %6652 = vst [vmem:[#allocation241_spill] sm:$0xff] %v3987_v39 }
 0x1f0   :  { %v3977_v37 = vpop.permute.xlu1 %838  ;;  %v3979_v36 = vpop.permute.xlu0 %836 }
 0x1f1   :  { %6649 = vst [vmem:[#allocation238_spill] sm:$0xff] %v3977_v37  ;;  %6650 = vst [vmem:[#allocation239_spill] sm:$0xff] %v3979_v36  ;;  %v3999_v36 = vmul.f32 %v3738_v27, %v3738_v27  ;;  %v4003_v37 = vmul.f32 %v3743_v22, %v3743_v22 }
 0x1f2   :  { %1274 = vrot.lane.b32.xlu1 %v3983_v38, %s2544_s10  ;;  %1272 = vrot.lane.b32.xlu0 %v3987_v39, %s2544_s10 }
 0x1f3   :  { %6655 = vst [vmem:[#allocation244_spill] sm:$0xff] %v3999_v36  ;;  %6656 = vst [vmem:[#allocation245_spill] sm:$0xff] %v4003_v37 }
 0x1f4   :  { %v3993_v35 = vpop.permute.xlu1 %1066  ;;  %v3995_v34 = vpop.permute.xlu0 %1064 }
 0x1f5   :  { %6653 = vst [vmem:[#allocation242_spill] sm:$0xff] %v3993_v35  ;;  %6654 = vst [vmem:[#allocation243_spill] sm:$0xff] %v3995_v34  ;;  %v4015_v34 = vmul.f32 %v3756_v25, %v3756_v25  ;;  %v4019_v35 = vmul.f32 %v3761_v61, %v3761_v61 }
 0x1f6   :  { %1278 = vrot.lane.b32.xlu1 %v3999_v36, %s2544_s10  ;;  %1276 = vrot.lane.b32.xlu0 %v4003_v37, %s2544_s10 }
 0x1f7   :  { %6659 = vst [vmem:[#allocation248_spill] sm:$0xff] %v4015_v34  ;;  %6660 = vst [vmem:[#allocation249_spill] sm:$0xff] %v4019_v35 }
 0x1f8   :  { %v4009_v33 = vpop.permute.xlu1 %1070  ;;  %v4011_v32 = vpop.permute.xlu0 %1068 }
 0x1f9   :  { %6657 = vst [vmem:[#allocation246_spill] sm:$0xff] %v4009_v33  ;;  %6658 = vst [vmem:[#allocation247_spill] sm:$0xff] %v4011_v32  ;;  %v4031_v32 = vmul.f32 %v3774_v23, %v3774_v23  ;;  %v4035_v33 = vmul.f32 %v3779_v62, %v3779_v62 }
 0x1fa   :  { %1282 = vrot.lane.b32.xlu1 %v4015_v34, %s2544_s10  ;;  %1280 = vrot.lane.b32.xlu0 %v4019_v35, %s2544_s10 }
 0x1fb   :  { %6663 = vst [vmem:[#allocation252_spill] sm:$0xff] %v4031_v32  ;;  %6664 = vst [vmem:[#allocation253_spill] sm:$0xff] %v4035_v33 }
 0x1fc   :  { %v4025_v36 = vpop.permute.xlu1 %1074  ;;  %v4027_v37 = vpop.permute.xlu0 %1072 }
 0x1fd   :  { %6661 = vst [vmem:[#allocation250_spill] sm:$0xff] %v4025_v36  ;;  %6662 = vst [vmem:[#allocation251_spill] sm:$0xff] %v4027_v37 }
 0x1fe   :  { %1286 = vrot.lane.b32.xlu1 %v4031_v32, %s2544_s10  ;;  %1284 = vrot.lane.b32.xlu0 %v4035_v33, %s2544_s10 }
 0x200   :  { %v4041_v34 = vpop.permute.xlu1 %1078  ;;  %v4043_v35 = vpop.permute.xlu0 %1076 }
 0x201   :  { %6665 = vst [vmem:[#allocation254_spill] sm:$0xff] %v4041_v34  ;;  %6666 = vst [vmem:[#allocation255_spill] sm:$0xff] %v4043_v35 }
 0x202   :  { %1354 = vrot.lane.b32.xlu1 %v3504_v53, %s2545_s15  ;;  %1352 = vrot.lane.b32.xlu0 %v3509_v59, %s2545_s15 }
 0x204   :  { %v4049_v37 = vpop.permute.xlu1 %1082  ;;  %v4051_v36 = vpop.permute.xlu0 %1080 }
 0x205   :  { %6667 = vst [vmem:[#allocation256_spill] sm:$0xff] %v4049_v37  ;;  %6668 = vst [vmem:[#allocation257_spill] sm:$0xff] %v4051_v36 }
 0x206   :  { %1358 = vrot.lane.b32.xlu1 %v3522_v1, %s2545_s15  ;;  %1356 = vrot.lane.b32.xlu0 %v3527_v5, %s2545_s15 }
 0x208   :  { %v4057_v33 = vpop.permute.xlu1 %1086  ;;  %v4059_v34 = vpop.permute.xlu0 %1084 }
 0x209   :  { %6669 = vst [vmem:[#allocation258_spill] sm:$0xff] %v4057_v33  ;;  %6670 = vst [vmem:[#allocation259_spill] sm:$0xff] %v4059_v34 }
 0x20a   :  { %1362 = vrot.lane.b32.xlu1 %v3540_v3, %s2545_s15  ;;  %1360 = vrot.lane.b32.xlu0 %v3545_v7, %s2545_s15 }
 0x20c   :  { %v4065_v35 = vpop.permute.xlu1 %1090  ;;  %v4067_v37 = vpop.permute.xlu0 %1088 }
 0x20d   :  { %6671 = vst [vmem:[#allocation260_spill] sm:$0xff] %v4065_v35  ;;  %6672 = vst [vmem:[#allocation261_spill] sm:$0xff] %v4067_v37 }
 0x20e   :  { %1366 = vrot.lane.b32.xlu1 %v3558_v4, %s2545_s15  ;;  %1364 = vrot.lane.b32.xlu0 %v3563_v9, %s2545_s15 }
 0x210   :  { %v4073_v36 = vpop.permute.xlu1 %1094  ;;  %v4075_v33 = vpop.permute.xlu0 %1092 }
 0x211   :  { %6673 = vst [vmem:[#allocation262_spill] sm:$0xff] %v4073_v36  ;;  %6674 = vst [vmem:[#allocation263_spill] sm:$0xff] %v4075_v33 }
 0x212   :  { %1370 = vrot.lane.b32.xlu1 %v3576_v6, %s2545_s15  ;;  %1368 = vrot.lane.b32.xlu0 %v3581_v11, %s2545_s15 }
 0x214   :  { %v4081_v34 = vpop.permute.xlu1 %1098  ;;  %v4083_v35 = vpop.permute.xlu0 %1096 }
 0x215   :  { %6675 = vst [vmem:[#allocation264_spill] sm:$0xff] %v4081_v34  ;;  %6676 = vst [vmem:[#allocation265_spill] sm:$0xff] %v4083_v35 }
 0x216   :  { %1374 = vrot.lane.b32.xlu1 %v3594_v8, %s2545_s15  ;;  %1372 = vrot.lane.b32.xlu0 %v3599_v13, %s2545_s15 }
 0x218   :  { %v4089_v37 = vpop.permute.xlu1 %1102  ;;  %v4091_v36 = vpop.permute.xlu0 %1100 }
 0x219   :  { %6677 = vst [vmem:[#allocation266_spill] sm:$0xff] %v4089_v37  ;;  %6678 = vst [vmem:[#allocation267_spill] sm:$0xff] %v4091_v36 }
 0x21a   :  { %1378 = vrot.lane.b32.xlu1 %v3612_v10, %s2545_s15  ;;  %1376 = vrot.lane.b32.xlu0 %v3617_v15, %s2545_s15 }
 0x21c   :  { %v4097_v33 = vpop.permute.xlu1 %1106  ;;  %v4099_v34 = vpop.permute.xlu0 %1104 }
 0x21d   :  { %6679 = vst [vmem:[#allocation268_spill] sm:$0xff] %v4097_v33  ;;  %6680 = vst [vmem:[#allocation269_spill] sm:$0xff] %v4099_v34 }
 0x21e   :  { %1382 = vrot.lane.b32.xlu1 %v3630_v12, %s2545_s15  ;;  %1380 = vrot.lane.b32.xlu0 %v3635_v17, %s2545_s15 }
 0x220   :  { %v4105_v35 = vpop.permute.xlu1 %1110  ;;  %v4107_v37 = vpop.permute.xlu0 %1108 }
 0x221   :  { %6681 = vst [vmem:[#allocation270_spill] sm:$0xff] %v4105_v35  ;;  %6682 = vst [vmem:[#allocation271_spill] sm:$0xff] %v4107_v37 }
 0x222   :  { %1386 = vrot.lane.b32.xlu1 %v3648_v14, %s2545_s15  ;;  %1384 = vrot.lane.b32.xlu0 %v3653_v19, %s2545_s15 }
 0x224   :  { %v4113_v36 = vpop.permute.xlu1 %1114  ;;  %v4115_v33 = vpop.permute.xlu0 %1112 }
 0x225   :  { %6683 = vst [vmem:[#allocation272_spill] sm:$0xff] %v4113_v36  ;;  %6684 = vst [vmem:[#allocation273_spill] sm:$0xff] %v4115_v33 }
 0x226   :  { %1390 = vrot.lane.b32.xlu1 %v3666_v16, %s2545_s15  ;;  %1388 = vrot.lane.b32.xlu0 %v3671_v30, %s2545_s15 }
 0x228   :  { %v4121_v34 = vpop.permute.xlu1 %1118  ;;  %v4123_v35 = vpop.permute.xlu0 %1116 }
 0x229   :  { %6685 = vst [vmem:[#allocation274_spill] sm:$0xff] %v4121_v34  ;;  %6686 = vst [vmem:[#allocation275_spill] sm:$0xff] %v4123_v35 }
 0x22a   :  { %1394 = vrot.lane.b32.xlu1 %v3684_v18, %s2545_s15  ;;  %1392 = vrot.lane.b32.xlu0 %v3689_v28, %s2545_s15 }
 0x22c   :  { %v4129_v37 = vpop.permute.xlu1 %1122  ;;  %v4131_v36 = vpop.permute.xlu0 %1120 }
 0x22d   :  { %6687 = vst [vmem:[#allocation276_spill] sm:$0xff] %v4129_v37  ;;  %6688 = vst [vmem:[#allocation277_spill] sm:$0xff] %v4131_v36 }
 0x22e   :  { %1398 = vrot.lane.b32.xlu1 %v3702_v31, %s2545_s15  ;;  %1396 = vrot.lane.b32.xlu0 %v3707_v26, %s2545_s15 }
 0x230   :  { %v4137_v33 = vpop.permute.xlu1 %1126  ;;  %v4139_v34 = vpop.permute.xlu0 %1124 }
 0x231   :  { %6689 = vst [vmem:[#allocation278_spill] sm:$0xff] %v4137_v33  ;;  %6690 = vst [vmem:[#allocation279_spill] sm:$0xff] %v4139_v34 }
 0x232   :  { %1402 = vrot.lane.b32.xlu1 %v3720_v29, %s2545_s15  ;;  %1400 = vrot.lane.b32.xlu0 %v3725_v24, %s2545_s15 }
 0x234   :  { %v4145_v35 = vpop.permute.xlu1 %1226  ;;  %v4147_v37 = vpop.permute.xlu0 %1224 }
 0x235   :  { %6691 = vst [vmem:[#allocation280_spill] sm:$0xff] %v4145_v35  ;;  %6692 = vst [vmem:[#allocation281_spill] sm:$0xff] %v4147_v37 }
 0x236   :  { %1406 = vrot.lane.b32.xlu1 %v3738_v27, %s2545_s15  ;;  %1404 = vrot.lane.b32.xlu0 %v3743_v22, %s2545_s15 }
 0x238   :  { %v4153_v36 = vpop.permute.xlu1 %1230  ;;  %v4155_v33 = vpop.permute.xlu0 %1228 }
 0x239   :  { %6693 = vst [vmem:[#allocation282_spill] sm:$0xff] %v4153_v36  ;;  %6694 = vst [vmem:[#allocation283_spill] sm:$0xff] %v4155_v33 }
 0x23a   :  { %1410 = vrot.lane.b32.xlu1 %v3756_v25, %s2545_s15  ;;  %1408 = vrot.lane.b32.xlu0 %v3761_v61, %s2545_s15 }
 0x23c   :  { %v4161_v34 = vpop.permute.xlu1 %1234  ;;  %v4163_v35 = vpop.permute.xlu0 %1232 }
 0x23d   :  { %6695 = vst [vmem:[#allocation284_spill] sm:$0xff] %v4161_v34  ;;  %6696 = vst [vmem:[#allocation285_spill] sm:$0xff] %v4163_v35 }
 0x23e   :  { %1414 = vrot.lane.b32.xlu1 %v3774_v23, %s2545_s15  ;;  %1412 = vrot.lane.b32.xlu0 %v3779_v62, %s2545_s15 }
 0x240   :  { %v4169_v37 = vpop.permute.xlu1 %1238  ;;  %v4171_v36 = vpop.permute.xlu0 %1236 }
 0x241   :  { %6697 = vst [vmem:[#allocation286_spill] sm:$0xff] %v4169_v37  ;;  %6698 = vst [vmem:[#allocation287_spill] sm:$0xff] %v4171_v36 }
 0x242   :  { %1482 = vrot.lane.b32.xlu1 %v3791_v60, %s2545_s15  ;;  %1480 = vrot.lane.b32.xlu0 %v3795_v20, %s2545_s15 }
 0x244   :  { %v4177_v33 = vpop.permute.xlu1 %1242  ;;  %v4179_v34 = vpop.permute.xlu0 %1240 }
 0x245   :  { %6699 = vst [vmem:[#allocation288_spill] sm:$0xff] %v4177_v33  ;;  %6700 = vst [vmem:[#allocation289_spill] sm:$0xff] %v4179_v34 }
 0x246   :  { %1486 = vrot.lane.b32.xlu1 %v3807_v63, %s2545_s15  ;;  %1484 = vrot.lane.b32.xlu0 %v3811_v21, %s2545_s15 }
 0x248   :  { %v4185_v35 = vpop.permute.xlu1 %1246  ;;  %v4187_v37 = vpop.permute.xlu0 %1244 }
 0x249   :  { %6701 = vst [vmem:[#allocation290_spill] sm:$0xff] %v4185_v35  ;;  %6702 = vst [vmem:[#allocation291_spill] sm:$0xff] %v4187_v37 }
 0x24a   :  { %1490 = vrot.lane.b32.xlu1 %v3823_v57, %s2545_s15  ;;  %1488 = vrot.lane.b32.xlu0 %v3827_v54, %s2545_s15 }
 0x24c   :  { %v4193_v36 = vpop.permute.xlu1 %1250  ;;  %v4195_v33 = vpop.permute.xlu0 %1248 }
 0x24d   :  { %6703 = vst [vmem:[#allocation292_spill] sm:$0xff] %v4193_v36  ;;  %6704 = vst [vmem:[#allocation293_spill] sm:$0xff] %v4195_v33 }
 0x24e   :  { %1494 = vrot.lane.b32.xlu1 %v3839_v58, %s2545_s15  ;;  %1492 = vrot.lane.b32.xlu0 %v3843_v52, %s2545_s15 }
 0x250   :  { %v4201_v34 = vpop.permute.xlu1 %1254  ;;  %v4203_v35 = vpop.permute.xlu0 %1252 }
 0x251   :  { %6705 = vst [vmem:[#allocation294_spill] sm:$0xff] %v4201_v34  ;;  %6706 = vst [vmem:[#allocation295_spill] sm:$0xff] %v4203_v35 }
 0x252   :  { %1498 = vrot.lane.b32.xlu1 %v3855_v55, %s2545_s15  ;;  %1496 = vrot.lane.b32.xlu0 %v3859_v56, %s2545_s15 }
 0x254   :  { %v4209_v37 = vpop.permute.xlu1 %1258  ;;  %v4211_v36 = vpop.permute.xlu0 %1256 }
 0x255   :  { %6707 = vst [vmem:[#allocation296_spill] sm:$0xff] %v4209_v37  ;;  %6708 = vst [vmem:[#allocation297_spill] sm:$0xff] %v4211_v36 }
 0x256   :  { %1502 = vrot.lane.b32.xlu1 %v3871_v2, %s2545_s15  ;;  %1500 = vrot.lane.b32.xlu0 %v3875_v0, %s2545_s15 }
 0x258   :  { %v4217_v33 = vpop.permute.xlu1 %1262  ;;  %v4219_v34 = vpop.permute.xlu0 %1260 }
 0x259   :  { %6709 = vst [vmem:[#allocation298_spill] sm:$0xff] %v4217_v33  ;;  %6710 = vst [vmem:[#allocation299_spill] sm:$0xff] %v4219_v34 }
 0x25a   :  { %1506 = vrot.lane.b32.xlu1 %v3887_v50, %s2545_s15  ;;  %1504 = vrot.lane.b32.xlu0 %v3891_v51, %s2545_s15 }
 0x25c   :  { %v4225_v35 = vpop.permute.xlu1 %1266  ;;  %v4227_v37 = vpop.permute.xlu0 %1264 }
 0x25d   :  { %6711 = vst [vmem:[#allocation300_spill] sm:$0xff] %v4225_v35  ;;  %6712 = vst [vmem:[#allocation301_spill] sm:$0xff] %v4227_v37 }
 0x25e   :  { %1510 = vrot.lane.b32.xlu1 %v3903_v48, %s2545_s15  ;;  %1508 = vrot.lane.b32.xlu0 %v3907_v49, %s2545_s15 }
 0x260   :  { %v4233_v36 = vpop.permute.xlu1 %1270  ;;  %v4235_v33 = vpop.permute.xlu0 %1268 }
 0x261   :  { %6713 = vst [vmem:[#allocation302_spill] sm:$0xff] %v4233_v36  ;;  %6714 = vst [vmem:[#allocation303_spill] sm:$0xff] %v4235_v33 }
 0x262   :  { %1514 = vrot.lane.b32.xlu1 %v3919_v46, %s2545_s15  ;;  %1512 = vrot.lane.b32.xlu0 %v3923_v47, %s2545_s15 }
 0x264   :  { %v4241_v34 = vpop.permute.xlu1 %1274  ;;  %v4243_v35 = vpop.permute.xlu0 %1272 }
 0x265   :  { %6715 = vst [vmem:[#allocation304_spill] sm:$0xff] %v4241_v34  ;;  %6716 = vst [vmem:[#allocation305_spill] sm:$0xff] %v4243_v35 }
 0x266   :  { %1518 = vrot.lane.b32.xlu1 %v3935_v44, %s2545_s15  ;;  %1516 = vrot.lane.b32.xlu0 %v3939_v45, %s2545_s15 }
 0x268   :  { %v4249_v37 = vpop.permute.xlu1 %1278  ;;  %v4251_v36 = vpop.permute.xlu0 %1276 }
 0x269   :  { %6717 = vst [vmem:[#allocation306_spill] sm:$0xff] %v4249_v37  ;;  %6718 = vst [vmem:[#allocation307_spill] sm:$0xff] %v4251_v36 }
 0x26a   :  { %1522 = vrot.lane.b32.xlu1 %v3951_v42, %s2545_s15  ;;  %1520 = vrot.lane.b32.xlu0 %v3955_v43, %s2545_s15 }
 0x26c   :  { %v4257_v33 = vpop.permute.xlu1 %1282  ;;  %v4259_v34 = vpop.permute.xlu0 %1280 }
 0x26d   :  { %6719 = vst [vmem:[#allocation308_spill] sm:$0xff] %v4257_v33  ;;  %6720 = vst [vmem:[#allocation309_spill] sm:$0xff] %v4259_v34  ;;  %v6725_v34 = vld [vmem:[#allocation244_spill] sm:$0xff] }
 0x26e   :  { %1526 = vrot.lane.b32.xlu1 %v3967_v40, %s2545_s15  ;;  %1524 = vrot.lane.b32.xlu0 %v3971_v41, %s2545_s15  ;;  %v6726_v40 = vld [vmem:[#allocation245_spill] sm:$0xff] }
 0x270   :  { %v4265_v35 = vpop.permute.xlu1 %1286  ;;  %v4267_v37 = vpop.permute.xlu0 %1284 }
 0x271   :  { %6721 = vst [vmem:[#allocation310_spill] sm:$0xff] %v4265_v35  ;;  %6722 = vst [vmem:[#allocation311_spill] sm:$0xff] %v4267_v37  ;;  %v6729_v37 = vld [vmem:[#allocation248_spill] sm:$0xff] }
 0x272   :  { %1530 = vrot.lane.b32.xlu1 %v3983_v38, %s2545_s15  ;;  %1528 = vrot.lane.b32.xlu0 %v3987_v39, %s2545_s15  ;;  %v6730_v38 = vld [vmem:[#allocation249_spill] sm:$0xff] }
 0x274   :  { %v4273_v36 = vpop.permute.xlu1 %1354  ;;  %v4275_v33 = vpop.permute.xlu0 %1352 }
 0x275   :  { %6723 = vst [vmem:[#allocation312_spill] sm:$0xff] %v4273_v36  ;;  %6724 = vst [vmem:[#allocation313_spill] sm:$0xff] %v4275_v33  ;;  %v6733_v33 = vld [vmem:[#allocation253_spill] sm:$0xff] }
 0x276   :  { %1534 = vrot.lane.b32.xlu1 %v6725_v34, %s2545_s15  ;;  %1532 = vrot.lane.b32.xlu0 %v6726_v40, %s2545_s15 }
 0x278   :  { %v4281_v41 = vpop.permute.xlu1 %1358  ;;  %v4283_v35 = vpop.permute.xlu0 %1356 }
 0x279   :  { %6727 = vst [vmem:[#allocation314_spill] sm:$0xff] %v4281_v41  ;;  %6728 = vst [vmem:[#allocation315_spill] sm:$0xff] %v4283_v35 }
 0x27a   :  { %1538 = vrot.lane.b32.xlu1 %v6729_v37, %s2545_s15  ;;  %1536 = vrot.lane.b32.xlu0 %v6730_v38, %s2545_s15 }
 0x27c   :  { %v4289_v39 = vpop.permute.xlu1 %1362  ;;  %v4291_v36 = vpop.permute.xlu0 %1360 }
 0x27d   :  { %6731 = vst [vmem:[#allocation316_spill] sm:$0xff] %v4289_v39  ;;  %6732 = vst [vmem:[#allocation317_spill] sm:$0xff] %v4291_v36 }
 0x27e   :  { %1542 = vrot.lane.b32.xlu1 %v4031_v32, %s2545_s15  ;;  %1540 = vrot.lane.b32.xlu0 %v6733_v33, %s2545_s15 }
 0x280   :  { %v4297_v40 = vpop.permute.xlu1 %1366  ;;  %v4299_v41 = vpop.permute.xlu0 %1364 }
 0x281   :  { %6734 = vst [vmem:[#allocation318_spill] sm:$0xff] %v4297_v40  ;;  %6735 = vst [vmem:[#allocation319_spill] sm:$0xff] %v4299_v41 }
 0x282   :  { %1610 = vrot.lane.b32.xlu1 %v3504_v53, %s2546_s16  ;;  %1608 = vrot.lane.b32.xlu0 %v3509_v59, %s2546_s16 }
 0x284   :  { %v4305_v35 = vpop.permute.xlu1 %1370  ;;  %v4307_v39 = vpop.permute.xlu0 %1368 }
 0x285   :  { %6736 = vst [vmem:[#allocation320_spill] sm:$0xff] %v4305_v35  ;;  %6737 = vst [vmem:[#allocation321_spill] sm:$0xff] %v4307_v39  ;;  %v6788_v39 = vld [vmem:[#allocation240_spill] sm:$0xff]  ;;  %v6789_v35 = vld [vmem:[#allocation241_spill] sm:$0xff] }
 0x286   :  { %1614 = vrot.lane.b32.xlu1 %v3522_v1, %s2546_s16  ;;  %1612 = vrot.lane.b32.xlu0 %v3527_v5, %s2546_s16 }
 0x288   :  { %v4313_v36 = vpop.permute.xlu1 %1374  ;;  %v4315_v40 = vpop.permute.xlu0 %1372 }
 0x289   :  { %6738 = vst [vmem:[#allocation322_spill] sm:$0xff] %v4313_v36  ;;  %6739 = vst [vmem:[#allocation323_spill] sm:$0xff] %v4315_v40 }
 0x28a   :  { %1618 = vrot.lane.b32.xlu1 %v3540_v3, %s2546_s16  ;;  %1616 = vrot.lane.b32.xlu0 %v3545_v7, %s2546_s16 }
 0x28c   :  { %v4321_v53 = vpop.permute.xlu1 %1378  ;;  %v4323_v59 = vpop.permute.xlu0 %1376 }
 0x28d   :  { %6740 = vst [vmem:[#allocation324_spill] sm:$0xff] %v4321_v53  ;;  %6741 = vst [vmem:[#allocation325_spill] sm:$0xff] %v4323_v59  ;;  %v6784_v59 = vld [vmem:[#allocation236_spill] sm:$0xff]  ;;  %v6785_v53 = vld [vmem:[#allocation237_spill] sm:$0xff] }
 0x28e   :  { %1622 = vrot.lane.b32.xlu1 %v3558_v4, %s2546_s16  ;;  %1620 = vrot.lane.b32.xlu0 %v3563_v9, %s2546_s16 }
 0x290   :  { %v4329_v1 = vpop.permute.xlu1 %1382  ;;  %v4331_v5 = vpop.permute.xlu0 %1380 }
 0x291   :  { %6742 = vst [vmem:[#allocation326_spill] sm:$0xff] %v4329_v1  ;;  %6743 = vst [vmem:[#allocation327_spill] sm:$0xff] %v4331_v5 }
 0x292   :  { %1626 = vrot.lane.b32.xlu1 %v3576_v6, %s2546_s16  ;;  %1624 = vrot.lane.b32.xlu0 %v3581_v11, %s2546_s16 }
 0x294   :  { %v4337_v3 = vpop.permute.xlu1 %1386  ;;  %v4339_v7 = vpop.permute.xlu0 %1384 }
 0x295   :  { %6744 = vst [vmem:[#allocation328_spill] sm:$0xff] %v4337_v3  ;;  %6745 = vst [vmem:[#allocation329_spill] sm:$0xff] %v4339_v7 }
 0x296   :  { %1630 = vrot.lane.b32.xlu1 %v3594_v8, %s2546_s16  ;;  %1628 = vrot.lane.b32.xlu0 %v3599_v13, %s2546_s16 }
 0x298   :  { %v4345_v4 = vpop.permute.xlu1 %1390  ;;  %v4347_v9 = vpop.permute.xlu0 %1388 }
 0x299   :  { %6746 = vst [vmem:[#allocation330_spill] sm:$0xff] %v4345_v4  ;;  %6747 = vst [vmem:[#allocation331_spill] sm:$0xff] %v4347_v9 }
 0x29a   :  { %1634 = vrot.lane.b32.xlu1 %v3612_v10, %s2546_s16  ;;  %1632 = vrot.lane.b32.xlu0 %v3617_v15, %s2546_s16 }
 0x29c   :  { %v4353_v6 = vpop.permute.xlu1 %1394  ;;  %v4355_v11 = vpop.permute.xlu0 %1392 }
 0x29d   :  { %6748 = vst [vmem:[#allocation332_spill] sm:$0xff] %v4353_v6  ;;  %6749 = vst [vmem:[#allocation333_spill] sm:$0xff] %v4355_v11 }
 0x29e   :  { %1638 = vrot.lane.b32.xlu1 %v3630_v12, %s2546_s16  ;;  %1636 = vrot.lane.b32.xlu0 %v3635_v17, %s2546_s16 }
 0x2a0   :  { %v4361_v8 = vpop.permute.xlu1 %1398  ;;  %v4363_v13 = vpop.permute.xlu0 %1396 }
 0x2a1   :  { %6750 = vst [vmem:[#allocation334_spill] sm:$0xff] %v4361_v8  ;;  %6751 = vst [vmem:[#allocation335_spill] sm:$0xff] %v4363_v13 }
 0x2a2   :  { %1642 = vrot.lane.b32.xlu1 %v3648_v14, %s2546_s16  ;;  %1640 = vrot.lane.b32.xlu0 %v3653_v19, %s2546_s16 }
 0x2a4   :  { %v4369_v10 = vpop.permute.xlu1 %1402  ;;  %v4371_v15 = vpop.permute.xlu0 %1400 }
 0x2a5   :  { %6752 = vst [vmem:[#allocation336_spill] sm:$0xff] %v4369_v10  ;;  %6753 = vst [vmem:[#allocation337_spill] sm:$0xff] %v4371_v15 }
 0x2a6   :  { %1646 = vrot.lane.b32.xlu1 %v3666_v16, %s2546_s16  ;;  %1644 = vrot.lane.b32.xlu0 %v3671_v30, %s2546_s16 }
 0x2a8   :  { %v4377_v12 = vpop.permute.xlu1 %1406  ;;  %v4379_v17 = vpop.permute.xlu0 %1404 }
 0x2a9   :  { %6754 = vst [vmem:[#allocation338_spill] sm:$0xff] %v4377_v12  ;;  %6755 = vst [vmem:[#allocation339_spill] sm:$0xff] %v4379_v17 }
 0x2aa   :  { %1650 = vrot.lane.b32.xlu1 %v3684_v18, %s2546_s16  ;;  %1648 = vrot.lane.b32.xlu0 %v3689_v28, %s2546_s16 }
 0x2ac   :  { %v4385_v14 = vpop.permute.xlu1 %1410  ;;  %v4387_v19 = vpop.permute.xlu0 %1408 }
 0x2ad   :  { %6756 = vst [vmem:[#allocation340_spill] sm:$0xff] %v4385_v14  ;;  %6757 = vst [vmem:[#allocation341_spill] sm:$0xff] %v4387_v19 }
 0x2ae   :  { %1654 = vrot.lane.b32.xlu1 %v3702_v31, %s2546_s16  ;;  %1652 = vrot.lane.b32.xlu0 %v3707_v26, %s2546_s16 }
 0x2b0   :  { %v4393_v16 = vpop.permute.xlu1 %1414  ;;  %v4395_v30 = vpop.permute.xlu0 %1412 }
 0x2b1   :  { %6758 = vst [vmem:[#allocation342_spill] sm:$0xff] %v4393_v16  ;;  %6759 = vst [vmem:[#allocation343_spill] sm:$0xff] %v4395_v30 }
 0x2b2   :  { %1658 = vrot.lane.b32.xlu1 %v3720_v29, %s2546_s16  ;;  %1656 = vrot.lane.b32.xlu0 %v3725_v24, %s2546_s16 }
 0x2b4   :  { %v4401_v18 = vpop.permute.xlu1 %1482  ;;  %v4403_v28 = vpop.permute.xlu0 %1480 }
 0x2b6   :  { %1662 = vrot.lane.b32.xlu1 %v3738_v27, %s2546_s16  ;;  %1660 = vrot.lane.b32.xlu0 %v3743_v22, %s2546_s16 }
 0x2b8   :  { %v4409_v26 = vpop.permute.xlu1 %1486  ;;  %v4411_v31 = vpop.permute.xlu0 %1484 }
 0x2ba   :  { %1666 = vrot.lane.b32.xlu1 %v3756_v25, %s2546_s16  ;;  %1664 = vrot.lane.b32.xlu0 %v3761_v61, %s2546_s16 }
 0x2bc   :  { %v4417_v24 = vpop.permute.xlu1 %1490  ;;  %v4419_v29 = vpop.permute.xlu0 %1488 }
 0x2be   :  { %1670 = vrot.lane.b32.xlu1 %v3774_v23, %s2546_s16  ;;  %1668 = vrot.lane.b32.xlu0 %v3779_v62, %s2546_s16 }
 0x2c0   :  { %v4425_v22 = vpop.permute.xlu1 %1494  ;;  %v4427_v27 = vpop.permute.xlu0 %1492 }
 0x2c1   :  { %6760 = vst [vmem:[#allocation344_spill] sm:$0xff] %v4425_v22  ;;  %6761 = vst [vmem:[#allocation345_spill] sm:$0xff] %v4427_v27 }
 0x2c2   :  { %1738 = vrot.lane.b32.xlu1 %v3791_v60, %s2546_s16  ;;  %1736 = vrot.lane.b32.xlu0 %v3795_v20, %s2546_s16 }
 0x2c4   :  { %v4433_v61 = vpop.permute.xlu1 %1498  ;;  %v4435_v25 = vpop.permute.xlu0 %1496 }
 0x2c5   :  { %6762 = vst [vmem:[#allocation346_spill] sm:$0xff] %v4433_v61  ;;  %6763 = vst [vmem:[#allocation347_spill] sm:$0xff] %v4435_v25 }
 0x2c6   :  { %1742 = vrot.lane.b32.xlu1 %v3807_v63, %s2546_s16  ;;  %1740 = vrot.lane.b32.xlu0 %v3811_v21, %s2546_s16 }
 0x2c8   :  { %v4441_v62 = vpop.permute.xlu1 %1502  ;;  %v4443_v23 = vpop.permute.xlu0 %1500 }
 0x2c9   :  { %6764 = vst [vmem:[#allocation348_spill] sm:$0xff] %v4441_v62  ;;  %6765 = vst [vmem:[#allocation349_spill] sm:$0xff] %v4443_v23 }
 0x2ca   :  { %1746 = vrot.lane.b32.xlu1 %v3823_v57, %s2546_s16  ;;  %1744 = vrot.lane.b32.xlu0 %v3827_v54, %s2546_s16 }
 0x2cc   :  { %v4449_v30 = vpop.permute.xlu1 %1506  ;;  %v4451_v16 = vpop.permute.xlu0 %1504 }
 0x2cd   :  { %6766 = vst [vmem:[#allocation350_spill] sm:$0xff] %v4449_v30  ;;  %6767 = vst [vmem:[#allocation351_spill] sm:$0xff] %v4451_v16  ;;  %v6842_v16 = vld [vmem:[#allocation11_spill] sm:$0xff] }
 0x2ce   :  { %1750 = vrot.lane.b32.xlu1 %v3839_v58, %s2546_s16  ;;  %1748 = vrot.lane.b32.xlu0 %v3843_v52, %s2546_s16 }
 0x2d0   :  { %v4457_v19 = vpop.permute.xlu1 %1510  ;;  %v4459_v14 = vpop.permute.xlu0 %1508 }
 0x2d1   :  { %6768 = vst [vmem:[#allocation352_spill] sm:$0xff] %v4457_v19  ;;  %6769 = vst [vmem:[#allocation353_spill] sm:$0xff] %v4459_v14  ;;  %v6834_v14 = vld [vmem:[#allocation7_spill] sm:$0xff] }
 0x2d2   :  { %1754 = vrot.lane.b32.xlu1 %v3855_v55, %s2546_s16  ;;  %1752 = vrot.lane.b32.xlu0 %v3859_v56, %s2546_s16  ;;  %v6835_v19 = vld [vmem:[#allocation71_spill] sm:$0xff] }
 0x2d4   :  { %v4465_v17 = vpop.permute.xlu1 %1514  ;;  %v4467_v12 = vpop.permute.xlu0 %1512 }
 0x2d5   :  { %6770 = vst [vmem:[#allocation354_spill] sm:$0xff] %v4465_v17  ;;  %6771 = vst [vmem:[#allocation355_spill] sm:$0xff] %v4467_v12  ;;  %v6830_v12 = vld [vmem:[#allocation5_spill] sm:$0xff] }
 0x2d6   :  { %1758 = vrot.lane.b32.xlu1 %v3871_v2, %s2546_s16  ;;  %1756 = vrot.lane.b32.xlu0 %v3875_v0, %s2546_s16  ;;  %v6884_v0 = vld [vmem:[#allocation92_spill] sm:$0xff]  ;;  %v6889_v2 = vld [vmem:[#allocation93_spill] sm:$0xff] }
 0x2d8   :  { %v4473_v15 = vpop.permute.xlu1 %1518  ;;  %v4475_v10 = vpop.permute.xlu0 %1516 }
 0x2d9   :  { %6772 = vst [vmem:[#allocation356_spill] sm:$0xff] %v4473_v15  ;;  %6773 = vst [vmem:[#allocation357_spill] sm:$0xff] %v4475_v10  ;;  %v6828_v15 = vld [vmem:[#allocation4_spill] sm:$0xff] }
 0x2da   :  { %1762 = vrot.lane.b32.xlu1 %v3887_v50, %s2546_s16  ;;  %1760 = vrot.lane.b32.xlu0 %v3891_v51, %s2546_s16  ;;  %v6869_v51 = vld [vmem:[#allocation86_spill] sm:$0xff] }
 0x2dc   :  { %v4481_v13 = vpop.permute.xlu1 %1522  ;;  %v4483_v8 = vpop.permute.xlu0 %1520 }
 0x2dd   :  { %6774 = vst [vmem:[#allocation358_spill] sm:$0xff] %v4481_v13  ;;  %6775 = vst [vmem:[#allocation359_spill] sm:$0xff] %v4483_v8  ;;  %v4709_v13 = vld [vmem:[%s6306_s0 + $0x190] sm:$0xff] }
 0x2de   :  { %1766 = vrot.lane.b32.xlu1 %v3903_v48, %s2546_s16  ;;  %1764 = vrot.lane.b32.xlu0 %v3907_v49, %s2546_s16  ;;  %6825 = vst [vmem:[#allocation404_spill] sm:$0xff] %v4709_v13  ;;  %v6846_v49 = vld [vmem:[#allocation13_spill] sm:$0xff] }
 0x2e0   :  { %v4489_v11 = vpop.permute.xlu1 %1526  ;;  %v4491_v6 = vpop.permute.xlu0 %1524 }
 0x2e1   :  { %6776 = vst [vmem:[#allocation360_spill] sm:$0xff] %v4489_v11  ;;  %6777 = vst [vmem:[#allocation361_spill] sm:$0xff] %v4491_v6  ;;  %v4673_v11 = vld [vmem:[%s6306_s0 + $0x130] sm:$0xff] }
 0x2e2   :  { %1770 = vrot.lane.b32.xlu1 %v3919_v46, %s2546_s16  ;;  %1768 = vrot.lane.b32.xlu0 %v3923_v47, %s2546_s16  ;;  %6817 = vst [vmem:[#allocation396_spill] sm:$0xff] %v4673_v11  ;;  %v6838_v47 = vld [vmem:[#allocation9_spill] sm:$0xff]  ;;  %v6840_v46 = vld [vmem:[#allocation10_spill] sm:$0xff] }
 0x2e4   :  { %v4497_v9 = vpop.permute.xlu1 %1530  ;;  %v4499_v4 = vpop.permute.xlu0 %1528 }
 0x2e5   :  { %6778 = vst [vmem:[#allocation362_spill] sm:$0xff] %v4497_v9  ;;  %6779 = vst [vmem:[#allocation363_spill] sm:$0xff] %v4499_v4  ;;  %v4637_v9 = vld [vmem:[%s6306_s0 + $0xd0] sm:$0xff] }
 0x2e6   :  { %1774 = vrot.lane.b32.xlu1 %v3935_v44, %s2546_s16  ;;  %1772 = vrot.lane.b32.xlu0 %v3939_v45, %s2546_s16  ;;  %6809 = vst [vmem:[#allocation388_spill] sm:$0xff] %v4637_v9  ;;  %v6833_v45 = vld [vmem:[#allocation70_spill] sm:$0xff] }
 0x2e8   :  { %v4505_v7 = vpop.permute.xlu1 %1534  ;;  %v4507_v3 = vpop.permute.xlu0 %1532 }
 0x2e9   :  { %6780 = vst [vmem:[#allocation364_spill] sm:$0xff] %v4505_v7  ;;  %6781 = vst [vmem:[#allocation365_spill] sm:$0xff] %v4507_v3  ;;  %v4601_v7 = vld [vmem:[%s6306_s0 + $0x70] sm:$0xff] }
 0x2ea   :  { %1778 = vrot.lane.b32.xlu1 %v3951_v42, %s2546_s16  ;;  %1776 = vrot.lane.b32.xlu0 %v3955_v43, %s2546_s16  ;;  %v6829_v43 = vld [vmem:[#allocation68_spill] sm:$0xff] }
 0x2eb   :  { %v360_v42 = vadd.f32 %v6829_v43, %v6828_v15  ;;  %v6839_v43 = vld [vmem:[#allocation73_spill] sm:$0xff] }
 0x2ec   :  { %v4513_v5 = vpop.permute.xlu1 %1538  ;;  %v4515_v1 = vpop.permute.xlu0 %1536  ;;  %v367_v15 = vadd.f32 %v6839_v43, %v6838_v47  ;;  %v6852_v47 = vld [vmem:[#allocation15_spill] sm:$0xff] }
 0x2ed   :  { %6782 = vst [vmem:[#allocation366_spill] sm:$0xff] %v4513_v5  ;;  %6783 = vst [vmem:[#allocation367_spill] sm:$0xff] %v4515_v1  ;;  %v6792_v1 = vld [vmem:[#allocation245_spill] sm:$0xff]  ;;  %v6853_v43 = vld [vmem:[#allocation79_spill] sm:$0xff] }
 0x2ee   :  { %1782 = vrot.lane.b32.xlu1 %v6784_v59, %s2546_s16  ;;  %1780 = vrot.lane.b32.xlu0 %v6785_v53, %s2546_s16  ;;  %v6826_v53 = vld [vmem:[#allocation3_spill] sm:$0xff]  ;;  %v373_v23 = vadd.f32 %v6853_v43, %v6852_v47 }
 0x2ef   :  { %v6827_v59 = vld [vmem:[#allocation67_spill] sm:$0xff] }
 0x2f0   :  { %v4521_v40 = vpop.permute.xlu1 %1542  ;;  %v4523_v36 = vpop.permute.xlu0 %1540  ;;  %v361_v10 = vadd.f32 %v6827_v59, %v6826_v53  ;;  %v6837_v53 = vld [vmem:[#allocation72_spill] sm:$0xff]  ;;  %v6863_v47 = vld [vmem:[#allocation83_spill] sm:$0xff] }
 0x2f1   :  { %6786 = vst [vmem:[#allocation368_spill] sm:$0xff] %v4521_v40  ;;  %6787 = vst [vmem:[#allocation369_spill] sm:$0xff] %v4523_v36 }
 0x2f2   :  { %1786 = vrot.lane.b32.xlu1 %v6788_v39, %s2546_s16  ;;  %1784 = vrot.lane.b32.xlu0 %v6789_v35, %s2546_s16  ;;  %v4691_v39 = vld [vmem:[%s6306_s0 + $0x160] sm:$0xff] }
 0x2f3   :  { %6821 = vst [vmem:[#allocation400_spill] sm:$0xff] %v4691_v39 }
 0x2f4   :  { %v4529_v41 = vpop.permute.xlu1 %1610  ;;  %v4531_v5 = vpop.permute.xlu0 %1608 }
 0x2f5   :  { %6790 = vst [vmem:[#allocation370_spill] sm:$0xff] %v4529_v41  ;;  %6791 = vst [vmem:[#allocation371_spill] sm:$0xff] %v4531_v5 }
 0x2f6   :  { %1790 = vrot.lane.b32.xlu1 %v6725_v34, %s2546_s16  ;;  %1788 = vrot.lane.b32.xlu0 %v6792_v1, %s2546_s16  ;;  %v4655_v34 = vld [vmem:[%s6306_s0 + $0x100] sm:$0xff] }
 0x2f7   :  { %6813 = vst [vmem:[#allocation392_spill] sm:$0xff] %v4655_v34 }
 0x2f8   :  { %v4537_v3 = vpop.permute.xlu1 %1614  ;;  %v4539_v40 = vpop.permute.xlu0 %1612 }
 0x2f9   :  { %6793 = vst [vmem:[#allocation372_spill] sm:$0xff] %v4537_v3  ;;  %6794 = vst [vmem:[#allocation373_spill] sm:$0xff] %v4539_v40  ;;  %v4560_v40 = vld [vmem:[%s6306_s0 + $0x28] sm:$0xff] }
 0x2fa   :  { %1794 = vrot.lane.b32.xlu1 %v6729_v37, %s2546_s16  ;;  %1792 = vrot.lane.b32.xlu0 %v6730_v38, %s2546_s16  ;;  %v4619_v37 = vld [vmem:[%s6306_s0 + $0xa0] sm:$0xff] }
 0x2fb   :  { %6805 = vst [vmem:[#allocation384_spill] sm:$0xff] %v4619_v37 }
 0x2fc   :  { %v4545_v36 = vpop.permute.xlu1 %1618  ;;  %v4547_v41 = vpop.permute.xlu0 %1616 }
 0x2fd   :  { %6795 = vst [vmem:[#allocation374_spill] sm:$0xff] %v4545_v36  ;;  %6796 = vst [vmem:[#allocation375_spill] sm:$0xff] %v4547_v41  ;;  %v4565_v36 = vld [vmem:[%s6306_s0 + $0x10] sm:$0xff] }
 0x2fe   :  { %1798 = vrot.lane.b32.xlu1 %v4031_v32, %s2546_s16  ;;  %1796 = vrot.lane.b32.xlu0 %v6733_v33, %s2546_s16  ;;  %v4583_v33 = vld [vmem:[%s6306_s0 + $0x40] sm:$0xff] }
 0x300   :  { %v4553_v5 = vpop.permute.xlu1 %1622  ;;  %v4555_v3 = vpop.permute.xlu0 %1620 }
 0x301   :  { %6797 = vst [vmem:[#allocation376_spill] sm:$0xff] %v4553_v5  ;;  %6798 = vst [vmem:[#allocation377_spill] sm:$0xff] %v4555_v3  ;;  %v4578_v3 = vld [vmem:[%s6306_s0 + $0x58] sm:$0xff] }
 0x302   :  { %2026 = vrot.lane.b32.xlu1 %v4560_v40, %s2544_s10  ;;  %2024 = vrot.lane.b32.xlu0 %v4565_v36, %s2544_s10 }
 0x304   :  { %v4571_v41 = vpop.permute.xlu1 %1626  ;;  %v4573_v5 = vpop.permute.xlu0 %1624 }
 0x305   :  { %6799 = vst [vmem:[#allocation378_spill] sm:$0xff] %v4571_v41  ;;  %6800 = vst [vmem:[#allocation379_spill] sm:$0xff] %v4573_v5  ;;  %v4596_v5 = vld [vmem:[%s6306_s0 + $0x88] sm:$0xff] }
 0x306   :  { %2030 = vrot.lane.b32.xlu1 %v4578_v3, %s2544_s10  ;;  %2028 = vrot.lane.b32.xlu0 %v4583_v33, %s2544_s10 }
 0x308   :  { %v4589_v32 = vpop.permute.xlu1 %1630  ;;  %v4591_v41 = vpop.permute.xlu0 %1628 }
 0x309   :  { %6801 = vst [vmem:[#allocation380_spill] sm:$0xff] %v4589_v32  ;;  %6802 = vst [vmem:[#allocation381_spill] sm:$0xff] %v4591_v41  ;;  %v4614_v41 = vld [vmem:[%s6306_s0 + $0xb8] sm:$0xff] }
 0x30a   :  { %2034 = vrot.lane.b32.xlu1 %v4596_v5, %s2544_s10  ;;  %2032 = vrot.lane.b32.xlu0 %v4601_v7, %s2544_s10 }
 0x30c   :  { %v4607_v38 = vpop.permute.xlu1 %1634  ;;  %v4609_v32 = vpop.permute.xlu0 %1632 }
 0x30d   :  { %6803 = vst [vmem:[#allocation382_spill] sm:$0xff] %v4607_v38  ;;  %6804 = vst [vmem:[#allocation383_spill] sm:$0xff] %v4609_v32  ;;  %v4632_v32 = vld [vmem:[%s6306_s0 + $0xe8] sm:$0xff] }
 0x30e   :  { %2038 = vrot.lane.b32.xlu1 %v4614_v41, %s2544_s10  ;;  %2036 = vrot.lane.b32.xlu0 %v4619_v37, %s2544_s10  ;;  %6808 = vst [vmem:[#allocation387_spill] sm:$0xff] %v4632_v32 }
 0x310   :  { %v4625_v4 = vpop.permute.xlu1 %1638  ;;  %v4627_v38 = vpop.permute.xlu0 %1636 }
 0x311   :  { %6806 = vst [vmem:[#allocation385_spill] sm:$0xff] %v4625_v4  ;;  %6807 = vst [vmem:[#allocation386_spill] sm:$0xff] %v4627_v38  ;;  %v4650_v38 = vld [vmem:[%s6306_s0 + $0x118] sm:$0xff] }
 0x312   :  { %2042 = vrot.lane.b32.xlu1 %v4632_v32, %s2544_s10  ;;  %2040 = vrot.lane.b32.xlu0 %v4637_v9, %s2544_s10  ;;  %6812 = vst [vmem:[#allocation391_spill] sm:$0xff] %v4650_v38  ;;  %v6878_v9 = vld [vmem:[#allocation90_spill] sm:$0xff] }
 0x314   :  { %v4643_v1 = vpop.permute.xlu1 %1642  ;;  %v4645_v4 = vpop.permute.xlu0 %1640 }
 0x315   :  { %6810 = vst [vmem:[#allocation389_spill] sm:$0xff] %v4643_v1  ;;  %6811 = vst [vmem:[#allocation390_spill] sm:$0xff] %v4645_v4  ;;  %v4668_v4 = vld [vmem:[%s6306_s0 + $0x148] sm:$0xff] }
 0x316   :  { %2046 = vrot.lane.b32.xlu1 %v4650_v38, %s2544_s10  ;;  %2044 = vrot.lane.b32.xlu0 %v4655_v34, %s2544_s10  ;;  %6816 = vst [vmem:[#allocation395_spill] sm:$0xff] %v4668_v4  ;;  %v6868_v38 = vld [vmem:[#allocation22_spill] sm:$0xff] }
 0x317   :  { %v4773_v50 = vadd.f32 %v6869_v51, %v6868_v38  ;;  %v6883_v51 = vld [vmem:[#allocation28_spill] sm:$0xff] }
 0x318   :  { %v4661_v6 = vpop.permute.xlu1 %1646  ;;  %v4663_v1 = vpop.permute.xlu0 %1644 }
 0x319   :  { %6814 = vst [vmem:[#allocation393_spill] sm:$0xff] %v4661_v6  ;;  %6815 = vst [vmem:[#allocation394_spill] sm:$0xff] %v4663_v1  ;;  %v4686_v1 = vld [vmem:[%s6306_s0 + $0x178] sm:$0xff] }
 0x31a   :  { %2050 = vrot.lane.b32.xlu1 %v4668_v4, %s2544_s10  ;;  %2048 = vrot.lane.b32.xlu0 %v4673_v11, %s2544_s10  ;;  %6820 = vst [vmem:[#allocation399_spill] sm:$0xff] %v4686_v1  ;;  %v6844_v11 = vld [vmem:[#allocation12_spill] sm:$0xff] }
 0x31c   :  { %v4679_v35 = vpop.permute.xlu1 %1650  ;;  %v4681_v6 = vpop.permute.xlu0 %1648 }
 0x31d   :  { %6818 = vst [vmem:[#allocation397_spill] sm:$0xff] %v4679_v35  ;;  %6819 = vst [vmem:[#allocation398_spill] sm:$0xff] %v4681_v6  ;;  %v4704_v6 = vld [vmem:[%s6306_s0 + $0x1a8] sm:$0xff] }
 0x31e   :  { %2054 = vrot.lane.b32.xlu1 %v4686_v1, %s2544_s10  ;;  %2052 = vrot.lane.b32.xlu0 %v4691_v39, %s2544_s10  ;;  %6824 = vst [vmem:[#allocation403_spill] sm:$0xff] %v4704_v6  ;;  %v365_v39 = vadd.f32 %v6835_v19, %v6834_v14  ;;  %v6836_v1 = vld [vmem:[#allocation8_spill] sm:$0xff]  ;;  %v6851_v19 = vld [vmem:[#allocation78_spill] sm:$0xff] }
 0x31f   :  { %v364_v59 = vadd.f32 %v6837_v53, %v6836_v1  ;;  %v6850_v1 = vld [vmem:[#allocation14_spill] sm:$0xff] }
 0x320   :  { %v4697_v8 = vpop.permute.xlu1 %1654  ;;  %v4699_v35 = vpop.permute.xlu0 %1652  ;;  %v370_v53 = vadd.f32 %v6851_v19, %v6850_v1  ;;  %v6862_v19 = vld [vmem:[#allocation19_spill] sm:$0xff] }
 0x321   :  { %6822 = vst [vmem:[#allocation401_spill] sm:$0xff] %v4697_v8  ;;  %6823 = vst [vmem:[#allocation402_spill] sm:$0xff] %v4699_v35  ;;  %v6831_v8 = vld [vmem:[#allocation69_spill] sm:$0xff]  ;;  %v6832_v35 = vld [vmem:[#allocation6_spill] sm:$0xff]  ;;  %v377_v43 = vadd.f32 %v6863_v47, %v6862_v19 }
 0x322   :  { %v363_v17 = vadd.f32 %v6831_v8, %v6830_v12  ;;  %2058 = vrot.lane.b32.xlu1 %v4704_v6, %s2544_s10  ;;  %2056 = vrot.lane.b32.xlu0 %v4709_v13, %s2544_s10  ;;  %v362_v44 = vadd.f32 %v6833_v45, %v6832_v35  ;;  %v6841_v8 = vld [vmem:[#allocation74_spill] sm:$0xff]  ;;  %v6843_v6 = vld [vmem:[#allocation75_spill] sm:$0xff]  ;;  %v6845_v13 = vld [vmem:[#allocation76_spill] sm:$0xff] }
 0x323   :  { %v366_v12 = vadd.f32 %v6841_v8, %v6840_v46  ;;  %v369_v30 = vadd.f32 %v6843_v6, %v6842_v16  ;;  %v368_v4 = vadd.f32 %v6845_v13, %v6844_v11  ;;  %v6847_v35 = vld [vmem:[#allocation77_spill] sm:$0xff]  ;;  %v6854_v46 = vld [vmem:[#allocation16_spill] sm:$0xff]  ;;  %v4757_v11 = vld [vmem:[%s6306_s0 + $0x1c0] sm:$0xff] }
 0x324   :  { %v371_v45 = vadd.f32 %v6847_v35, %v6846_v49  ;;  %v4737_v48 = vpop.permute.xlu1 %1658  ;;  %v4739_v14 = vpop.permute.xlu0 %1656  ;;  %v6855_v8 = vld [vmem:[#allocation80_spill] sm:$0xff]  ;;  %v6856_v6 = vld [vmem:[#allocation17_spill] sm:$0xff]  ;;  %6859 = vst [vmem:[#allocation68_spill] sm:$0xff] %v4757_v11  ;;  %v6860_v13 = vld [vmem:[#allocation18_spill] sm:$0xff] }
 0x325   :  { %6848 = vst [vmem:[#allocation3_spill] sm:$0xff] %v4737_v48  ;;  %6849 = vst [vmem:[#allocation67_spill] sm:$0xff] %v4739_v14  ;;  %v372_v62 = vadd.f32 %v6855_v8, %v6854_v46  ;;  %v6857_v16 = vld [vmem:[#allocation81_spill] sm:$0xff]  ;;  %v6861_v35 = vld [vmem:[#allocation82_spill] sm:$0xff] }
 0x326   :  { %v375_v34 = vadd.f32 %v6857_v16, %v6856_v6  ;;  %v4752_v49 = vld [vmem:[%s6306_s0 + $0x1d8] sm:$0xff]  ;;  %v374_v1 = vadd.f32 %v6861_v35, %v6860_v13  ;;  %v6864_v46 = vld [vmem:[#allocation20_spill] sm:$0xff]  ;;  %2060 = vrot.lane.b32.xlu0 %v4757_v11, %s2544_s10  ;;  %v6870_v13 = vld [vmem:[#allocation23_spill] sm:$0xff] }
 0x327   :  { %6858 = vst [vmem:[#allocation4_spill] sm:$0xff] %v4752_v49  ;;  %v6865_v8 = vld [vmem:[#allocation84_spill] sm:$0xff]  ;;  %2062 = vrot.lane.b32.xlu1 %v4752_v49, %s2544_s10  ;;  %v6866_v6 = vld [vmem:[#allocation21_spill] sm:$0xff]  ;;  %v6871_v35 = vld [vmem:[#allocation87_spill] sm:$0xff] }
 0x328   :  { %v376_v14 = vadd.f32 %v6865_v8, %v6864_v46  ;;  %v6867_v16 = vld [vmem:[#allocation85_spill] sm:$0xff]  ;;  %v4777_v25 = vadd.f32 %v6871_v35, %v6870_v13  ;;  %v6872_v19 = vld [vmem:[#allocation24_spill] sm:$0xff]  ;;  %v6877_v11 = vld [vmem:[#allocation26_spill] sm:$0xff]  ;;  %v4797_v13 = vadd.f32 %v6884_v0, %v6883_v51  ;;  %v4799_v35 = vpop.permute.xlu1 %1662 }
 0x329   :  { %v379_v48 = vadd.f32 %v6867_v16, %v6866_v6  ;;  %v6873_v47 = vld [vmem:[#allocation88_spill] sm:$0xff]  ;;  %v6874_v8 = vld [vmem:[#allocation25_spill] sm:$0xff]  ;;  %v4789_v32 = vadd.f32 %v6878_v9, %v6877_v11  ;;  %v6880_v6 = vld [vmem:[#allocation27_spill] sm:$0xff]  ;;  %6886 = vst [vmem:[#allocation7_spill] sm:$0xff] %v4799_v35 }
 0x32a   :  { %v4781_v46 = vadd.f32 %v6873_v47, %v6872_v19  ;;  %v6875_v49 = vld [vmem:[#allocation89_spill] sm:$0xff]  ;;  %v6881_v16 = vld [vmem:[#allocation91_spill] sm:$0xff]  ;;  %6885 = vst [vmem:[#allocation70_spill] sm:$0xff] %v4797_v13  ;;  %v4801_v19 = vpop.permute.xlu0 %1660  ;;  %v6894_v11 = vld [vmem:[#allocation130_spill] sm:$0xff] }
 0x32b   :  { %v4785_v61 = vadd.f32 %v6875_v49, %v6874_v8  ;;  %6879 = vst [vmem:[#allocation69_spill] sm:$0xff] %v4789_v32  ;;  %v4793_v38 = vadd.f32 %v6881_v16, %v6880_v6  ;;  %6887 = vst [vmem:[#allocation71_spill] sm:$0xff] %v4801_v19  ;;  %v6888_v47 = vld [vmem:[#allocation29_spill] sm:$0xff]  ;;  %v6891_v8 = vld [vmem:[#allocation30_spill] sm:$0xff]  ;;  %v617_v32 = vadd.f32 %v6894_v11, %v361_v10 }
 0x32c   :  { %v4805_v49 = vadd.f32 %v6889_v2, %v6888_v47  ;;  %v6895_v6 = vld [vmem:[#allocation131_spill] sm:$0xff]  ;;  %v4821_v51 = vld [vmem:[%s6306_s0 + $0x1f0] sm:$0xff]  ;;  %v6898_v2 = vld [vmem:[#allocation33_spill] sm:$0xff]  ;;  %v4850_v37 = vpop.permute.xlu1 %1666 }
 0x32d   :  { %6876 = vst [vmem:[#allocation5_spill] sm:$0xff] %v4785_v61  ;;  %6882 = vst [vmem:[#allocation6_spill] sm:$0xff] %v4793_v38  ;;  %v6892_v61 = vld [vmem:[#allocation94_spill] sm:$0xff]  ;;  %v616_v16 = vadd.f32 %v6895_v6, %v360_v42  ;;  %v4816_v0 = vld [vmem:[%s6306_s0 + $0x208] sm:$0xff]  ;;  %2064 = vrot.lane.b32.xlu0 %v4821_v51, %s2544_s10 }
 0x32e   :  { %6890 = vst [vmem:[#allocation8_spill] sm:$0xff] %v4805_v49  ;;  %v4809_v9 = vadd.f32 %v6892_v61, %v6891_v8  ;;  %6896 = vst [vmem:[#allocation9_spill] sm:$0xff] %v4816_v0  ;;  %v6899_v47 = vld [vmem:[#allocation95_spill] sm:$0xff]  ;;  %v6901_v61 = vld [vmem:[#allocation34_spill] sm:$0xff]  ;;  %2066 = vrot.lane.b32.xlu1 %v4816_v0, %s2544_s10 }
 0x32f   :  { %6897 = vst [vmem:[#allocation73_spill] sm:$0xff] %v4821_v51  ;;  %v4825_v19 = vadd.f32 %v6899_v47, %v6898_v2  ;;  %v6902_v8 = vld [vmem:[#allocation96_spill] sm:$0xff]  ;;  %v6904_v10 = vld [vmem:[#allocation37_spill] sm:$0xff]  ;;  %v6907_v6 = vld [vmem:[#allocation38_spill] sm:$0xff]  ;;  %v4852_v51 = vpop.permute.xlu0 %1664 }
 0x330   :  { %6893 = vst [vmem:[#allocation72_spill] sm:$0xff] %v4809_v9  ;;  %v4829_v35 = vadd.f32 %v6902_v8, %v6901_v61  ;;  %v6905_v42 = vld [vmem:[#allocation97_spill] sm:$0xff]  ;;  %v6908_v9 = vld [vmem:[#allocation98_spill] sm:$0xff]  ;;  %v6910_v2 = vld [vmem:[#allocation132_spill] sm:$0xff] }
 0x331   :  { %6900 = vst [vmem:[#allocation10_spill] sm:$0xff] %v4825_v19  ;;  %v4833_v11 = vadd.f32 %v6905_v42, %v6904_v10  ;;  %v4841_v49 = vadd.f32 %v6908_v9, %v6907_v6  ;;  %v619_v47 = vadd.f32 %v6910_v2, %v363_v17  ;;  %v6911_v19 = vld [vmem:[#allocation194_spill] sm:$0xff]  ;;  %v6912_v61 = vld [vmem:[#allocation195_spill] sm:$0xff]  ;;  %v6916_v0 = vld [vmem:[#allocation136_spill] sm:$0xff] }
 0x332   :  { %6903 = vst [vmem:[#allocation74_spill] sm:$0xff] %v4829_v35  ;;  %v873_v13 = vadd.f32 %v6911_v19, %v617_v32  ;;  %v872_v8 = vadd.f32 %v6912_v61, %v616_v16  ;;  %v6913_v35 = vld [vmem:[#allocation133_spill] sm:$0xff]  ;;  %v6914_v10 = vld [vmem:[#allocation134_spill] sm:$0xff]  ;;  %v623_v22 = vadd.f32 %v6916_v0, %v367_v15  ;;  %6917 = vst [vmem:[#allocation12_spill] sm:$0xff] %v4850_v37 }
 0x333   :  { %6906 = vst [vmem:[#allocation11_spill] sm:$0xff] %v4833_v11  ;;  %6909 = vst [vmem:[#allocation75_spill] sm:$0xff] %v4841_v49  ;;  %v618_v38 = vadd.f32 %v6913_v35, %v362_v44  ;;  %v621_v42 = vadd.f32 %v6914_v10, %v365_v39  ;;  %v6915_v11 = vld [vmem:[#allocation135_spill] sm:$0xff]  ;;  %v6919_v9 = vld [vmem:[#allocation137_spill] sm:$0xff] }
 0x334   :  { %v620_v27 = vadd.f32 %v6915_v11, %v364_v59  ;;  %6918 = vst [vmem:[#allocation76_spill] sm:$0xff] %v4852_v51  ;;  %v622_v6 = vadd.f32 %v6919_v9, %v366_v12  ;;  %v6920_v49 = vld [vmem:[#allocation138_spill] sm:$0xff]  ;;  %v6921_v2 = vld [vmem:[#allocation139_spill] sm:$0xff]  ;;  %v6922_v19 = vld [vmem:[#allocation140_spill] sm:$0xff]  ;;  %v1001_v61 = vadd.f32 %v3791_v60, %v873_v13 }
 0x335   :  { %v625_v17 = vadd.f32 %v6920_v49, %v369_v30  ;;  %v624_v32 = vadd.f32 %v6921_v2, %v368_v4  ;;  %v4858_v16 = vadd.f32 %v6922_v19, %v371_v45  ;;  %v4863_v39 = vld [vmem:[%s6306_s0 + $0x238] sm:$0xff]  ;;  %v4868_v44 = vld [vmem:[%s6306_s0 + $0x220] sm:$0xff]  ;;  %v6924_v12 = vld [vmem:[#allocation196_spill] sm:$0xff] }
 0x336   :  { %v6923_v59 = vld [vmem:[#allocation141_spill] sm:$0xff]  ;;  %v875_v30 = vadd.f32 %v6924_v12, %v619_v47  ;;  %2070 = vrot.lane.b32.xlu1 %v4863_v39, %s2544_s10  ;;  %2068 = vrot.lane.b32.xlu0 %v4868_v44, %s2544_s10  ;;  %v6926_v45 = vld [vmem:[#allocation142_spill] sm:$0xff]  ;;  %v6927_v0 = vld [vmem:[#allocation143_spill] sm:$0xff] }
 0x337   :  { %v4871_v15 = vadd.f32 %v6923_v59, %v370_v53  ;;  %v6925_v35 = vld [vmem:[#allocation197_spill] sm:$0xff]  ;;  %v4880_v49 = vadd.f32 %v6926_v45, %v373_v23  ;;  %v4883_v11 = vadd.f32 %v6927_v0, %v372_v62  ;;  %v1000_v53 = vadd.f32 %v3795_v20, %v872_v8  ;;  %v6928_v10 = vld [vmem:[#allocation144_spill] sm:$0xff]  ;;  %v6930_v2 = vld [vmem:[#allocation198_spill] sm:$0xff]  ;;  %v4897_v23 = vpop.permute.xlu0 %1668 }
 0x338   :  { %v874_v4 = vadd.f32 %v6925_v35, %v618_v38  ;;  %v4888_v47 = vadd.f32 %v6928_v10, %v375_v34  ;;  %v6929_v38 = vld [vmem:[#allocation145_spill] sm:$0xff]  ;;  %v877_v19 = vadd.f32 %v6930_v2, %v621_v42  ;;  %v6931_v59 = vld [vmem:[#allocation199_spill] sm:$0xff]  ;;  %v4895_v35 = vpop.permute.xlu1 %1670  ;;  %6933 = vst [vmem:[#allocation77_spill] sm:$0xff] %v4897_v23  ;;  %v6934_v62 = vld [vmem:[#allocation146_spill] sm:$0xff] }
 0x339   :  { %v4891_v9 = vadd.f32 %v6929_v38, %v374_v1  ;;  %v876_v12 = vadd.f32 %v6931_v59, %v620_v27  ;;  %6932 = vst [vmem:[#allocation13_spill] sm:$0xff] %v4895_v35  ;;  %v4900_v45 = vadd.f32 %v6934_v62, %v377_v43  ;;  %v6935_v60 = vld [vmem:[#allocation147_spill] sm:$0xff]  ;;  %v6936_v20 = vld [vmem:[#allocation280_spill] sm:$0xff]  ;;  %v6937_v8 = vld [vmem:[#allocation281_spill] sm:$0xff]  ;;  %v4930_v38 = vmul.f32 %v4560_v40, %v4560_v40 }
 0x33a   :  { %v4903_v13 = vadd.f32 %v6935_v60, %v376_v14  ;;  %v1321_v34 = vadd.f32 %v6936_v20, %v1001_v61  ;;  %v1320_v0 = vadd.f32 %v6937_v8, %v1000_v53  ;;  %v4910_v1 = vld [vmem:[%s6306_s0 + $0x268] sm:$0xff]  ;;  %v4915_v27 = vld [vmem:[%s6306_s0 + $0x250] sm:$0xff]  ;;  %v1003_v14 = vadd.f32 %v3807_v63, %v875_v30  ;;  %v6939_v63 = vld [vmem:[#allocation149_spill] sm:$0xff] }
 0x33b   :  { %v6938_v42 = vld [vmem:[#allocation148_spill] sm:$0xff]  ;;  %v1002_v10 = vadd.f32 %v3811_v21, %v874_v4  ;;  %2074 = vrot.lane.b32.xlu1 %v4910_v1, %s2544_s10  ;;  %2072 = vrot.lane.b32.xlu0 %v4915_v27, %s2544_s10  ;;  %v4938_v21 = vadd.f32 %v6939_v63, %v4773_v50  ;;  %v1005_v2 = vadd.f32 %v3823_v57, %v877_v19  ;;  %v6941_v62 = vld [vmem:[#allocation282_spill] sm:$0xff]  ;;  %v6942_v40 = vld [vmem:[#allocation283_spill] sm:$0xff] }
 0x33c   :  { %v4918_v43 = vadd.f32 %v6938_v42, %v379_v48  ;;  %v1577_v61 = vadd.f32 %v4401_v18, %v1321_v34  ;;  %v1576_v53 = vadd.f32 %v4403_v28, %v1320_v0  ;;  %v4934_v48 = vmul.f32 %v4565_v36, %v4565_v36  ;;  %v6940_v30 = vld [vmem:[#allocation200_spill] sm:$0xff]  ;;  %v1739_v59 = vpop.permute.xlu1 %1738  ;;  %v1737_v28 = vpop.permute.xlu0 %1736  ;;  %v4948_v36 = vld [vmem:[%s6306_s0 + $0x298] sm:$0xff]  ;;  %v4953_v50 = vld [vmem:[%s6306_s0 + $0x280] sm:$0xff] }
 0x33d   :  { %v879_v4 = vadd.f32 %v6940_v30, %v623_v22  ;;  %v1004_v18 = vadd.f32 %v3827_v54, %v876_v12  ;;  %v1323_v60 = vadd.f32 %v6941_v62, %v1003_v14  ;;  %v1322_v20 = vadd.f32 %v6942_v40, %v1002_v10  ;;  %v6943_v57 = vld [vmem:[#allocation201_spill] sm:$0xff]  ;;  %v6944_v42 = vld [vmem:[#allocation150_spill] sm:$0xff]  ;;  %v7009_v51 = vld [vmem:[#allocation399_spill] sm:$0xff] }
 0x33e   :  { %v1833_v34 = vadd.f32 %v1739_v59, %v1577_v61  ;;  %v1832_v8 = vadd.f32 %v1737_v28, %v1576_v53  ;;  %v878_v54 = vadd.f32 %v6943_v57, %v622_v6  ;;  %v4958_v22 = vmul.f32 %v4578_v3, %v4578_v3  ;;  %v6945_v14 = vld [vmem:[#allocation202_spill] sm:$0xff]  ;;  %v6946_v61 = vld [vmem:[#allocation203_spill] sm:$0xff]  ;;  %v6947_v59 = vld [vmem:[#allocation284_spill] sm:$0xff] }
 0x33f   :  { %v4962_v19 = vmul.f32 %v4583_v33, %v4583_v33  ;;  %2078 = vrot.lane.b32.xlu1 %v4948_v36, %s2544_s10  ;;  %2076 = vrot.lane.b32.xlu0 %v4953_v50, %s2544_s10  ;;  %v1579_v12 = vadd.f32 %v4409_v26, %v1323_v60  ;;  %v1578_v0 = vadd.f32 %v4411_v31, %v1322_v20  ;;  %v6948_v28 = vld [vmem:[#allocation285_spill] sm:$0xff]  ;;  %v4988_v20 = vld [vmem:[%s6306_s0 + $0x2c8] sm:$0xff] }
 0x340   :  { %v4971_v6 = vadd.f32 %v4930_v38, %v1833_v34  ;;  %v4974_v3 = vadd.f32 %v4934_v48, %v1832_v8  ;;  %v4978_v33 = vadd.f32 %v6944_v42, %v4777_v25  ;;  %v881_v10 = vadd.f32 %v6945_v14, %v625_v17  ;;  %v1743_v30 = vpop.permute.xlu1 %1742  ;;  %v1741_v26 = vpop.permute.xlu0 %1740  ;;  %v4993_v25 = vld [vmem:[%s6306_s0 + $0x2b0] sm:$0xff]  ;;  %v6952_v42 = vld [vmem:[#allocation287_spill] sm:$0xff] }
 0x341   :  { %v880_v53 = vadd.f32 %v6946_v61, %v624_v32  ;;  %v1007_v63 = vadd.f32 %v3839_v58, %v879_v4  ;;  %v1325_v31 = vadd.f32 %v6947_v59, %v1005_v2  ;;  %v1324_v62 = vadd.f32 %v6948_v28, %v1004_v18  ;;  %v6949_v18 = vld [vmem:[#allocation151_spill] sm:$0xff]  ;;  %v6950_v34 = vld [vmem:[#allocation204_spill] sm:$0xff] }
 0x342   :  { %v1835_v60 = vadd.f32 %v1743_v30, %v1579_v12  ;;  %v1834_v40 = vadd.f32 %v1741_v26, %v1578_v0  ;;  %v1006_v58 = vadd.f32 %v3843_v52, %v878_v54  ;;  %v4998_v17 = vmul.f32 %v4596_v5, %v4596_v5  ;;  %v6955_v26 = vld [vmem:[#allocation344_spill] sm:$0xff]  ;;  %v7023_v37 = vld [vmem:[#allocation403_spill] sm:$0xff] }
 0x343   :  { %v5002_v32 = vmul.f32 %v4601_v7, %v4601_v7  ;;  %2082 = vrot.lane.b32.xlu1 %v4988_v20, %s2544_s10  ;;  %2080 = vrot.lane.b32.xlu0 %v4993_v25, %s2544_s10  ;;  %v1581_v4 = vadd.f32 %v4417_v24, %v1325_v31  ;;  %v1580_v2 = vadd.f32 %v4419_v29, %v1324_v62  ;;  %v6951_v29 = vld [vmem:[#allocation286_spill] sm:$0xff]  ;;  %v6956_v31 = vld [vmem:[#allocation345_spill] sm:$0xff] }
 0x344   :  { %v5011_v52 = vadd.f32 %v4958_v22, %v1835_v60  ;;  %v5014_v5 = vadd.f32 %v4962_v19, %v1834_v40  ;;  %v5018_v7 = vadd.f32 %v6949_v18, %v4781_v46  ;;  %v883_v8 = vadd.f32 %v6950_v34, %v4858_v16  ;;  %v1747_v24 = vpop.permute.xlu1 %1746  ;;  %v1745_v12 = vpop.permute.xlu0 %1744  ;;  %v5029_v46 = vld [vmem:[%s6306_s0 + $0x2f8] sm:$0xff]  ;;  %v5034_v16 = vld [vmem:[%s6306_s0 + $0x2e0] sm:$0xff]  ;;  %v6960_v60 = vld [vmem:[#allocation152_spill] sm:$0xff] }
 0x345   :  { %v1009_v57 = vadd.f32 %v3855_v55, %v881_v10  ;;  %v1008_v54 = vadd.f32 %v3859_v56, %v880_v53  ;;  %v1327_v0 = vadd.f32 %v6951_v29, %v1007_v63  ;;  %v1326_v14 = vadd.f32 %v6952_v42, %v1006_v58  ;;  %v6953_v55 = vld [vmem:[#allocation205_spill] sm:$0xff]  ;;  %v6954_v53 = vld [vmem:[#allocation384_spill] sm:$0xff]  ;;  %v6961_v58 = vld [vmem:[#allocation206_spill] sm:$0xff] }
 0x346   :  { %v1837_v61 = vadd.f32 %v1747_v24, %v1581_v4  ;;  %v1836_v30 = vadd.f32 %v1745_v12, %v1580_v2  ;;  %v882_v56 = vadd.f32 %v6953_v55, %v4871_v15  ;;  %v5040_v10 = vmul.f32 %v4614_v41, %v4614_v41  ;;  %v6959_v62 = vld [vmem:[#allocation5_spill] sm:$0xff]  ;;  %v6962_v2 = vld [vmem:[#allocation207_spill] sm:$0xff]  ;;  %v6963_v34 = vld [vmem:[#allocation212_spill] sm:$0xff] }
 0x347   :  { %v5044_v63 = vmul.f32 %v6954_v53, %v6954_v53  ;;  %2086 = vrot.lane.b32.xlu1 %v5029_v46, %s2544_s10  ;;  %2084 = vrot.lane.b32.xlu0 %v5034_v16, %s2544_s10  ;;  %v1583_v59 = vadd.f32 %v6955_v26, %v1327_v0  ;;  %v1582_v28 = vadd.f32 %v6956_v31, %v1326_v14  ;;  %v6964_v0 = vld [vmem:[#allocation288_spill] sm:$0xff]  ;;  %v6965_v14 = vld [vmem:[#allocation289_spill] sm:$0xff]  ;;  %v6967_v31 = vld [vmem:[#allocation387_spill] sm:$0xff] }
 0x348   :  { %v5053_v15 = vadd.f32 %v4998_v17, %v1837_v61  ;;  %v5056_v41 = vadd.f32 %v5002_v32, %v1836_v30  ;;  %v5060_v40 = vadd.f32 %v6960_v60, %v6959_v62  ;;  %v885_v4 = vadd.f32 %v6961_v58, %v4880_v49  ;;  %v1751_v12 = vpop.permute.xlu1 %1750  ;;  %v1749_v29 = vpop.permute.xlu0 %1748  ;;  %v6966_v53 = vld [vmem:[#allocation213_spill] sm:$0xff]  ;;  %v6968_v49 = vld [vmem:[#allocation388_spill] sm:$0xff] }
 0x349   :  { %v884_v18 = vadd.f32 %v6962_v2, %v4883_v11  ;;  %v1011_v24 = vadd.f32 %v6963_v34, %v883_v8  ;;  %v1329_v42 = vadd.f32 %v6964_v0, %v1009_v57  ;;  %v1328_v61 = vadd.f32 %v6965_v14, %v1008_v54  ;;  %v6969_v11 = vld [vmem:[#allocation346_spill] sm:$0xff]  ;;  %v6970_v57 = vld [vmem:[#allocation347_spill] sm:$0xff]  ;;  %v6974_v58 = vld [vmem:[#allocation153_spill] sm:$0xff] }
 0x34a   :  { %6957 = vst [vmem:[#allocation14_spill] sm:$0xff] %v5053_v15  ;;  %6958 = vst [vmem:[#allocation78_spill] sm:$0xff] %v5056_v41  ;;  %v1839_v30 = vadd.f32 %v1751_v12, %v1583_v59  ;;  %v1838_v55 = vadd.f32 %v1749_v29, %v1582_v28  ;;  %v1010_v26 = vadd.f32 %v6966_v53, %v882_v56  ;;  %v6973_v28 = vld [vmem:[#allocation69_spill] sm:$0xff]  ;;  %v6975_v34 = vld [vmem:[#allocation208_spill] sm:$0xff] }
 0x34b   :  { %v5072_v62 = vmul.f32 %v6967_v31, %v6967_v31  ;;  %v5076_v60 = vmul.f32 %v6968_v49, %v6968_v49  ;;  %2186 = vrot.lane.b32.xlu1 %v4930_v38, %s2544_s10  ;;  %2184 = vrot.lane.b32.xlu0 %v4934_v48, %s2544_s10  ;;  %v1585_v8 = vadd.f32 %v6969_v11, %v1329_v42  ;;  %v6976_v12 = vld [vmem:[#allocation216_spill] sm:$0xff]  ;;  %v6977_v48 = vld [vmem:[#allocation217_spill] sm:$0xff]  ;;  %v7161_v41 = vld [vmem:[#allocation110_spill] sm:$0xff] }
 0x34c   :  { %v1584_v54 = vadd.f32 %v6970_v57, %v1328_v61  ;;  %v5085_v56 = vadd.f32 %v5040_v10, %v1839_v30  ;;  %v5088_v59 = vadd.f32 %v5044_v63, %v1838_v55  ;;  %v5092_v2 = vadd.f32 %v6974_v58, %v6973_v28  ;;  %v1755_v42 = vpop.permute.xlu1 %1754  ;;  %v1753_v14 = vpop.permute.xlu0 %1752  ;;  %v6978_v61 = vld [vmem:[#allocation290_spill] sm:$0xff]  ;;  %v6979_v30 = vld [vmem:[#allocation291_spill] sm:$0xff]  ;;  %v6980_v11 = vld [vmem:[#allocation209_spill] sm:$0xff] }
 0x34d   :  { %v887_v38 = vadd.f32 %v6975_v34, %v4888_v47  ;;  %v1013_v29 = vadd.f32 %v6976_v12, %v885_v4  ;;  %v1012_v0 = vadd.f32 %v6977_v48, %v884_v18  ;;  %v1331_v53 = vadd.f32 %v6978_v61, %v1011_v24  ;;  %v6981_v28 = vld [vmem:[#allocation391_spill] sm:$0xff]  ;;  %v6982_v47 = vld [vmem:[#allocation392_spill] sm:$0xff]  ;;  %v6987_v34 = vld [vmem:[#allocation6_spill] sm:$0xff] }
 0x34e   :  { %6971 = vst [vmem:[#allocation15_spill] sm:$0xff] %v5085_v56  ;;  %6972 = vst [vmem:[#allocation79_spill] sm:$0xff] %v5088_v59  ;;  %v1330_v31 = vadd.f32 %v6979_v30, %v1010_v26  ;;  %v1841_v49 = vadd.f32 %v1755_v42, %v1585_v8  ;;  %v1840_v55 = vadd.f32 %v1753_v14, %v1584_v54  ;;  %v6983_v18 = vld [vmem:[#allocation348_spill] sm:$0xff]  ;;  %v6984_v26 = vld [vmem:[#allocation349_spill] sm:$0xff] }
 0x34f   :  { %v886_v57 = vadd.f32 %v6980_v11, %v4891_v9  ;;  %v5104_v58 = vmul.f32 %v6981_v28, %v6981_v28  ;;  %v5108_v4 = vmul.f32 %v6982_v47, %v6982_v47  ;;  %2190 = vrot.lane.b32.xlu1 %v4958_v22, %s2544_s10  ;;  %2188 = vrot.lane.b32.xlu0 %v4962_v19, %s2544_s10  ;;  %v6988_v12 = vld [vmem:[#allocation154_spill] sm:$0xff]  ;;  %v6990_v14 = vld [vmem:[#allocation211_spill] sm:$0xff]  ;;  %v6991_v61 = vld [vmem:[#allocation220_spill] sm:$0xff] }
 0x350   :  { %v1587_v24 = vadd.f32 %v6983_v18, %v1331_v53  ;;  %v1586_v8 = vadd.f32 %v6984_v26, %v1330_v31  ;;  %v5117_v9 = vadd.f32 %v5072_v62, %v1841_v49  ;;  %v5120_v54 = vadd.f32 %v5076_v60, %v1840_v55  ;;  %v6989_v42 = vld [vmem:[#allocation210_spill] sm:$0xff]  ;;  %v1759_v30 = vpop.permute.xlu1 %1758  ;;  %v1757_v31 = vpop.permute.xlu0 %1756  ;;  %v6992_v11 = vld [vmem:[#allocation292_spill] sm:$0xff]  ;;  %v6993_v28 = vld [vmem:[#allocation293_spill] sm:$0xff] }
 0x351   :  { %v5124_v48 = vadd.f32 %v6988_v12, %v6987_v34  ;;  %v889_v22 = vadd.f32 %v6989_v42, %v4900_v45  ;;  %v888_v19 = vadd.f32 %v6990_v14, %v4903_v13  ;;  %v1015_v53 = vadd.f32 %v6991_v61, %v887_v38  ;;  %v6994_v26 = vld [vmem:[#allocation221_spill] sm:$0xff]  ;;  %v6995_v34 = vld [vmem:[#allocation395_spill] sm:$0xff]  ;;  %v6996_v45 = vld [vmem:[#allocation396_spill] sm:$0xff] }
 0x352   :  { %6985 = vst [vmem:[#allocation16_spill] sm:$0xff] %v5117_v9  ;;  %6986 = vst [vmem:[#allocation80_spill] sm:$0xff] %v5120_v54  ;;  %v1333_v49 = vadd.f32 %v6992_v11, %v1013_v29  ;;  %v1332_v47 = vadd.f32 %v6993_v28, %v1012_v0  ;;  %v1843_v55 = vadd.f32 %v1759_v30, %v1587_v24  ;;  %v6997_v13 = vld [vmem:[#allocation350_spill] sm:$0xff]  ;;  %v6998_v29 = vld [vmem:[#allocation351_spill] sm:$0xff] }
 0x353   :  { %v1842_v18 = vadd.f32 %v1757_v31, %v1586_v8  ;;  %v1014_v23 = vadd.f32 %v6994_v26, %v886_v57  ;;  %v5136_v12 = vmul.f32 %v6995_v34, %v6995_v34  ;;  %v5140_v42 = vmul.f32 %v6996_v45, %v6996_v45  ;;  %2194 = vrot.lane.b32.xlu1 %v4998_v17, %s2544_s10  ;;  %v7001_v8 = vld [vmem:[#allocation70_spill] sm:$0xff]  ;;  %v7002_v14 = vld [vmem:[#allocation155_spill] sm:$0xff]  ;;  %v7004_v17 = vld [vmem:[#allocation224_spill] sm:$0xff] }
 0x354   :  { %2192 = vrot.lane.b32.xlu0 %v5002_v32, %s2544_s10  ;;  %v1589_v38 = vadd.f32 %v6997_v13, %v1333_v49  ;;  %v1588_v0 = vadd.f32 %v6998_v29, %v1332_v47  ;;  %v5149_v57 = vadd.f32 %v5104_v58, %v1843_v55  ;;  %v640_v61 = vadd.f32 %v7002_v14, %v7001_v8  ;;  %v7003_v30 = vld [vmem:[#allocation214_spill] sm:$0xff]  ;;  %v7005_v28 = vld [vmem:[#allocation225_spill] sm:$0xff]  ;;  %v1763_v26 = vpop.permute.xlu1 %1762  ;;  %v1761_v49 = vpop.permute.xlu0 %1760  ;;  %v7007_v45 = vld [vmem:[#allocation295_spill] sm:$0xff] }
 0x355   :  { %v5152_v24 = vadd.f32 %v5108_v4, %v1842_v18  ;;  %v891_v31 = vadd.f32 %v7003_v30, %v4918_v43  ;;  %v1017_v11 = vadd.f32 %v7004_v17, %v889_v22  ;;  %v1016_v32 = vadd.f32 %v7005_v28, %v888_v19  ;;  %v7006_v34 = vld [vmem:[#allocation294_spill] sm:$0xff]  ;;  %v7008_v18 = vld [vmem:[#allocation215_spill] sm:$0xff]  ;;  %v7010_v43 = vld [vmem:[#allocation400_spill] sm:$0xff] }
 0x356   :  { %6999 = vst [vmem:[#allocation17_spill] sm:$0xff] %v5149_v57  ;;  %v1335_v47 = vadd.f32 %v7006_v34, %v1015_v53  ;;  %v1334_v55 = vadd.f32 %v7007_v45, %v1014_v23  ;;  %v1845_v13 = vadd.f32 %v1763_v26, %v1589_v38  ;;  %v1844_v29 = vadd.f32 %v1761_v49, %v1588_v0  ;;  %v7011_v23 = vld [vmem:[#allocation352_spill] sm:$0xff]  ;;  %v7012_v53 = vld [vmem:[#allocation353_spill] sm:$0xff]  ;;  %v7017_v17 = vld [vmem:[#allocation218_spill] sm:$0xff] }
 0x357   :  { %7000 = vst [vmem:[#allocation81_spill] sm:$0xff] %v5152_v24  ;;  %v890_v35 = vadd.f32 %v7008_v18, %v4938_v21  ;;  %v5166_v8 = vmul.f32 %v7009_v51, %v7009_v51  ;;  %v5170_v22 = vmul.f32 %v7010_v43, %v7010_v43  ;;  %2198 = vrot.lane.b32.xlu1 %v5040_v10, %s2544_s10  ;;  %v7015_v0 = vld [vmem:[#allocation8_spill] sm:$0xff]  ;;  %v7018_v10 = vld [vmem:[#allocation219_spill] sm:$0xff]  ;;  %v7149_v54 = vld [vmem:[#allocation101_spill] sm:$0xff] }
 0x358   :  { %2196 = vrot.lane.b32.xlu0 %v5044_v63, %s2544_s10  ;;  %v1591_v19 = vadd.f32 %v7011_v23, %v1335_v47  ;;  %v1590_v38 = vadd.f32 %v7012_v53, %v1334_v55  ;;  %v5179_v21 = vadd.f32 %v5136_v12, %v1845_v13  ;;  %v5182_v51 = vadd.f32 %v5140_v42, %v1844_v29  ;;  %v7016_v14 = vld [vmem:[#allocation156_spill] sm:$0xff]  ;;  %v1767_v34 = vpop.permute.xlu1 %1766  ;;  %v1765_v47 = vpop.permute.xlu0 %1764  ;;  %v7021_v13 = vld [vmem:[#allocation297_spill] sm:$0xff]  ;;  %v7165_v15 = vld [vmem:[#allocation114_spill] sm:$0xff] }
 0x359   :  { %v643_v30 = vadd.f32 %v7016_v14, %v7015_v0  ;;  %v893_v28 = vadd.f32 %v7017_v17, %v4978_v33  ;;  %v892_v26 = vadd.f32 %v7018_v10, %v5018_v7  ;;  %v7019_v63 = vld [vmem:[#allocation228_spill] sm:$0xff]  ;;  %v1336_v18 = vadd.f32 %v7021_v13, %v1016_v32  ;;  %v7022_v23 = vld [vmem:[#allocation229_spill] sm:$0xff]  ;;  %v7025_v7 = vld [vmem:[#allocation354_spill] sm:$0xff] }
 0x35a   :  { %7013 = vst [vmem:[#allocation18_spill] sm:$0xff] %v5179_v21  ;;  %7014 = vst [vmem:[#allocation82_spill] sm:$0xff] %v5182_v51  ;;  %v1019_v49 = vadd.f32 %v7019_v63, %v891_v31  ;;  %v7020_v45 = vld [vmem:[#allocation296_spill] sm:$0xff]  ;;  %v1847_v43 = vadd.f32 %v1767_v34, %v1591_v19  ;;  %v1846_v29 = vadd.f32 %v1765_v47, %v1590_v38  ;;  %v7030_v38 = vld [vmem:[#allocation157_spill] sm:$0xff] }
 0x35b   :  { %v1337_v55 = vadd.f32 %v7020_v45, %v1017_v11  ;;  %v1018_v53 = vadd.f32 %v7022_v23, %v890_v35  ;;  %v5196_v0 = vmul.f32 %v7023_v37, %v7023_v37  ;;  %v7024_v33 = vld [vmem:[#allocation404_spill] sm:$0xff]  ;;  %2202 = vrot.lane.b32.xlu1 %v5072_v62, %s2544_s10  ;;  %v7026_v11 = vld [vmem:[#allocation355_spill] sm:$0xff]  ;;  %v7031_v10 = vld [vmem:[#allocation222_spill] sm:$0xff] }
 0x35c   :  { %v5200_v14 = vmul.f32 %v7024_v33, %v7024_v33  ;;  %2200 = vrot.lane.b32.xlu0 %v5076_v60, %s2544_s10  ;;  %v1592_v32 = vadd.f32 %v7026_v11, %v1336_v18  ;;  %v5209_v35 = vadd.f32 %v5166_v8, %v1847_v43  ;;  %v5212_v37 = vadd.f32 %v5170_v22, %v1846_v29  ;;  %v7029_v19 = vld [vmem:[#allocation72_spill] sm:$0xff]  ;;  %v7033_v47 = vld [vmem:[#allocation233_spill] sm:$0xff]  ;;  %v1771_v45 = vpop.permute.xlu1 %1770  ;;  %v7034_v13 = vld [vmem:[#allocation298_spill] sm:$0xff] }
 0x35d   :  { %v1593_v31 = vadd.f32 %v7025_v7, %v1337_v55  ;;  %v642_v17 = vadd.f32 %v7030_v38, %v7029_v19  ;;  %v895_v63 = vadd.f32 %v7031_v10, %v5060_v40  ;;  %v7032_v62 = vld [vmem:[#allocation232_spill] sm:$0xff]  ;;  %v1020_v60 = vadd.f32 %v7033_v47, %v892_v26  ;;  %v1769_v55 = vpop.permute.xlu0 %1768  ;;  %v7035_v23 = vld [vmem:[#allocation299_spill] sm:$0xff]  ;;  %v7044_v38 = vld [vmem:[#allocation158_spill] sm:$0xff] }
 0x35e   :  { %7027 = vst [vmem:[#allocation19_spill] sm:$0xff] %v5209_v35  ;;  %7028 = vst [vmem:[#allocation83_spill] sm:$0xff] %v5212_v37  ;;  %v1021_v34 = vadd.f32 %v7032_v62, %v893_v28  ;;  %v1339_v18 = vadd.f32 %v7034_v13, %v1019_v49  ;;  %v1338_v43 = vadd.f32 %v7035_v23, %v1018_v53  ;;  %v7036_v29 = vld [vmem:[#allocation223_spill] sm:$0xff]  ;;  %v7037_v37 = vld [vmem:[#allocation4_spill] sm:$0xff] }
 0x35f   :  { %v1849_v33 = vadd.f32 %v1771_v45, %v1593_v31  ;;  %v1848_v7 = vadd.f32 %v1769_v55, %v1592_v32  ;;  %v894_v11 = vadd.f32 %v7036_v29, %v5092_v2  ;;  %v5226_v19 = vmul.f32 %v7037_v37, %v7037_v37  ;;  %v7038_v40 = vld [vmem:[#allocation68_spill] sm:$0xff]  ;;  %2206 = vrot.lane.b32.xlu1 %v5104_v58, %s2544_s10  ;;  %v7040_v53 = vld [vmem:[#allocation357_spill] sm:$0xff]  ;;  %v7043_v37 = vld [vmem:[#allocation10_spill] sm:$0xff] }
 0x360   :  { %v5230_v28 = vmul.f32 %v7038_v40, %v7038_v40  ;;  %2204 = vrot.lane.b32.xlu0 %v5108_v4, %s2544_s10  ;;  %v7039_v26 = vld [vmem:[#allocation356_spill] sm:$0xff]  ;;  %v1594_v31 = vadd.f32 %v7040_v53, %v1338_v43  ;;  %v645_v10 = vadd.f32 %v7044_v38, %v7043_v37  ;;  %v7045_v62 = vld [vmem:[#allocation226_spill] sm:$0xff]  ;;  %v7046_v58 = vld [vmem:[#allocation227_spill] sm:$0xff]  ;;  %v1775_v13 = vpop.permute.xlu1 %1774 }
 0x361   :  { %v1595_v49 = vadd.f32 %v7039_v26, %v1339_v18  ;;  %v5239_v2 = vadd.f32 %v5196_v0, %v1849_v33  ;;  %v5242_v32 = vadd.f32 %v5200_v14, %v1848_v7  ;;  %v897_v47 = vadd.f32 %v7045_v62, %v5124_v48  ;;  %v7047_v55 = vld [vmem:[#allocation236_spill] sm:$0xff]  ;;  %v1773_v18 = vpop.permute.xlu0 %1772  ;;  %v7049_v29 = vld [vmem:[#allocation301_spill] sm:$0xff] }
 0x362   :  { %v896_v45 = vadd.f32 %v7046_v58, %v640_v61  ;;  %v1023_v4 = vadd.f32 %v7047_v55, %v895_v63  ;;  %v7048_v23 = vld [vmem:[#allocation300_spill] sm:$0xff]  ;;  %v1340_v33 = vadd.f32 %v7049_v29, %v1020_v60  ;;  %v1850_v26 = vadd.f32 %v1773_v18, %v1594_v31  ;;  %v7050_v7 = vld [vmem:[#allocation237_spill] sm:$0xff]  ;;  %v7053_v61 = vld [vmem:[#allocation358_spill] sm:$0xff] }
 0x363   :  { %7041 = vst [vmem:[#allocation20_spill] sm:$0xff] %v5239_v2  ;;  %7042 = vst [vmem:[#allocation84_spill] sm:$0xff] %v5242_v32  ;;  %v1341_v43 = vadd.f32 %v7048_v23, %v1021_v34  ;;  %v1851_v40 = vadd.f32 %v1775_v13, %v1595_v49  ;;  %v1022_v53 = vadd.f32 %v7050_v7, %v894_v11  ;;  %v7051_v32 = vld [vmem:[#allocation9_spill] sm:$0xff]  ;;  %2210 = vrot.lane.b32.xlu1 %v5136_v12, %s2544_s10  ;;  %v7054_v34 = vld [vmem:[#allocation359_spill] sm:$0xff] }
 0x364   :  { %v5255_v37 = vmul.f32 %v7051_v32, %v7051_v32  ;;  %v7052_v38 = vld [vmem:[#allocation73_spill] sm:$0xff]  ;;  %2208 = vrot.lane.b32.xlu0 %v5140_v42, %s2544_s10  ;;  %v1596_v60 = vadd.f32 %v7054_v34, %v1340_v33  ;;  %v5271_v49 = vadd.f32 %v5230_v28, %v1850_v26  ;;  %v7057_v31 = vld [vmem:[#allocation74_spill] sm:$0xff]  ;;  %v7058_v32 = vld [vmem:[#allocation159_spill] sm:$0xff]  ;;  %v1779_v42 = vpop.permute.xlu1 %1778 }
 0x365   :  { %v5259_v48 = vmul.f32 %v7052_v38, %v7052_v38  ;;  %v1597_v63 = vadd.f32 %v7053_v61, %v1341_v43  ;;  %v5268_v11 = vadd.f32 %v5226_v19, %v1851_v40  ;;  %v644_v62 = vadd.f32 %v7058_v32, %v7057_v31  ;;  %v7059_v58 = vld [vmem:[#allocation230_spill] sm:$0xff]  ;;  %v7060_v13 = vld [vmem:[#allocation240_spill] sm:$0xff]  ;;  %v7061_v18 = vld [vmem:[#allocation241_spill] sm:$0xff]  ;;  %v1777_v29 = vpop.permute.xlu0 %1776 }
 0x366   :  { %7056 = vst [vmem:[#allocation85_spill] sm:$0xff] %v5271_v49  ;;  %v899_v55 = vadd.f32 %v7059_v58, %v643_v30  ;;  %v1025_v12 = vadd.f32 %v7060_v13, %v897_v47  ;;  %v1024_v23 = vadd.f32 %v7061_v18, %v896_v45  ;;  %v7062_v43 = vld [vmem:[#allocation302_spill] sm:$0xff]  ;;  %v7063_v33 = vld [vmem:[#allocation303_spill] sm:$0xff]  ;;  %v1852_v61 = vadd.f32 %v1777_v29, %v1596_v60  ;;  %v7065_v47 = vld [vmem:[#allocation360_spill] sm:$0xff] }
 0x367   :  { %7055 = vst [vmem:[#allocation21_spill] sm:$0xff] %v5268_v11  ;;  %v1343_v7 = vadd.f32 %v7062_v43, %v1023_v4  ;;  %v1342_v38 = vadd.f32 %v7063_v33, %v1022_v53  ;;  %v1853_v40 = vadd.f32 %v1779_v42, %v1597_v63  ;;  %v7064_v34 = vld [vmem:[#allocation231_spill] sm:$0xff]  ;;  %v5283_v49 = vmul.f32 %v4863_v39, %v4863_v39  ;;  %v7066_v4 = vld [vmem:[#allocation361_spill] sm:$0xff]  ;;  %v7070_v60 = vld [vmem:[#allocation160_spill] sm:$0xff] }
 0x368   :  { %v898_v26 = vadd.f32 %v7064_v34, %v642_v17  ;;  %v5287_v30 = vmul.f32 %v4868_v44, %v4868_v44  ;;  %2214 = vrot.lane.b32.xlu1 %v5166_v8, %s2544_s10  ;;  %2212 = vrot.lane.b32.xlu0 %v5170_v22, %s2544_s10  ;;  %v5299_v39 = vadd.f32 %v5259_v48, %v1852_v61  ;;  %v7069_v63 = vld [vmem:[#allocation11_spill] sm:$0xff]  ;;  %v7071_v31 = vld [vmem:[#allocation234_spill] sm:$0xff]  ;;  %v7073_v13 = vld [vmem:[#allocation244_spill] sm:$0xff]  ;;  %v1783_v22 = vpop.permute.xlu1 %1782 }
 0x369   :  { %v1599_v45 = vadd.f32 %v7065_v47, %v1343_v7  ;;  %v1598_v53 = vadd.f32 %v7066_v4, %v1342_v38  ;;  %v5296_v17 = vadd.f32 %v5255_v37, %v1853_v40  ;;  %v647_v44 = vadd.f32 %v7070_v60, %v7069_v63  ;;  %v7072_v58 = vld [vmem:[#allocation235_spill] sm:$0xff]  ;;  %v1781_v42 = vpop.permute.xlu0 %1780  ;;  %v7074_v29 = vld [vmem:[#allocation304_spill] sm:$0xff]  ;;  %v7075_v7 = vld [vmem:[#allocation305_spill] sm:$0xff] }
 0x36a   :  { %7068 = vst [vmem:[#allocation86_spill] sm:$0xff] %v5299_v39  ;;  %v901_v32 = vadd.f32 %v7071_v31, %v645_v10  ;;  %v900_v8 = vadd.f32 %v7072_v58, %v644_v62  ;;  %v1027_v18 = vadd.f32 %v7073_v13, %v899_v55  ;;  %v1345_v43 = vadd.f32 %v7074_v29, %v1025_v12  ;;  %v7076_v34 = vld [vmem:[#allocation245_spill] sm:$0xff]  ;;  %v7077_v62 = vld [vmem:[#allocation362_spill] sm:$0xff]  ;;  %v7078_v12 = vld [vmem:[#allocation363_spill] sm:$0xff] }
 0x36b   :  { %7067 = vst [vmem:[#allocation22_spill] sm:$0xff] %v5296_v17  ;;  %v1344_v33 = vadd.f32 %v7075_v7, %v1024_v23  ;;  %v1855_v38 = vadd.f32 %v1783_v22, %v1599_v45  ;;  %v1854_v40 = vadd.f32 %v1781_v42, %v1598_v53  ;;  %v1026_v61 = vadd.f32 %v7076_v34, %v898_v26  ;;  %v7082_v4 = vld [vmem:[#allocation161_spill] sm:$0xff]  ;;  %v7084_v60 = vld [vmem:[#allocation248_spill] sm:$0xff]  ;;  %v7086_v22 = vld [vmem:[#allocation306_spill] sm:$0xff] }
 0x36c   :  { %v1953_v47 = vmul.f32 %v4910_v1, %v4910_v1  ;;  %v1952_v10 = vmul.f32 %v4915_v27, %v4915_v27  ;;  %2218 = vrot.lane.b32.xlu1 %v5196_v0, %s2544_s10  ;;  %2216 = vrot.lane.b32.xlu0 %v5200_v14, %s2544_s10  ;;  %v1601_v55 = vadd.f32 %v7077_v62, %v1345_v43  ;;  %v7081_v1 = vld [vmem:[#allocation75_spill] sm:$0xff]  ;;  %v7083_v27 = vld [vmem:[#allocation238_spill] sm:$0xff]  ;;  %v7085_v31 = vld [vmem:[#allocation249_spill] sm:$0xff]  ;;  %v1787_v14 = vpop.permute.xlu1 %1786 }
 0x36d   :  { %v1600_v23 = vadd.f32 %v7078_v12, %v1344_v33  ;;  %v5320_v45 = vadd.f32 %v5283_v49, %v1855_v38  ;;  %v5323_v26 = vadd.f32 %v5287_v30, %v1854_v40  ;;  %v646_v53 = vadd.f32 %v7082_v4, %v7081_v1  ;;  %v1785_v13 = vpop.permute.xlu0 %1784  ;;  %v7087_v29 = vld [vmem:[#allocation307_spill] sm:$0xff]  ;;  %v7093_v12 = vld [vmem:[#allocation252_spill] sm:$0xff]  ;;  %v7141_v11 = vld [vmem:[#allocation61_spill] sm:$0xff] }
 0x36e   :  { %v903_v63 = vadd.f32 %v7083_v27, %v647_v44  ;;  %v1029_v0 = vadd.f32 %v7084_v60, %v901_v32  ;;  %v1028_v58 = vadd.f32 %v7085_v31, %v900_v8  ;;  %v1347_v42 = vadd.f32 %v7086_v22, %v1027_v18  ;;  %v7088_v38 = vld [vmem:[#allocation239_spill] sm:$0xff]  ;;  %v7089_v32 = vld [vmem:[#allocation364_spill] sm:$0xff]  ;;  %v7090_v18 = vld [vmem:[#allocation365_spill] sm:$0xff] }
 0x36f   :  { %7079 = vst [vmem:[#allocation23_spill] sm:$0xff] %v5320_v45  ;;  %7080 = vst [vmem:[#allocation87_spill] sm:$0xff] %v5323_v26  ;;  %v1346_v43 = vadd.f32 %v7087_v29, %v1026_v61  ;;  %v1857_v7 = vadd.f32 %v1787_v14, %v1601_v55  ;;  %v1856_v33 = vadd.f32 %v1785_v13, %v1600_v23  ;;  %v7094_v4 = vld [vmem:[#allocation308_spill] sm:$0xff]  ;;  %v7096_v31 = vld [vmem:[#allocation253_spill] sm:$0xff] }
 0x370   :  { %v902_v40 = vadd.f32 %v7088_v38, %v646_v53  ;;  %v1955_v34 = vmul.f32 %v4948_v36, %v4948_v36  ;;  %v1954_v44 = vmul.f32 %v4953_v50, %v4953_v50  ;;  %2222 = vrot.lane.b32.xlu1 %v5226_v19, %s2544_s10  ;;  %2220 = vrot.lane.b32.xlu0 %v5230_v28, %s2544_s10  ;;  %v1791_v36 = vpop.permute.xlu1 %1790  ;;  %v7095_v53 = vld [vmem:[#allocation309_spill] sm:$0xff]  ;;  %v7098_v22 = vld [vmem:[#allocation367_spill] sm:$0xff] }
 0x371   :  { %v1603_v8 = vadd.f32 %v7089_v32, %v1347_v42  ;;  %v1602_v61 = vadd.f32 %v7090_v18, %v1346_v43  ;;  %v5343_v62 = vadd.f32 %v1953_v47, %v1857_v7  ;;  %v5345_v55 = vadd.f32 %v1952_v10, %v1856_v33  ;;  %v1789_v1 = vpop.permute.xlu0 %1788  ;;  %v7102_v38 = vld [vmem:[#allocation311_spill] sm:$0xff]  ;;  %v7153_v59 = vld [vmem:[#allocation105_spill] sm:$0xff] }
 0x372   :  { %v1031_v23 = vadd.f32 %v7093_v12, %v903_v63  ;;  %v1349_v50 = vadd.f32 %v7094_v4, %v1029_v0  ;;  %v1348_v27 = vadd.f32 %v7095_v53, %v1028_v58  ;;  %v1030_v28 = vadd.f32 %v7096_v31, %v902_v40  ;;  %v7097_v63 = vld [vmem:[#allocation366_spill] sm:$0xff]  ;;  %v2474_v17 = vld [vmem:[%s6306_s0 + $0x288] sm:$0xff] }
 0x373   :  { %7091 = vst [vmem:[#allocation24_spill] sm:$0xff] %v5343_v62  ;;  %7092 = vst [vmem:[#allocation88_spill] sm:$0xff] %v5345_v55  ;;  %v1859_v19 = vadd.f32 %v1791_v36, %v1603_v8  ;;  %v1858_v60 = vadd.f32 %v1789_v1, %v1602_v61  ;;  %v1957_v14 = vmul.f32 %v4988_v20, %v4988_v20  ;;  %v7101_v20 = vld [vmem:[#allocation310_spill] sm:$0xff]  ;;  %v7103_v8 = vld [vmem:[#allocation368_spill] sm:$0xff] }
 0x374   :  { %v1956_v13 = vmul.f32 %v4993_v25, %v4993_v25  ;;  %2226 = vrot.lane.b32.xlu1 %v5255_v37, %s2544_s10  ;;  %2224 = vrot.lane.b32.xlu0 %v5259_v48, %s2544_s10  ;;  %v1605_v0 = vadd.f32 %v7097_v63, %v1349_v50  ;;  %v1604_v58 = vadd.f32 %v7098_v22, %v1348_v27  ;;  %v1795_v43 = vpop.permute.xlu1 %1794  ;;  %v7104_v61 = vld [vmem:[#allocation369_spill] sm:$0xff]  ;;  %v2449_v63 = vld [vmem:[%s6306_s0] sm:$0xff] }
 0x375   :  { %v5361_v42 = vadd.f32 %v1955_v34, %v1859_v19  ;;  %v5363_v29 = vadd.f32 %v1954_v44, %v1858_v60  ;;  %v1793_v7 = vpop.permute.xlu0 %1792  ;;  %v1351_v33 = vadd.f32 %v7101_v20, %v1031_v23  ;;  %v1350_v25 = vadd.f32 %v7102_v38, %v1030_v28  ;;  %v2448_v28 = vld [vmem:[%s6306_s0 + $0x30] sm:$0xff]  ;;  %v2451_v20 = vld [vmem:[%s6306_s0 + $0x18] sm:$0xff] }
 0x376   :  { %v1861_v40 = vadd.f32 %v1795_v43, %v1605_v0  ;;  %v1860_v32 = vadd.f32 %v1793_v7, %v1604_v58  ;;  %v1959_v37 = vmul.f32 %v5029_v46, %v5029_v46  ;;  %v1958_v48 = vmul.f32 %v5034_v16, %v5034_v16  ;;  %v7112_v0 = vld [vmem:[#allocation32_spill] sm:$0xff]  ;;  %v2450_v58 = vld [vmem:[%s6306_s0 + $0x48] sm:$0xff] }
 0x377   :  { %7099 = vst [vmem:[#allocation25_spill] sm:$0xff] %v5361_v42  ;;  %7100 = vst [vmem:[#allocation89_spill] sm:$0xff] %v5363_v29  ;;  %v1607_v18 = vadd.f32 %v7103_v8, %v1351_v33  ;;  %v1606_v12 = vadd.f32 %v7104_v61, %v1350_v25  ;;  %v5423_v22 = vadd.f32 %v2449_v63, %v7112_v0  ;;  %v7113_v43 = vld [vmem:[#allocation35_spill] sm:$0xff]  ;;  %v7114_v33 = vld [vmem:[#allocation36_spill] sm:$0xff] }
 0x378   :  { %2230 = vrot.lane.b32.xlu1 %v5283_v49, %s2544_s10  ;;  %2228 = vrot.lane.b32.xlu0 %v5287_v30, %s2544_s10  ;;  %v5377_v23 = vadd.f32 %v1957_v14, %v1861_v40  ;;  %v5379_v36 = vadd.f32 %v1956_v13, %v1860_v32  ;;  %v1799_v1 = vpop.permute.xlu1 %1798  ;;  %v5429_v7 = vadd.f32 %v2450_v58, %v7113_v43  ;;  %v2452_v25 = vld [vmem:[%s6306_s0 + $0x78] sm:$0xff]  ;;  %v7115_v40 = vld [vmem:[#allocation39_spill] sm:$0xff]  ;;  %v2457_v58 = vld [vmem:[%s6306_s0 + $0xc0] sm:$0xff] }
 0x379   :  { %v1797_v4 = vpop.permute.xlu0 %1796  ;;  %v1863_v46 = vadd.f32 %v1799_v1, %v1607_v18  ;;  %v201_v38 = vadd.f32 %v2451_v20, %v7114_v33  ;;  %v5439_v32 = vadd.f32 %v2452_v25, %v7115_v40  ;;  %v2454_v18 = vld [vmem:[%s6306_s0 + $0xa8] sm:$0xff]  ;;  %v7117_v61 = vld [vmem:[#allocation41_spill] sm:$0xff]  ;;  %v7122_v43 = vld [vmem:[#allocation44_spill] sm:$0xff]  ;;  %v227_v2 = vadd.f32 %v2474_v17, %v7141_v11 }
 0x37a   :  { %7105 = vst [vmem:[#allocation26_spill] sm:$0xff] %v5377_v23  ;;  %7106 = vst [vmem:[#allocation90_spill] sm:$0xff] %v5379_v36  ;;  %v1862_v50 = vadd.f32 %v1797_v4, %v1606_v12  ;;  %v207_v12 = vadd.f32 %v2454_v18, %v7117_v61  ;;  %v7121_v63 = vld [vmem:[#allocation43_spill] sm:$0xff]  ;;  %v208_v20 = vadd.f32 %v2457_v58, %v7122_v43  ;;  %v7123_v25 = vld [vmem:[#allocation45_spill] sm:$0xff] }
 0x37b   :  { %v5383_v16 = vadd.f32 %v1959_v37, %v1863_v46  ;;  %v2455_v46 = vld [vmem:[%s6306_s0 + $0x90] sm:$0xff]  ;;  %v2458_v33 = vld [vmem:[%s6306_s0 + $0x108] sm:$0xff]  ;;  %v2460_v61 = vld [vmem:[%s6306_s0 + $0x138] sm:$0xff] }
 0x37c   :  { %2234 = vrot.lane.b32.xlu1 %v1953_v47, %s2544_s10  ;;  %2232 = vrot.lane.b32.xlu0 %v1952_v10, %s2544_s10  ;;  %v5385_v49 = vadd.f32 %v1958_v48, %v1862_v50  ;;  %v5387_v30 = vpop.permute.xlu1 %2026  ;;  %v7120_v50 = vld [vmem:[#allocation42_spill] sm:$0xff]  ;;  %v211_v40 = vadd.f32 %v2458_v33, %v7123_v25  ;;  %v2462_v43 = vld [vmem:[%s6306_s0 + $0x168] sm:$0xff]  ;;  %v7127_v33 = vld [vmem:[#allocation49_spill] sm:$0xff]  ;;  %v495_v56 = vadd.f32 %v7153_v59, %v207_v12 }
 0x37d   :  { %7107 = vst [vmem:[#allocation27_spill] sm:$0xff] %v5383_v16  ;;  %v5389_v53 = vpop.permute.xlu0 %2024  ;;  %v215_v25 = vadd.f32 %v2462_v43, %v7127_v33  ;;  %v2466_v43 = vld [vmem:[%s6306_s0 + $0x1c8] sm:$0xff]  ;;  %v7131_v33 = vld [vmem:[#allocation53_spill] sm:$0xff] }
 0x37e   :  { %7108 = vst [vmem:[#allocation91_spill] sm:$0xff] %v5385_v49  ;;  %v219_v23 = vadd.f32 %v2466_v43, %v7131_v33  ;;  %v2470_v43 = vld [vmem:[%s6306_s0 + $0x228] sm:$0xff]  ;;  %v7135_v33 = vld [vmem:[#allocation57_spill] sm:$0xff] }
 0x37f   :  { %v223_v62 = vadd.f32 %v2470_v43, %v7135_v33  ;;  %v2473_v43 = vld [vmem:[%s6306_s0 + $0x240] sm:$0xff]  ;;  %v7140_v33 = vld [vmem:[#allocation60_spill] sm:$0xff]  ;;  %v2478_v11 = vld [vmem:[%s6306_s0 + $0x2e8] sm:$0xff] }
 0x380   :  { %2238 = vrot.lane.b32.xlu1 %v1955_v34, %s2544_s10  ;;  %2236 = vrot.lane.b32.xlu0 %v1954_v44, %s2544_s10  ;;  %v5393_v27 = vpop.permute.xlu1 %2030  ;;  %v224_v39 = vadd.f32 %v2473_v43, %v7140_v33  ;;  %v2477_v43 = vld [vmem:[%s6306_s0 + $0x2a0] sm:$0xff]  ;;  %v7144_v33 = vld [vmem:[#allocation64_spill] sm:$0xff]  ;;  %v7145_v17 = vld [vmem:[#allocation65_spill] sm:$0xff] }
 0x381   :  { %v5395_v19 = vpop.permute.xlu0 %2028  ;;  %v228_v21 = vadd.f32 %v2477_v43, %v7144_v33  ;;  %v231_v24 = vadd.f32 %v2478_v11, %v7145_v17  ;;  %v491_v43 = vadd.f32 %v7149_v54, %v5429_v7  ;;  %v7150_v33 = vld [vmem:[#allocation102_spill] sm:$0xff]  ;;  %v7152_v17 = vld [vmem:[#allocation104_spill] sm:$0xff]  ;;  %v7164_v12 = vld [vmem:[#allocation113_spill] sm:$0xff] }
 0x382   :  { %v7159_v7 = vld [vmem:[#allocation108_spill] sm:$0xff] }
 0x384   :  { %2242 = vrot.lane.b32.xlu1 %v1957_v14, %s2544_s10  ;;  %2240 = vrot.lane.b32.xlu0 %v1956_v13, %s2544_s10  ;;  %v5399_v47 = vpop.permute.xlu1 %2034  ;;  %v7111_v14 = vld [vmem:[#allocation31_spill] sm:$0xff] }
 0x385   :  { %v5401_v10 = vpop.permute.xlu0 %2032  ;;  %v5417_v13 = vadd.f32 %v2448_v28, %v7111_v14  ;;  %v206_v28 = vadd.f32 %v2455_v46, %v7120_v50  ;;  %v2456_v14 = vld [vmem:[%s6306_s0 + $0xd8] sm:$0xff]  ;;  %v7125_v46 = vld [vmem:[#allocation47_spill] sm:$0xff] }
 0x386   :  { %v209_v0 = vadd.f32 %v2456_v14, %v7121_v63  ;;  %v213_v50 = vadd.f32 %v2460_v61, %v7125_v46  ;;  %v2461_v14 = vld [vmem:[%s6306_s0 + $0x120] sm:$0xff]  ;;  %v7126_v63 = vld [vmem:[#allocation48_spill] sm:$0xff]  ;;  %v2464_v61 = vld [vmem:[%s6306_s0 + $0x198] sm:$0xff] }
 0x387   :  { %v212_v58 = vadd.f32 %v2461_v14, %v7126_v63  ;;  %v7129_v46 = vld [vmem:[#allocation51_spill] sm:$0xff]  ;;  %v2465_v14 = vld [vmem:[%s6306_s0 + $0x180] sm:$0xff]  ;;  %v7130_v63 = vld [vmem:[#allocation52_spill] sm:$0xff]  ;;  %v490_v9 = vadd.f32 %v7150_v33, %v5417_v13 }
 0x388   :  { %2246 = vrot.lane.b32.xlu1 %v1959_v37, %s2544_s10  ;;  %2244 = vrot.lane.b32.xlu0 %v1958_v48, %s2544_s10  ;;  %v5405_v60 = vpop.permute.xlu1 %2038  ;;  %v2453_v37 = vld [vmem:[%s6306_s0 + $0x60] sm:$0xff]  ;;  %v7116_v48 = vld [vmem:[#allocation40_spill] sm:$0xff]  ;;  %v217_v16 = vadd.f32 %v2464_v61, %v7129_v46  ;;  %v216_v36 = vadd.f32 %v2465_v14, %v7130_v63  ;;  %v2468_v61 = vld [vmem:[%s6306_s0 + $0x1f8] sm:$0xff] }
 0x389   :  { %v5407_v34 = vpop.permute.xlu0 %2036  ;;  %v204_v8 = vadd.f32 %v2453_v37, %v7116_v48  ;;  %v2459_v37 = vld [vmem:[%s6306_s0 + $0xf0] sm:$0xff]  ;;  %v7124_v48 = vld [vmem:[#allocation46_spill] sm:$0xff]  ;;  %v7133_v46 = vld [vmem:[#allocation55_spill] sm:$0xff] }
 0x38a   :  { %v210_v18 = vadd.f32 %v2459_v37, %v7124_v48  ;;  %v2463_v37 = vld [vmem:[%s6306_s0 + $0x150] sm:$0xff]  ;;  %v7128_v48 = vld [vmem:[#allocation50_spill] sm:$0xff]  ;;  %v221_v42 = vadd.f32 %v2468_v61, %v7133_v46  ;;  %v7160_v13 = vld [vmem:[#allocation109_spill] sm:$0xff] }
 0x38b   :  { %v214_v49 = vadd.f32 %v2463_v37, %v7128_v48  ;;  %v2467_v37 = vld [vmem:[%s6306_s0 + $0x1b0] sm:$0xff]  ;;  %v7132_v48 = vld [vmem:[#allocation54_spill] sm:$0xff] }
 0x38c   :  { %v5409_v44 = vpop.permute.xlu1 %2042  ;;  %v218_v29 = vadd.f32 %v2467_v37, %v7132_v48  ;;  %v2469_v14 = vld [vmem:[%s6306_s0 + $0x1e0] sm:$0xff]  ;;  %v7134_v63 = vld [vmem:[#allocation56_spill] sm:$0xff]  ;;  %v498_v33 = vadd.f32 %v7160_v13, %v210_v18 }
 0x38d   :  { %7109 = vst [vmem:[#allocation28_spill] sm:$0xff] %v5409_v44  ;;  %v5411_v31 = vpop.permute.xlu0 %2040  ;;  %v220_v55 = vadd.f32 %v2469_v14, %v7134_v63  ;;  %v2471_v48 = vld [vmem:[%s6306_s0 + $0x210] sm:$0xff]  ;;  %v7138_v61 = vld [vmem:[#allocation58_spill] sm:$0xff]  ;;  %v2472_v14 = vld [vmem:[%s6306_s0 + $0x258] sm:$0xff]  ;;  %v499_v44 = vadd.f32 %v7159_v7, %v211_v40 }
 0x38e   :  { %7110 = vst [vmem:[#allocation92_spill] sm:$0xff] %v5411_v31  ;;  %v222_v46 = vadd.f32 %v2471_v48, %v7138_v61  ;;  %v7139_v63 = vld [vmem:[#allocation59_spill] sm:$0xff]  ;;  %v2475_v48 = vld [vmem:[%s6306_s0 + $0x270] sm:$0xff]  ;;  %v7142_v61 = vld [vmem:[#allocation62_spill] sm:$0xff] }
 0x38f   :  { %v225_v45 = vadd.f32 %v2472_v14, %v7139_v63  ;;  %v226_v35 = vadd.f32 %v2475_v48, %v7142_v61  ;;  %v2476_v14 = vld [vmem:[%s6306_s0 + $0x2b8] sm:$0xff]  ;;  %v7143_v63 = vld [vmem:[#allocation63_spill] sm:$0xff]  ;;  %v2479_v48 = vld [vmem:[%s6306_s0 + $0x2d0] sm:$0xff] }
 0x390   :  { %v5449_v1 = vpop.permute.xlu1 %2046  ;;  %v229_v51 = vadd.f32 %v2476_v14, %v7143_v63  ;;  %v7146_v61 = vld [vmem:[#allocation66_spill] sm:$0xff]  ;;  %v7148_v63 = vld [vmem:[#allocation100_spill] sm:$0xff]  ;;  %v7168_v40 = vld [vmem:[#allocation117_spill] sm:$0xff] }
 0x391   :  { %7118 = vst [vmem:[#allocation29_spill] sm:$0xff] %v5449_v1  ;;  %v5451_v4 = vpop.permute.xlu0 %2044  ;;  %v230_v57 = vadd.f32 %v2479_v48, %v7146_v61  ;;  %v492_v1 = vadd.f32 %v7152_v17, %v204_v8  ;;  %v7163_v17 = vld [vmem:[#allocation112_spill] sm:$0xff]  ;;  %v7169_v18 = vld [vmem:[#allocation118_spill] sm:$0xff] }
 0x392   :  { %7119 = vst [vmem:[#allocation93_spill] sm:$0xff] %v5451_v4  ;;  %v7151_v4 = vld [vmem:[#allocation103_spill] sm:$0xff]  ;;  %v503_v59 = vadd.f32 %v7163_v17, %v215_v25  ;;  %v7171_v25 = vld [vmem:[#allocation120_spill] sm:$0xff] }
 0x393   :  { %v493_v11 = vadd.f32 %v7151_v4, %v5439_v32  ;;  %v501_v32 = vadd.f32 %v7161_v41, %v213_v50  ;;  %v7162_v4 = vld [vmem:[#allocation111_spill] sm:$0xff]  ;;  %v5594_v41 = vadd.f32 %v7169_v18, %v221_v42  ;;  %v7176_v42 = vld [vmem:[#allocation124_spill] sm:$0xff] }
 0x394   :  { %v5517_v26 = vpop.permute.xlu1 %2050  ;;  %v500_v8 = vadd.f32 %v7162_v4, %v212_v58  ;;  %v7170_v50 = vld [vmem:[#allocation119_spill] sm:$0xff]  ;;  %v5616_v4 = vadd.f32 %v7176_v42, %v227_v2  ;;  %v7186_v42 = vld [vmem:[#allocation166_spill] sm:$0xff] }
 0x395   :  { %7136 = vst [vmem:[#allocation30_spill] sm:$0xff] %v5517_v26  ;;  %v5519_v37 = vpop.permute.xlu0 %2048  ;;  %v488_v26 = vadd.f32 %v7148_v63, %v5423_v22  ;;  %v7157_v22 = vld [vmem:[#allocation2_spill] sm:$0xff]  ;;  %v7158_v63 = vld [vmem:[#allocation107_spill] sm:$0xff]  ;;  %v5597_v58 = vadd.f32 %v7170_v50, %v220_v55  ;;  %v7177_v55 = vld [vmem:[#allocation125_spill] sm:$0xff] }
 0x396   :  { %7137 = vst [vmem:[#allocation94_spill] sm:$0xff] %v5519_v37  ;;  %v7147_v37 = vld [vmem:[#allocation99_spill] sm:$0xff]  ;;  %v497_v61 = vadd.f32 %v7157_v22, %v209_v0  ;;  %v496_v54 = vadd.f32 %v7158_v63, %v208_v20  ;;  %v7167_v0 = vld [vmem:[#allocation116_spill] sm:$0xff]  ;;  %v5591_v22 = vadd.f32 %v7168_v40, %v218_v29  ;;  %v5619_v17 = vadd.f32 %v7177_v55, %v226_v35  ;;  %v7185_v35 = vld [vmem:[#allocation165_spill] sm:$0xff] }
 0x397   :  { %v489_v14 = vadd.f32 %v7147_v37, %v201_v38  ;;  %v7156_v38 = vld [vmem:[#allocation106_spill] sm:$0xff]  ;;  %v5588_v20 = vadd.f32 %v7167_v0, %v219_v23  ;;  %v7175_v29 = vld [vmem:[#allocation123_spill] sm:$0xff] }
 0x398   :  { %v5568_v31 = vpop.permute.xlu1 %2054  ;;  %v494_v37 = vadd.f32 %v7156_v38, %v206_v28  ;;  %v7166_v28 = vld [vmem:[#allocation115_spill] sm:$0xff]  ;;  %v7174_v23 = vld [vmem:[#allocation122_spill] sm:$0xff]  ;;  %v5613_v13 = vadd.f32 %v7175_v29, %v224_v39  ;;  %v746_v29 = vadd.f32 %v7185_v35, %v490_v9 }
 0x399   :  { %7154 = vst [vmem:[#allocation130_spill] sm:$0xff] %v5568_v31  ;;  %v5570_v48 = vpop.permute.xlu0 %2052  ;;  %v502_v31 = vadd.f32 %v7164_v12, %v214_v49  ;;  %v5585_v38 = vadd.f32 %v7166_v28, %v216_v36  ;;  %v5600_v49 = vadd.f32 %v7171_v25, %v223_v62  ;;  %v7173_v36 = vld [vmem:[#allocation121_spill] sm:$0xff]  ;;  %v5610_v7 = vadd.f32 %v7174_v23, %v225_v45  ;;  %v7178_v62 = vld [vmem:[#allocation126_spill] sm:$0xff]  ;;  %v7179_v28 = vld [vmem:[#allocation127_spill] sm:$0xff] }
 0x39a   :  { %7155 = vst [vmem:[#allocation131_spill] sm:$0xff] %v5570_v48  ;;  %v5582_v48 = vadd.f32 %v7165_v15, %v217_v16  ;;  %v5607_v63 = vadd.f32 %v7173_v36, %v222_v46  ;;  %v5622_v12 = vadd.f32 %v7178_v62, %v229_v51  ;;  %v5625_v0 = vadd.f32 %v7179_v28, %v228_v21  ;;  %v7180_v46 = vld [vmem:[#allocation128_spill] sm:$0xff]  ;;  %v7181_v45 = vld [vmem:[#allocation129_spill] sm:$0xff]  ;;  %v7182_v39 = vld [vmem:[#allocation162_spill] sm:$0xff] }
 0x39b   :  { %v5628_v40 = vadd.f32 %v7180_v46, %v231_v24  ;;  %v5631_v18 = vadd.f32 %v7181_v45, %v230_v57  ;;  %v745_v50 = vadd.f32 %v7182_v39, %v489_v14  ;;  %v7183_v25 = vld [vmem:[#allocation163_spill] sm:$0xff]  ;;  %v7184_v36 = vld [vmem:[#allocation164_spill] sm:$0xff]  ;;  %v749_v51 = vadd.f32 %v7186_v42, %v493_v11  ;;  %v7190_v57 = vld [vmem:[#allocation169_spill] sm:$0xff] }
 0x39c   :  { %v5602_v15 = vpop.permute.xlu1 %2058  ;;  %v744_v2 = vadd.f32 %v7183_v25, %v488_v26  ;;  %v747_v23 = vadd.f32 %v7184_v36, %v491_v43  ;;  %v7187_v55 = vld [vmem:[#allocation167_spill] sm:$0xff]  ;;  %v7188_v21 = vld [vmem:[#allocation168_spill] sm:$0xff]  ;;  %v750_v46 = vadd.f32 %v7190_v57, %v494_v37  ;;  %v7191_v45 = vld [vmem:[#allocation170_spill] sm:$0xff] }
 0x39d   :  { %v5604_v16 = vpop.permute.xlu0 %2056  ;;  %v748_v62 = vadd.f32 %v7187_v55, %v492_v1  ;;  %v751_v28 = vadd.f32 %v7188_v21, %v495_v56  ;;  %v753_v14 = vadd.f32 %v7191_v45, %v497_v61  ;;  %v7192_v39 = vld [vmem:[#allocation171_spill] sm:$0xff]  ;;  %v7193_v25 = vld [vmem:[#allocation172_spill] sm:$0xff]  ;;  %v7194_v36 = vld [vmem:[#allocation173_spill] sm:$0xff] }
 0x39e   :  { %7172 = vst [vmem:[#allocation33_spill] sm:$0xff] %v5604_v16  ;;  %v752_v26 = vadd.f32 %v7192_v39, %v496_v54  ;;  %v755_v43 = vadd.f32 %v7193_v25, %v499_v44  ;;  %v754_v9 = vadd.f32 %v7194_v36, %v498_v33  ;;  %v7195_v35 = vld [vmem:[#allocation174_spill] sm:$0xff]  ;;  %v7196_v42 = vld [vmem:[#allocation175_spill] sm:$0xff]  ;;  %v7197_v55 = vld [vmem:[#allocation176_spill] sm:$0xff] }
 0x39f   :  { %v757_v11 = vadd.f32 %v7195_v35, %v501_v32  ;;  %v756_v1 = vadd.f32 %v7196_v42, %v500_v8  ;;  %v759_v56 = vadd.f32 %v7197_v55, %v503_v59  ;;  %v7198_v21 = vld [vmem:[#allocation177_spill] sm:$0xff]  ;;  %v2480_v37 = vld [vmem:[%s6306_s0 + $0x20] sm:$0xff]  ;;  %v2481_v44 = vld [vmem:[%s6306_s0 + $0x8] sm:$0xff] }
 0x3a0   :  { %v5640_v16 = vpop.permute.xlu1 %2062  ;;  %v5656_v57 = vadd.f32 %v2480_v37, %v745_v50  ;;  %v5661_v61 = vadd.f32 %v2481_v44, %v744_v2  ;;  %v2482_v54 = vld [vmem:[%s6306_s0 + $0x50] sm:$0xff]  ;;  %v2484_v8 = vld [vmem:[%s6306_s0 + $0x80] sm:$0xff]  ;;  %v2485_v50 = vld [vmem:[%s6306_s0 + $0x68] sm:$0xff] }
 0x3a1   :  { %7189 = vst [vmem:[#allocation95_spill] sm:$0xff] %v5640_v16  ;;  %v5642_v24 = vpop.permute.xlu0 %2060  ;;  %v758_v16 = vadd.f32 %v7198_v21, %v502_v31  ;;  %v5666_v33 = vadd.f32 %v2482_v54, %v747_v23  ;;  %v2483_v31 = vld [vmem:[%s6306_s0 + $0x38] sm:$0xff]  ;;  %v5676_v59 = vadd.f32 %v2484_v8, %v749_v51  ;;  %v5681_v2 = vadd.f32 %v2485_v50, %v748_v62  ;;  %v2486_v23 = vld [vmem:[%s6306_s0 + $0xb0] sm:$0xff]  ;;  %v2488_v62 = vld [vmem:[%s6306_s0 + $0xe0] sm:$0xff] }
 0x3a2   :  { %v5671_v32 = vadd.f32 %v2483_v31, %v746_v29  ;;  %v5686_v45 = vadd.f32 %v2486_v23, %v751_v28  ;;  %v2487_v51 = vld [vmem:[%s6306_s0 + $0x98] sm:$0xff]  ;;  %v5700_v36 = vadd.f32 %v2488_v62, %v753_v14  ;;  %v2489_v28 = vld [vmem:[%s6306_s0 + $0xc8] sm:$0xff]  ;;  %v2490_v42 = vld [vmem:[%s6306_s0 + $0x110] sm:$0xff] }
 0x3a3   :  { %v5695_v25 = vadd.f32 %v2487_v51, %v750_v46  ;;  %v5705_v35 = vadd.f32 %v2489_v28, %v752_v26  ;;  %v5710_v55 = vadd.f32 %v2490_v42, %v755_v43  ;;  %v2491_v46 = vld [vmem:[%s6306_s0 + $0xf8] sm:$0xff]  ;;  %v2492_v14 = vld [vmem:[%s6306_s0 + $0x140] sm:$0xff]  ;;  %v2493_v26 = vld [vmem:[%s6306_s0 + $0x128] sm:$0xff] }
 0x3a4   :  { %v5688_v29 = vpop.permute.xlu1 %2066  ;;  %v5715_v21 = vadd.f32 %v2491_v46, %v754_v9  ;;  %v5720_v37 = vadd.f32 %v2492_v14, %v757_v11  ;;  %v5725_v44 = vadd.f32 %v2493_v26, %v756_v1  ;;  %v2494_v43 = vld [vmem:[%s6306_s0 + $0x170] sm:$0xff]  ;;  %v7199_v9 = vld [vmem:[#allocation178_spill] sm:$0xff]  ;;  %v7200_v8 = vld [vmem:[#allocation179_spill] sm:$0xff] }
 0x3a5   :  { %v5690_v39 = vpop.permute.xlu0 %2064  ;;  %v5730_v54 = vadd.f32 %v2494_v43, %v759_v56  ;;  %v761_v31 = vadd.f32 %v7199_v9, %v5582_v48  ;;  %v760_v50 = vadd.f32 %v7200_v8, %v5585_v38  ;;  %v7201_v11 = vld [vmem:[#allocation180_spill] sm:$0xff]  ;;  %v2495_v1 = vld [vmem:[%s6306_s0 + $0x158] sm:$0xff]  ;;  %v7203_v56 = vld [vmem:[#allocation182_spill] sm:$0xff] }
 0x3a6   :  { %v763_v23 = vadd.f32 %v7201_v11, %v5588_v20  ;;  %v5741_v51 = vadd.f32 %v2495_v1, %v758_v16  ;;  %v7202_v62 = vld [vmem:[#allocation181_spill] sm:$0xff]  ;;  %v765_v42 = vadd.f32 %v7203_v56, %v5594_v41  ;;  %v7204_v48 = vld [vmem:[#allocation183_spill] sm:$0xff]  ;;  %v7205_v38 = vld [vmem:[#allocation184_spill] sm:$0xff] }
 0x3a7   :  { %v762_v28 = vadd.f32 %v7202_v62, %v5591_v22  ;;  %v764_v46 = vadd.f32 %v7204_v48, %v5597_v58  ;;  %v767_v14 = vadd.f32 %v7205_v38, %v5600_v49  ;;  %v7208_v43 = vld [vmem:[#allocation185_spill] sm:$0xff]  ;;  %v7209_v9 = vld [vmem:[#allocation186_spill] sm:$0xff]  ;;  %v7210_v22 = vld [vmem:[#allocation187_spill] sm:$0xff] }
 0x3a8   :  { %v5751_v26 = vpop.permute.xlu1 %2070  ;;  %v766_v16 = vadd.f32 %v7208_v43, %v5607_v63  ;;  %v769_v8 = vadd.f32 %v7209_v9, %v5610_v7  ;;  %v768_v11 = vadd.f32 %v7210_v22, %v5613_v13  ;;  %v7211_v41 = vld [vmem:[#allocation188_spill] sm:$0xff]  ;;  %v7212_v58 = vld [vmem:[#allocation189_spill] sm:$0xff]  ;;  %v7213_v49 = vld [vmem:[#allocation190_spill] sm:$0xff] }
 0x3a9   :  { %7206 = vst [vmem:[#allocation34_spill] sm:$0xff] %v5751_v26  ;;  %v5753_v20 = vpop.permute.xlu0 %2068  ;;  %v771_v1 = vadd.f32 %v7211_v41, %v5616_v4  ;;  %v770_v62 = vadd.f32 %v7212_v58, %v5619_v17  ;;  %v773_v56 = vadd.f32 %v7213_v49, %v5622_v12  ;;  %v7214_v48 = vld [vmem:[#allocation191_spill] sm:$0xff]  ;;  %v7215_v63 = vld [vmem:[#allocation192_spill] sm:$0xff]  ;;  %v7216_v7 = vld [vmem:[#allocation193_spill] sm:$0xff] }
 0x3aa   :  { %7207 = vst [vmem:[#allocation96_spill] sm:$0xff] %v5753_v20  ;;  %v772_v38 = vadd.f32 %v7214_v48, %v5625_v0  ;;  %v775_v43 = vadd.f32 %v7215_v63, %v5628_v40  ;;  %v774_v9 = vadd.f32 %v7216_v7, %v5631_v18  ;;  %v2496_v13 = vld [vmem:[%s6306_s0 + $0x1a0] sm:$0xff]  ;;  %v2497_v17 = vld [vmem:[%s6306_s0 + $0x188] sm:$0xff]  ;;  %v2498_v12 = vld [vmem:[%s6306_s0 + $0x1d0] sm:$0xff] }
 0x3ab   :  { %v953_v4 = vadd.f32 %v2496_v13, %v761_v31  ;;  %v952_v22 = vadd.f32 %v2497_v17, %v760_v50  ;;  %v955_v0 = vadd.f32 %v2498_v12, %v763_v23  ;;  %v2499_v40 = vld [vmem:[%s6306_s0 + $0x1b8] sm:$0xff]  ;;  %v2500_v41 = vld [vmem:[%s6306_s0 + $0x200] sm:$0xff]  ;;  %v2501_v58 = vld [vmem:[%s6306_s0 + $0x1e8] sm:$0xff] }
 0x3ac   :  { %v954_v18 = vadd.f32 %v2499_v40, %v762_v28  ;;  %v957_v31 = vadd.f32 %v2500_v41, %v765_v42  ;;  %v956_v50 = vadd.f32 %v2501_v58, %v764_v46  ;;  %v2502_v49 = vld [vmem:[%s6306_s0 + $0x230] sm:$0xff]  ;;  %v2503_v28 = vld [vmem:[%s6306_s0 + $0x218] sm:$0xff]  ;;  %v2504_v42 = vld [vmem:[%s6306_s0 + $0x260] sm:$0xff] }
 0x3ad   :  { %v959_v23 = vadd.f32 %v2502_v49, %v767_v14  ;;  %v5794_v48 = vpop.permute.xlu1 %2074  ;;  %v5796_v63 = vpop.permute.xlu0 %2072  ;;  %v958_v7 = vadd.f32 %v2503_v28, %v766_v16  ;;  %v961_v13 = vadd.f32 %v2504_v42, %v769_v8  ;;  %v2505_v46 = vld [vmem:[%s6306_s0 + $0x248] sm:$0xff]  ;;  %v2506_v14 = vld [vmem:[%s6306_s0 + $0x290] sm:$0xff]  ;;  %v2507_v40 = vld [vmem:[%s6306_s0 + $0x278] sm:$0xff] }
 0x3ae   :  { %7217 = vst [vmem:[#allocation37_spill] sm:$0xff] %v5794_v48  ;;  %7218 = vst [vmem:[#allocation97_spill] sm:$0xff] %v5796_v63  ;;  %v960_v17 = vadd.f32 %v2505_v46, %v768_v11  ;;  %v963_v12 = vadd.f32 %v2506_v14, %v771_v1  ;;  %v962_v16 = vadd.f32 %v2507_v40, %v770_v62  ;;  %v2508_v41 = vld [vmem:[%s6306_s0 + $0x2c0] sm:$0xff]  ;;  %v2509_v58 = vld [vmem:[%s6306_s0 + $0x2a8] sm:$0xff] }
 0x3af   :  { %v965_v8 = vadd.f32 %v2508_v41, %v773_v56  ;;  %v964_v11 = vadd.f32 %v2509_v58, %v772_v38  ;;  %v2510_v49 = vld [vmem:[%s6306_s0 + $0x2f0] sm:$0xff]  ;;  %v7219_v28 = vld [vmem:[#allocation242_spill] sm:$0xff]  ;;  %v7220_v62 = vld [vmem:[#allocation243_spill] sm:$0xff] }
 0x3b0   :  { %v967_v1 = vadd.f32 %v2510_v49, %v775_v43  ;;  %v1161_v42 = vadd.f32 %v7219_v28, %v5656_v57  ;;  %v1160_v46 = vadd.f32 %v7220_v62, %v5661_v61  ;;  %v7221_v14 = vld [vmem:[#allocation246_spill] sm:$0xff]  ;;  %v2511_v56 = vld [vmem:[%s6306_s0 + $0x2d8] sm:$0xff]  ;;  %v7222_v38 = vld [vmem:[#allocation247_spill] sm:$0xff] }
 0x3b1   :  { %v1163_v40 = vadd.f32 %v7221_v14, %v5666_v33  ;;  %v966_v41 = vadd.f32 %v2511_v56, %v774_v9  ;;  %v1162_v58 = vadd.f32 %v7222_v38, %v5671_v32  ;;  %v7223_v63 = vld [vmem:[#allocation250_spill] sm:$0xff]  ;;  %v7224_v49 = vld [vmem:[#allocation251_spill] sm:$0xff]  ;;  %v5839_v62 = vpop.permute.xlu1 %2078  ;;  %v5841_v33 = vpop.permute.xlu0 %2076  ;;  %v7229_v9 = vld [vmem:[#allocation256_spill] sm:$0xff] }
 0x3b2   :  { %v1165_v43 = vadd.f32 %v7223_v63, %v5676_v59  ;;  %v1164_v57 = vadd.f32 %v7224_v49, %v5681_v2  ;;  %v7225_v28 = vld [vmem:[#allocation254_spill] sm:$0xff]  ;;  %7226 = vst [vmem:[#allocation38_spill] sm:$0xff] %v5839_v62  ;;  %7227 = vst [vmem:[#allocation98_spill] sm:$0xff] %v5841_v33  ;;  %v7228_v14 = vld [vmem:[#allocation255_spill] sm:$0xff]  ;;  %v1169_v56 = vadd.f32 %v7229_v9, %v5700_v36 }
 0x3b3   :  { %v1167_v61 = vadd.f32 %v7225_v28, %v5686_v45  ;;  %v1166_v48 = vadd.f32 %v7228_v14, %v5695_v25  ;;  %v7230_v32 = vld [vmem:[#allocation312_spill] sm:$0xff]  ;;  %v7231_v20 = vld [vmem:[#allocation313_spill] sm:$0xff]  ;;  %v7233_v45 = vld [vmem:[#allocation258_spill] sm:$0xff] }
 0x3b4   :  { %v1449_v38 = vadd.f32 %v7230_v32, %v1161_v42  ;;  %v1448_v59 = vadd.f32 %v7231_v20, %v1160_v46  ;;  %v7232_v63 = vld [vmem:[#allocation257_spill] sm:$0xff]  ;;  %v5855_v49 = vadd.f32 %v7233_v45, %v5710_v55  ;;  %v7234_v28 = vld [vmem:[#allocation259_spill] sm:$0xff]  ;;  %v7235_v25 = vld [vmem:[#allocation260_spill] sm:$0xff] }
 0x3b5   :  { %v5851_v2 = vadd.f32 %v7232_v63, %v5705_v35  ;;  %v5859_v33 = vadd.f32 %v7234_v28, %v5715_v21  ;;  %v5863_v14 = vadd.f32 %v7235_v25, %v5720_v37  ;;  %v7236_v36 = vld [vmem:[#allocation261_spill] sm:$0xff]  ;;  %v7237_v20 = vld [vmem:[#allocation262_spill] sm:$0xff]  ;;  %v7239_v55 = vld [vmem:[#allocation371_spill] sm:$0xff]  ;;  %v5886_v26 = vpop.permute.xlu0 %2080 }
 0x3b6   :  { %v5867_v42 = vadd.f32 %v7236_v36, %v5725_v44  ;;  %v5871_v35 = vadd.f32 %v7237_v20, %v5730_v54  ;;  %v7238_v46 = vld [vmem:[#allocation370_spill] sm:$0xff]  ;;  %v1704_v32 = vadd.f32 %v7239_v55, %v1448_v59  ;;  %v7240_v63 = vld [vmem:[#allocation263_spill] sm:$0xff]  ;;  %v7241_v45 = vld [vmem:[#allocation264_spill] sm:$0xff]  ;;  %v5884_v36 = vpop.permute.xlu1 %2082  ;;  %7245 = vst [vmem:[#allocation194_spill] sm:$0xff] %v5886_v26 }
 0x3b7   :  { %v1705_v9 = vadd.f32 %v7238_v46, %v1449_v38  ;;  %v5877_v21 = vadd.f32 %v7240_v63, %v5741_v51  ;;  %v5880_v28 = vadd.f32 %v7241_v45, %v953_v4  ;;  %v7242_v37 = vld [vmem:[#allocation314_spill] sm:$0xff]  ;;  %v7243_v62 = vld [vmem:[#allocation315_spill] sm:$0xff]  ;;  %7244 = vst [vmem:[#allocation132_spill] sm:$0xff] %v5884_v36  ;;  %v7246_v54 = vld [vmem:[#allocation265_spill] sm:$0xff] }
 0x3b8   :  { %v1451_v25 = vadd.f32 %v7242_v37, %v1163_v40  ;;  %v1450_v44 = vadd.f32 %v7243_v62, %v1162_v58  ;;  %v5889_v20 = vadd.f32 %v7246_v54, %v952_v22  ;;  %v7247_v38 = vld [vmem:[#allocation266_spill] sm:$0xff]  ;;  %v7248_v46 = vld [vmem:[#allocation267_spill] sm:$0xff]  ;;  %v7249_v55 = vld [vmem:[#allocation268_spill] sm:$0xff] }
 0x3b9   :  { %v5892_v59 = vadd.f32 %v7247_v38, %v955_v0  ;;  %v5895_v51 = vadd.f32 %v7248_v46, %v954_v18  ;;  %v5898_v4 = vadd.f32 %v7249_v55, %v957_v31  ;;  %v7250_v63 = vld [vmem:[#allocation269_spill] sm:$0xff]  ;;  %v7251_v58 = vld [vmem:[#allocation270_spill] sm:$0xff]  ;;  %v7252_v45 = vld [vmem:[#allocation372_spill] sm:$0xff] }
 0x3ba   :  { %v5901_v40 = vadd.f32 %v7250_v63, %v956_v50  ;;  %v5904_v62 = vadd.f32 %v7251_v58, %v959_v23  ;;  %v1707_v37 = vadd.f32 %v7252_v45, %v1451_v25  ;;  %v7253_v26 = vld [vmem:[#allocation373_spill] sm:$0xff]  ;;  %v7254_v54 = vld [vmem:[#allocation271_spill] sm:$0xff]  ;;  %v7255_v0 = vld [vmem:[#allocation272_spill] sm:$0xff]  ;;  %v5928_v58 = vpop.permute.xlu1 %2086  ;;  %v5930_v45 = vpop.permute.xlu0 %2084 }
 0x3bb   :  { %v1706_v22 = vadd.f32 %v7253_v26, %v1450_v44  ;;  %v5909_v36 = vadd.f32 %v7254_v54, %v958_v7  ;;  %v5912_v38 = vadd.f32 %v7255_v0, %v961_v13  ;;  %v2512_v18 = vld [vmem:[%s6306_s0 + $0x28] sm:$0xff]  ;;  %v2513_v50 = vld [vmem:[%s6306_s0 + $0x10] sm:$0xff]  ;;  %v7256_v46 = vld [vmem:[#allocation273_spill] sm:$0xff]  ;;  %7260 = vst [vmem:[#allocation195_spill] sm:$0xff] %v5930_v45 }
 0x3bc   :  { %v1897_v31 = vadd.f32 %v2512_v18, %v1705_v9  ;;  %v1896_v23 = vadd.f32 %v2513_v50, %v1704_v32  ;;  %v5921_v25 = vadd.f32 %v7256_v46, %v960_v17  ;;  %v7257_v26 = vld [vmem:[#allocation274_spill] sm:$0xff]  ;;  %v7258_v7 = vld [vmem:[#allocation316_spill] sm:$0xff]  ;;  %v7259_v13 = vld [vmem:[#allocation317_spill] sm:$0xff] }
 0x3bd   :  { %v5924_v44 = vadd.f32 %v7257_v26, %v963_v12  ;;  %v1453_v55 = vadd.f32 %v7258_v7, %v1165_v43  ;;  %v1452_v63 = vadd.f32 %v7259_v13, %v1164_v57  ;;  %v7261_v9 = vld [vmem:[#allocation275_spill] sm:$0xff]  ;;  %v7262_v0 = vld [vmem:[#allocation276_spill] sm:$0xff]  ;;  %v7263_v12 = vld [vmem:[#allocation374_spill] sm:$0xff] }
 0x3be   :  { %v5933_v54 = vadd.f32 %v7261_v9, %v962_v16  ;;  %v5936_v18 = vadd.f32 %v7262_v0, %v965_v8  ;;  %v2121_v17 = vadd.f32 %v5387_v30, %v1897_v31  ;;  %v2120_v32 = vadd.f32 %v5389_v53, %v1896_v23  ;;  %v7264_v46 = vld [vmem:[#allocation375_spill] sm:$0xff]  ;;  %v2514_v57 = vld [vmem:[%s6306_s0 + $0x58] sm:$0xff]  ;;  %v2515_v16 = vld [vmem:[%s6306_s0 + $0x40] sm:$0xff] }
 0x3bf   :  { %v1709_v50 = vadd.f32 %v7263_v12, %v1453_v55  ;;  %v1708_v43 = vadd.f32 %v7264_v46, %v1452_v63  ;;  %v1899_v26 = vadd.f32 %v2514_v57, %v1707_v37  ;;  %v1898_v7 = vadd.f32 %v2515_v16, %v1706_v22  ;;  %v7265_v8 = vld [vmem:[#allocation277_spill] sm:$0xff]  ;;  %v7266_v30 = vld [vmem:[#allocation278_spill] sm:$0xff]  ;;  %v7267_v53 = vld [vmem:[#allocation279_spill] sm:$0xff]  ;;  %v2187_v22 = vpop.permute.xlu1 %2186  ;;  %v2185_v16 = vpop.permute.xlu0 %2184 }
 0x3c0   :  { %v5949_v13 = vadd.f32 %v7265_v8, %v964_v11  ;;  %v5952_v31 = vadd.f32 %v7266_v30, %v967_v1  ;;  %v5955_v23 = vadd.f32 %v7267_v53, %v966_v41  ;;  %v7268_v55 = vld [vmem:[#allocation318_spill] sm:$0xff]  ;;  %v7269_v9 = vld [vmem:[#allocation319_spill] sm:$0xff]  ;;  %v7270_v12 = vld [vmem:[#allocation320_spill] sm:$0xff]  ;;  %v2313_v11 = vmul.f32 %v2121_v17, %v2121_v17 }
 0x3c1   :  { %v1455_v63 = vadd.f32 %v7268_v55, %v1167_v61  ;;  %v1454_v0 = vadd.f32 %v7269_v9, %v1166_v48  ;;  %v1457_v37 = vadd.f32 %v7270_v12, %v1169_v56  ;;  %v2123_v46 = vadd.f32 %v5393_v27, %v1899_v26  ;;  %v7271_v41 = vld [vmem:[#allocation376_spill] sm:$0xff]  ;;  %v7272_v45 = vld [vmem:[#allocation377_spill] sm:$0xff]  ;;  %v2516_v48 = vld [vmem:[%s6306_s0 + $0x88] sm:$0xff] }
 0x3c2   :  { %v2122_v57 = vadd.f32 %v5395_v19, %v1898_v7  ;;  %v2312_v8 = vmul.f32 %v2120_v32, %v2120_v32  ;;  %v2281_v1 = vadd.f32 %v2187_v22, %v4971_v6  ;;  %v2280_v30 = vadd.f32 %v2185_v16, %v4974_v3  ;;  %v2517_v27 = vld [vmem:[%s6306_s0 + $0x70] sm:$0xff]  ;;  %v7273_v17 = vld [vmem:[#allocation321_spill] sm:$0xff]  ;;  %v7274_v22 = vld [vmem:[#allocation378_spill] sm:$0xff] }
 0x3c3   :  { %v1711_v53 = vadd.f32 %v7271_v41, %v1455_v63  ;;  %v1710_v61 = vadd.f32 %v7272_v45, %v1454_v0  ;;  %v1901_v56 = vadd.f32 %v2516_v48, %v1709_v50  ;;  %v1900_v19 = vadd.f32 %v2517_v27, %v1708_v43  ;;  %v2191_v63 = vpop.permute.xlu1 %2190  ;;  %v2189_v9 = vpop.permute.xlu0 %2188 }
 0x3c4   :  { %v1456_v32 = vadd.f32 %v7273_v17, %v5851_v2  ;;  %v2345_v6 = vsub.f32 %v2313_v11, %v2281_v1  ;;  %v2344_v3 = vsub.f32 %v2312_v8, %v2280_v30  ;;  %v2315_v26 = vmul.f32 %v2123_v46, %v2123_v46  ;;  %v7275_v2 = vld [vmem:[#allocation379_spill] sm:$0xff]  ;;  %v2518_v46 = vld [vmem:[%s6306_s0 + $0xb8] sm:$0xff]  ;;  %v7276_v11 = vld [vmem:[#allocation322_spill] sm:$0xff] }
 0x3c5   :  { %v2314_v7 = vmul.f32 %v2122_v57, %v2122_v57  ;;  %v2125_v45 = vadd.f32 %v5399_v47, %v1901_v56  ;;  %v2124_v55 = vadd.f32 %v5401_v10, %v1900_v19  ;;  %v2283_v12 = vadd.f32 %v2191_v63, %v5011_v52  ;;  %v2519_v47 = vld [vmem:[%s6306_s0 + $0xa0] sm:$0xff]  ;;  %v7277_v52 = vld [vmem:[#allocation323_spill] sm:$0xff] }
 0x3c6   :  { %v2377_v50 = vmul.f32 0.5, %v2345_v6  ;;  %v2376_v0 = vmul.f32 0.5, %v2344_v3  ;;  %v2282_v43 = vadd.f32 %v2189_v9, %v5014_v5  ;;  %v1713_v16 = vadd.f32 %v7274_v22, %v1457_v37  ;;  %v7278_v19 = vld [vmem:[#allocation14_spill] sm:$0xff]  ;;  %v7280_v3 = vld [vmem:[#allocation380_spill] sm:$0xff]  ;;  %v7281_v9 = vld [vmem:[#allocation381_spill] sm:$0xff] }
 0x3c7   :  { %v1712_v41 = vadd.f32 %v7275_v2, %v1456_v32  ;;  %v1903_v57 = vadd.f32 %v2518_v46, %v1711_v53  ;;  %v1902_v10 = vadd.f32 %v2519_v47, %v1710_v61  ;;  %v1459_v8 = vadd.f32 %v7276_v11, %v5855_v49  ;;  %v2195_v48 = vpop.permute.xlu1 %2194  ;;  %v7279_v32 = vld [vmem:[#allocation78_spill] sm:$0xff] }
 0x3c8   :  { %v1458_v5 = vadd.f32 %v7277_v52, %v5859_v33  ;;  %2410 = vst.msk [vmem:[%s6307_s1 + $0x8] sm:$0xff] %vm2408_vm0, %v2377_v50  ;;  %2409 = vst.msk [vmem:[%s6307_s1] sm:$0xff] %vm2408_vm0, %v2376_v0  ;;  %v2347_v37 = vsub.f32 %v2315_v26, %v2283_v12  ;;  %v2346_v1 = vsub.f32 %v2314_v7, %v2282_v43  ;;  %v2193_v33 = vpop.permute.xlu0 %2192  ;;  %v2520_v26 = vld [vmem:[%s6306_s0 + $0xe8] sm:$0xff]  ;;  %v7283_v0 = vld [vmem:[#allocation325_spill] sm:$0xff] }
 0x3c9   :  { %v2317_v30 = vmul.f32 %v2125_v45, %v2125_v45  ;;  %v2316_v53 = vmul.f32 %v2124_v55, %v2124_v55  ;;  %v2127_v61 = vadd.f32 %v5405_v60, %v1903_v57  ;;  %v2126_v49 = vadd.f32 %v5407_v34, %v1902_v10  ;;  %v2521_v60 = vld [vmem:[%s6306_s0 + $0xd0] sm:$0xff] }
 0x3ca   :  { %v2379_v56 = vmul.f32 0.5, %v2347_v37  ;;  %v2378_v27 = vmul.f32 0.5, %v2346_v1  ;;  %v2285_v17 = vadd.f32 %v2195_v48, %v7278_v19  ;;  %v2284_v6 = vadd.f32 %v2193_v33, %v7279_v32  ;;  %v7282_v45 = vld [vmem:[#allocation324_spill] sm:$0xff]  ;;  %v7288_v1 = vld [vmem:[#allocation382_spill] sm:$0xff]  ;;  %v7289_v33 = vld [vmem:[#allocation383_spill] sm:$0xff] }
 0x3cb   :  { %v1715_v63 = vadd.f32 %v7280_v3, %v1459_v8  ;;  %v1714_v50 = vadd.f32 %v7281_v9, %v1458_v5  ;;  %v1905_v7 = vadd.f32 %v2520_v26, %v1713_v16  ;;  %v1904_v34 = vadd.f32 %v2521_v60, %v1712_v41  ;;  %v7284_v41 = vld [vmem:[#allocation28_spill] sm:$0xff]  ;;  %v2199_v47 = vpop.permute.xlu1 %2198  ;;  %v7286_v8 = vld [vmem:[#allocation15_spill] sm:$0xff] }
 0x3cc   :  { %v1461_v55 = vadd.f32 %v7282_v45, %v5863_v14  ;;  %v1460_v12 = vadd.f32 %v7283_v0, %v5867_v42  ;;  %2412 = vst.msk [vmem:[%s6307_s1 + $0x18] sm:$0xff] %vm2408_vm0, %v2379_v56  ;;  %2411 = vst.msk [vmem:[%s6307_s1 + $0x10] sm:$0xff] %vm2408_vm0, %v2378_v27  ;;  %v2349_v43 = vsub.f32 %v2317_v30, %v2285_v17  ;;  %v7285_v14 = vld [vmem:[#allocation92_spill] sm:$0xff]  ;;  %v2197_v42 = vpop.permute.xlu0 %2196  ;;  %v7287_v5 = vld [vmem:[#allocation79_spill] sm:$0xff] }
 0x3cd   :  { %v2348_v22 = vsub.f32 %v2316_v53, %v2284_v6  ;;  %v2319_v16 = vmul.f32 %v2127_v61, %v2127_v61  ;;  %v2318_v2 = vmul.f32 %v2126_v49, %v2126_v49  ;;  %v2129_v46 = vadd.f32 %v7284_v41, %v1905_v7  ;;  %v2522_v30 = vld [vmem:[%s6306_s0 + $0x118] sm:$0xff]  ;;  %v2523_v61 = vld [vmem:[%s6306_s0 + $0x100] sm:$0xff]  ;;  %v7291_v17 = vld [vmem:[#allocation327_spill] sm:$0xff] }
 0x3ce   :  { %v2128_v57 = vadd.f32 %v7285_v14, %v1904_v34  ;;  %v2381_v10 = vmul.f32 0.5, %v2349_v43  ;;  %v2287_v52 = vadd.f32 %v2199_v47, %v7286_v8  ;;  %v2286_v37 = vadd.f32 %v2197_v42, %v7287_v5  ;;  %v7290_v27 = vld [vmem:[#allocation326_spill] sm:$0xff]  ;;  %v7298_v42 = vld [vmem:[#allocation328_spill] sm:$0xff] }
 0x3cf   :  { %v2380_v11 = vmul.f32 0.5, %v2348_v22  ;;  %v1717_v48 = vadd.f32 %v7288_v1, %v1461_v55  ;;  %v1716_v56 = vadd.f32 %v7289_v33, %v1460_v12  ;;  %v1907_v53 = vadd.f32 %v2522_v30, %v1715_v63  ;;  %v2203_v60 = vpop.permute.xlu1 %2202  ;;  %v7294_v55 = vld [vmem:[#allocation16_spill] sm:$0xff]  ;;  %v7296_v22 = vld [vmem:[#allocation385_spill] sm:$0xff]  ;;  %v7297_v14 = vld [vmem:[#allocation386_spill] sm:$0xff] }
 0x3d0   :  { %v1906_v49 = vadd.f32 %v2523_v61, %v1714_v50  ;;  %v1463_v19 = vadd.f32 %v7290_v27, %v5871_v35  ;;  %v1462_v32 = vadd.f32 %v7291_v17, %v5877_v21  ;;  %2414 = vst.msk [vmem:[%s6307_s1 + $0x28] sm:$0xff] %vm2408_vm0, %v2381_v10  ;;  %v2351_v6 = vsub.f32 %v2319_v16, %v2287_v52  ;;  %v7292_v50 = vld [vmem:[#allocation29_spill] sm:$0xff]  ;;  %v2201_v21 = vpop.permute.xlu0 %2200  ;;  %v7295_v12 = vld [vmem:[#allocation80_spill] sm:$0xff]  ;;  %v2524_v16 = vld [vmem:[%s6306_s0 + $0x148] sm:$0xff] }
 0x3d1   :  { %2413 = vst.msk [vmem:[%s6307_s1 + $0x20] sm:$0xff] %vm2408_vm0, %v2380_v11  ;;  %v2350_v3 = vsub.f32 %v2318_v2, %v2286_v37  ;;  %v2321_v63 = vmul.f32 %v2129_v46, %v2129_v46  ;;  %v2320_v9 = vmul.f32 %v2128_v57, %v2128_v57  ;;  %v2131_v26 = vadd.f32 %v7292_v50, %v1907_v53  ;;  %v7293_v35 = vld [vmem:[#allocation93_spill] sm:$0xff]  ;;  %v2525_v46 = vld [vmem:[%s6306_s0 + $0x130] sm:$0xff] }
 0x3d2   :  { %v2130_v7 = vadd.f32 %v7293_v35, %v1906_v49  ;;  %v2383_v34 = vmul.f32 0.5, %v2351_v6  ;;  %v2289_v0 = vadd.f32 %v2203_v60, %v7294_v55  ;;  %v2288_v43 = vadd.f32 %v2201_v21, %v7295_v12  ;;  %v7299_v11 = vld [vmem:[#allocation329_spill] sm:$0xff]  ;;  %v7307_v21 = vld [vmem:[#allocation331_spill] sm:$0xff] }
 0x3d3   :  { %v2382_v45 = vmul.f32 0.5, %v2350_v3  ;;  %v1719_v41 = vadd.f32 %v7296_v22, %v1463_v19  ;;  %v1718_v47 = vadd.f32 %v7297_v14, %v1462_v32  ;;  %v1909_v2 = vadd.f32 %v2524_v16, %v1717_v48  ;;  %v7300_v48 = vld [vmem:[#allocation30_spill] sm:$0xff]  ;;  %v2207_v30 = vpop.permute.xlu1 %2206  ;;  %v7302_v49 = vld [vmem:[#allocation17_spill] sm:$0xff] }
 0x3d4   :  { %v1908_v57 = vadd.f32 %v2525_v46, %v1716_v56  ;;  %v1465_v10 = vadd.f32 %v7298_v42, %v5880_v28  ;;  %v1464_v8 = vadd.f32 %v7299_v11, %v5889_v20  ;;  %2416 = vst.msk [vmem:[%s6307_s1 + $0x38] sm:$0xff] %vm2408_vm0, %v2383_v34  ;;  %v2353_v52 = vsub.f32 %v2321_v63, %v2289_v0  ;;  %v7301_v28 = vld [vmem:[#allocation94_spill] sm:$0xff]  ;;  %v2205_v20 = vpop.permute.xlu0 %2204  ;;  %v7303_v19 = vld [vmem:[#allocation81_spill] sm:$0xff] }
 0x3d5   :  { %2415 = vst.msk [vmem:[%s6307_s1 + $0x30] sm:$0xff] %vm2408_vm0, %v2382_v45  ;;  %v2352_v5 = vsub.f32 %v2320_v9, %v2288_v43  ;;  %v2323_v37 = vmul.f32 %v2131_v26, %v2131_v26  ;;  %v2322_v1 = vmul.f32 %v2130_v7, %v2130_v7  ;;  %v2133_v33 = vadd.f32 %v7300_v48, %v1909_v2  ;;  %v7304_v32 = vld [vmem:[#allocation389_spill] sm:$0xff]  ;;  %v7305_v3 = vld [vmem:[#allocation390_spill] sm:$0xff] }
 0x3d6   :  { %v2132_v56 = vadd.f32 %v7301_v28, %v1908_v57  ;;  %v2385_v53 = vmul.f32 0.5, %v2353_v52  ;;  %v2291_v27 = vadd.f32 %v2207_v30, %v7302_v49  ;;  %v2290_v17 = vadd.f32 %v2205_v20, %v7303_v19  ;;  %v2526_v63 = vld [vmem:[%s6306_s0 + $0x178] sm:$0xff]  ;;  %v2527_v26 = vld [vmem:[%s6306_s0 + $0x160] sm:$0xff] }
 0x3d7   :  { %v2384_v61 = vmul.f32 0.5, %v2352_v5  ;;  %v1721_v6 = vadd.f32 %v7304_v32, %v1465_v10  ;;  %v1720_v50 = vadd.f32 %v7305_v3, %v1464_v8  ;;  %v1911_v9 = vadd.f32 %v2526_v63, %v1719_v41  ;;  %v7306_v7 = vld [vmem:[#allocation330_spill] sm:$0xff]  ;;  %v2211_v14 = vpop.permute.xlu1 %2210  ;;  %v7312_v10 = vld [vmem:[#allocation393_spill] sm:$0xff]  ;;  %v2528_v5 = vld [vmem:[%s6306_s0 + $0x1a8] sm:$0xff] }
 0x3d8   :  { %v1910_v35 = vadd.f32 %v2527_v26, %v1718_v47  ;;  %v1467_v60 = vadd.f32 %v7306_v7, %v5892_v59  ;;  %v1466_v34 = vadd.f32 %v7307_v21, %v5895_v51  ;;  %2418 = vst.msk [vmem:[%s6307_s1 + $0x48] sm:$0xff] %vm2408_vm0, %v2385_v53  ;;  %v2355_v45 = vsub.f32 %v2323_v37, %v2291_v27  ;;  %v7308_v43 = vld [vmem:[#allocation130_spill] sm:$0xff]  ;;  %v7309_v59 = vld [vmem:[#allocation131_spill] sm:$0xff]  ;;  %v2209_v51 = vpop.permute.xlu0 %2208  ;;  %v7319_v26 = vld [vmem:[#allocation397_spill] sm:$0xff] }
 0x3d9   :  { %2417 = vst.msk [vmem:[%s6307_s1 + $0x40] sm:$0xff] %vm2408_vm0, %v2384_v61  ;;  %v2354_v55 = vsub.f32 %v2322_v1, %v2290_v17  ;;  %v2325_v0 = vmul.f32 %v2133_v33, %v2133_v33  ;;  %v2324_v12 = vmul.f32 %v2132_v56, %v2132_v56  ;;  %v2135_v22 = vadd.f32 %v7308_v43, %v1911_v9  ;;  %v7310_v2 = vld [vmem:[#allocation18_spill] sm:$0xff]  ;;  %v2529_v1 = vld [vmem:[%s6306_s0 + $0x190] sm:$0xff]  ;;  %v7315_v56 = vld [vmem:[#allocation333_spill] sm:$0xff] }
 0x3da   :  { %v2134_v41 = vadd.f32 %v7309_v59, %v1910_v35  ;;  %v2387_v47 = vmul.f32 0.5, %v2355_v45  ;;  %v2293_v46 = vadd.f32 %v2211_v14, %v7310_v2  ;;  %v7311_v57 = vld [vmem:[#allocation82_spill] sm:$0xff]  ;;  %v1723_v11 = vadd.f32 %v7312_v10, %v1467_v60  ;;  %v7314_v33 = vld [vmem:[#allocation332_spill] sm:$0xff]  ;;  %v7317_v3 = vld [vmem:[#allocation19_spill] sm:$0xff] }
 0x3db   :  { %v2386_v16 = vmul.f32 0.5, %v2354_v55  ;;  %v2292_v42 = vadd.f32 %v2209_v51, %v7311_v57  ;;  %v7313_v8 = vld [vmem:[#allocation394_spill] sm:$0xff]  ;;  %v1913_v37 = vadd.f32 %v2528_v5, %v1721_v6  ;;  %v1912_v48 = vadd.f32 %v2529_v1, %v1720_v50  ;;  %v2215_v17 = vpop.permute.xlu1 %2214  ;;  %v7318_v63 = vld [vmem:[#allocation83_spill] sm:$0xff]  ;;  %v2530_v21 = vld [vmem:[%s6306_s0 + $0x1d8] sm:$0xff] }
 0x3dc   :  { %v1722_v52 = vadd.f32 %v7313_v8, %v1466_v34  ;;  %v1469_v28 = vadd.f32 %v7314_v33, %v5898_v4  ;;  %v1468_v30 = vadd.f32 %v7315_v56, %v5901_v40  ;;  %2420 = vst.msk [vmem:[%s6307_s1 + $0x58] sm:$0xff] %vm2408_vm0, %v2387_v47  ;;  %v2357_v20 = vsub.f32 %v2325_v0, %v2293_v46  ;;  %v7316_v4 = vld [vmem:[#allocation33_spill] sm:$0xff]  ;;  %v2213_v40 = vpop.permute.xlu0 %2212  ;;  %v7320_v7 = vld [vmem:[#allocation398_spill] sm:$0xff]  ;;  %v7323_v51 = vld [vmem:[#allocation95_spill] sm:$0xff] }
 0x3dd   :  { %2419 = vst.msk [vmem:[%s6307_s1 + $0x50] sm:$0xff] %vm2408_vm0, %v2386_v16  ;;  %v2356_v53 = vsub.f32 %v2324_v12, %v2292_v42  ;;  %v2327_v61 = vmul.f32 %v2135_v22, %v2135_v22  ;;  %v2326_v49 = vmul.f32 %v2134_v41, %v2134_v41  ;;  %v2137_v27 = vadd.f32 %v5602_v15, %v1913_v37  ;;  %v2531_v15 = vld [vmem:[%s6306_s0 + $0x1c0] sm:$0xff]  ;;  %v7322_v12 = vld [vmem:[#allocation335_spill] sm:$0xff]  ;;  %v7324_v57 = vld [vmem:[#allocation20_spill] sm:$0xff] }
 0x3de   :  { %v2136_v19 = vadd.f32 %v7316_v4, %v1912_v48  ;;  %v2389_v32 = vmul.f32 0.5, %v2357_v20  ;;  %v2295_v50 = vadd.f32 %v2215_v17, %v7317_v3  ;;  %v2294_v9 = vadd.f32 %v2213_v40, %v7318_v63  ;;  %v7321_v55 = vld [vmem:[#allocation334_spill] sm:$0xff]  ;;  %v7325_v10 = vld [vmem:[#allocation84_spill] sm:$0xff]  ;;  %v7326_v8 = vld [vmem:[#allocation401_spill] sm:$0xff] }
 0x3df   :  { %v2388_v6 = vmul.f32 0.5, %v2356_v53  ;;  %v1725_v35 = vadd.f32 %v7319_v26, %v1469_v28  ;;  %v1724_v60 = vadd.f32 %v7320_v7, %v1468_v30  ;;  %v1915_v34 = vadd.f32 %v2530_v21, %v1723_v11  ;;  %v2219_v16 = vpop.permute.xlu1 %2218  ;;  %v7327_v5 = vld [vmem:[#allocation402_spill] sm:$0xff]  ;;  %v2532_v1 = vld [vmem:[%s6306_s0 + $0x208] sm:$0xff]  ;;  %v7328_v28 = vld [vmem:[#allocation336_spill] sm:$0xff] }
 0x3e0   :  { %v1914_v45 = vadd.f32 %v2531_v15, %v1722_v52  ;;  %v1471_v0 = vadd.f32 %v7321_v55, %v5904_v62  ;;  %v1470_v43 = vadd.f32 %v7322_v12, %v5909_v36  ;;  %2422 = vst.msk [vmem:[%s6307_s1 + $0x68] sm:$0xff] %vm2408_vm0, %v2389_v32  ;;  %v2359_v22 = vsub.f32 %v2327_v61, %v2295_v50  ;;  %v2217_v36 = vpop.permute.xlu0 %2216  ;;  %v7329_v30 = vld [vmem:[#allocation337_spill] sm:$0xff]  ;;  %v7332_v63 = vld [vmem:[#allocation3_spill] sm:$0xff]  ;;  %v7334_v21 = vld [vmem:[#allocation338_spill] sm:$0xff] }
 0x3e1   :  { %2421 = vst.msk [vmem:[%s6307_s1 + $0x60] sm:$0xff] %vm2408_vm0, %v2388_v6  ;;  %v2358_v59 = vsub.f32 %v2326_v49, %v2294_v9  ;;  %v2329_v41 = vmul.f32 %v2137_v27, %v2137_v27  ;;  %v2328_v14 = vmul.f32 %v2136_v19, %v2136_v19  ;;  %v2139_v47 = vadd.f32 %v7323_v51, %v1915_v34  ;;  %v7330_v32 = vld [vmem:[#allocation21_spill] sm:$0xff]  ;;  %v7333_v26 = vld [vmem:[#allocation67_spill] sm:$0xff] }
 0x3e2   :  { %v2138_v62 = vadd.f32 %v5642_v24, %v1914_v45  ;;  %v2391_v2 = vmul.f32 0.5, %v2359_v22  ;;  %v2297_v42 = vadd.f32 %v2219_v16, %v7324_v57  ;;  %v2296_v11 = vadd.f32 %v2217_v36, %v7325_v10  ;;  %v2533_v24 = vld [vmem:[%s6306_s0 + $0x1f0] sm:$0xff]  ;;  %v7331_v3 = vld [vmem:[#allocation85_spill] sm:$0xff]  ;;  %v7335_v15 = vld [vmem:[#allocation339_spill] sm:$0xff] }
 0x3e3   :  { %v2390_v46 = vmul.f32 0.5, %v2358_v59  ;;  %v1727_v52 = vadd.f32 %v7326_v8, %v1471_v0  ;;  %v1726_v37 = vadd.f32 %v7327_v5, %v1470_v43  ;;  %v1917_v48 = vadd.f32 %v2532_v1, %v1725_v35  ;;  %v2223_v19 = vpop.permute.xlu1 %2222  ;;  %v2534_v7 = vld [vmem:[%s6306_s0 + $0x238] sm:$0xff]  ;;  %v7336_v22 = vld [vmem:[#allocation34_spill] sm:$0xff] }
 0x3e4   :  { %v1916_v33 = vadd.f32 %v2533_v24, %v1724_v60  ;;  %v1473_v56 = vadd.f32 %v7328_v28, %v5912_v38  ;;  %v1472_v20 = vadd.f32 %v7329_v30, %v5921_v25  ;;  %2424 = vst.msk [vmem:[%s6307_s1 + $0x78] sm:$0xff] %vm2408_vm0, %v2391_v2  ;;  %v2361_v53 = vsub.f32 %v2329_v41, %v2297_v42  ;;  %v2221_v25 = vpop.permute.xlu0 %2220  ;;  %v7339_v36 = vld [vmem:[#allocation86_spill] sm:$0xff]  ;;  %v7341_v42 = vld [vmem:[#allocation71_spill] sm:$0xff] }
 0x3e5   :  { %2423 = vst.msk [vmem:[%s6307_s1 + $0x70] sm:$0xff] %vm2408_vm0, %v2390_v46  ;;  %v2360_v61 = vsub.f32 %v2328_v14, %v2296_v11  ;;  %v2331_v49 = vmul.f32 %v2139_v47, %v2139_v47  ;;  %v2330_v27 = vmul.f32 %v2138_v62, %v2138_v62  ;;  %v2141_v4 = vadd.f32 %v5688_v29, %v1917_v48  ;;  %v2535_v29 = vld [vmem:[%s6306_s0 + $0x220] sm:$0xff]  ;;  %v7340_v46 = vld [vmem:[#allocation7_spill] sm:$0xff]  ;;  %v7343_v48 = vld [vmem:[#allocation341_spill] sm:$0xff] }
 0x3e6   :  { %v2140_v38 = vadd.f32 %v5690_v39, %v1916_v33  ;;  %v2393_v17 = vmul.f32 0.5, %v2361_v53  ;;  %v2299_v6 = vadd.f32 %v2223_v19, %v7330_v32  ;;  %v2298_v50 = vadd.f32 %v2221_v25, %v7331_v3  ;;  %v7338_v62 = vld [vmem:[#allocation22_spill] sm:$0xff]  ;;  %v2536_v11 = vld [vmem:[%s6306_s0 + $0x268] sm:$0xff] }
 0x3e7   :  { %v2392_v40 = vmul.f32 0.5, %v2360_v61  ;;  %v1729_v9 = vadd.f32 %v7332_v63, %v1473_v56  ;;  %v1728_v35 = vadd.f32 %v7333_v26, %v1472_v20  ;;  %v1919_v60 = vadd.f32 %v2534_v7, %v1727_v52  ;;  %v2227_v14 = vpop.permute.xlu1 %2226  ;;  %v2537_v52 = vld [vmem:[%s6306_s0 + $0x250] sm:$0xff]  ;;  %v7344_v20 = vld [vmem:[#allocation37_spill] sm:$0xff]  ;;  %v7347_v25 = vld [vmem:[#allocation87_spill] sm:$0xff] }
 0x3e8   :  { %v1918_v39 = vadd.f32 %v2535_v29, %v1726_v37  ;;  %v1475_v34 = vadd.f32 %v7334_v21, %v5924_v44  ;;  %v1474_v45 = vadd.f32 %v7335_v15, %v5933_v54  ;;  %2426 = vst.msk [vmem:[%s6307_s1 + $0x88] sm:$0xff] %vm2408_vm0, %v2393_v17  ;;  %v2363_v55 = vsub.f32 %v2331_v49, %v2299_v6  ;;  %v7337_v44 = vld [vmem:[#allocation96_spill] sm:$0xff]  ;;  %v2225_v54 = vpop.permute.xlu0 %2224 }
 0x3e9   :  { %2425 = vst.msk [vmem:[%s6307_s1 + $0x80] sm:$0xff] %vm2408_vm0, %v2392_v40  ;;  %v2362_v0 = vsub.f32 %v2330_v27, %v2298_v50  ;;  %v2333_v12 = vmul.f32 %v2141_v4, %v2141_v4  ;;  %v2332_v43 = vmul.f32 %v2140_v38, %v2140_v38  ;;  %v2143_v59 = vadd.f32 %v7336_v22, %v1919_v60  ;;  %v7342_v37 = vld [vmem:[#allocation340_spill] sm:$0xff]  ;;  %v7346_v38 = vld [vmem:[#allocation23_spill] sm:$0xff]  ;;  %v2538_v50 = vld [vmem:[%s6306_s0 + $0x298] sm:$0xff] }
 0x3ea   :  { %v2142_v41 = vadd.f32 %v7337_v44, %v1918_v39  ;;  %v2395_v51 = vmul.f32 0.5, %v2363_v55  ;;  %v2301_v16 = vadd.f32 %v2227_v14, %v7338_v62  ;;  %v2300_v2 = vadd.f32 %v2225_v54, %v7339_v36  ;;  %v7348_v40 = vld [vmem:[#allocation12_spill] sm:$0xff]  ;;  %v7351_v60 = vld [vmem:[#allocation343_spill] sm:$0xff]  ;;  %v7356_v54 = vld [vmem:[#allocation13_spill] sm:$0xff] }
 0x3eb   :  { %v2394_v47 = vmul.f32 0.5, %v2362_v0  ;;  %v1731_v57 = vadd.f32 %v7340_v46, %v1475_v34  ;;  %v1730_v10 = vadd.f32 %v7341_v42, %v1474_v45  ;;  %v1921_v8 = vadd.f32 %v2536_v11, %v1729_v9  ;;  %v2231_v49 = vpop.permute.xlu1 %2230  ;;  %v7349_v6 = vld [vmem:[#allocation76_spill] sm:$0xff]  ;;  %v2539_v9 = vld [vmem:[%s6306_s0 + $0x280] sm:$0xff] }
 0x3ec   :  { %v1920_v5 = vadd.f32 %v2537_v52, %v1728_v35  ;;  %v1477_v1 = vadd.f32 %v7342_v37, %v5936_v18  ;;  %v1476_v24 = vadd.f32 %v7343_v48, %v5949_v13  ;;  %2428 = vst.msk [vmem:[%s6307_s1 + $0x98] sm:$0xff] %vm2408_vm0, %v2395_v51  ;;  %v2365_v33 = vsub.f32 %v2333_v12, %v2301_v16  ;;  %v7345_v18 = vld [vmem:[#allocation97_spill] sm:$0xff]  ;;  %v2229_v13 = vpop.permute.xlu0 %2228  ;;  %v7350_v35 = vld [vmem:[#allocation342_spill] sm:$0xff]  ;;  %v2540_v16 = vld [vmem:[%s6306_s0 + $0x2c8] sm:$0xff] }
 0x3ed   :  { %2427 = vst.msk [vmem:[%s6307_s1 + $0x90] sm:$0xff] %vm2408_vm0, %v2394_v47  ;;  %v2364_v28 = vsub.f32 %v2332_v43, %v2300_v2  ;;  %v2335_v56 = vmul.f32 %v2143_v59, %v2143_v59  ;;  %v2334_v30 = vmul.f32 %v2142_v41, %v2142_v41  ;;  %v2145_v53 = vadd.f32 %v7344_v20, %v1921_v8  ;;  %v7352_v45 = vld [vmem:[#allocation38_spill] sm:$0xff]  ;;  %v7354_v59 = vld [vmem:[#allocation24_spill] sm:$0xff]  ;;  %v7357_v47 = vld [vmem:[#allocation77_spill] sm:$0xff] }
 0x3ee   :  { %v2144_v61 = vadd.f32 %v7345_v18, %v1920_v5  ;;  %v2397_v27 = vmul.f32 0.5, %v2365_v33  ;;  %v2303_v19 = vadd.f32 %v2231_v49, %v7346_v38  ;;  %v2302_v17 = vadd.f32 %v2229_v13, %v7347_v25  ;;  %v7355_v41 = vld [vmem:[#allocation88_spill] sm:$0xff]  ;;  %v7359_v5 = vld [vmem:[#allocation194_spill] sm:$0xff]  ;;  %v7362_v25 = vld [vmem:[#allocation195_spill] sm:$0xff] }
 0x3ef   :  { %v2396_v4 = vmul.f32 0.5, %v2364_v28  ;;  %v1733_v32 = vadd.f32 %v7348_v40, %v1477_v1  ;;  %v1732_v3 = vadd.f32 %v7349_v6, %v1476_v24  ;;  %v1923_v63 = vadd.f32 %v2538_v50, %v1731_v57  ;;  %v2235_v12 = vpop.permute.xlu1 %2234  ;;  %v2541_v2 = vld [vmem:[%s6306_s0 + $0x2b0] sm:$0xff]  ;;  %v7360_v28 = vld [vmem:[#allocation25_spill] sm:$0xff]  ;;  %v7363_v50 = vld [vmem:[#allocation26_spill] sm:$0xff] }
 0x3f0   :  { %v1922_v26 = vadd.f32 %v2539_v9, %v1730_v10  ;;  %v1479_v7 = vadd.f32 %v7350_v35, %v5952_v31  ;;  %v1478_v29 = vadd.f32 %v7351_v60, %v5955_v23  ;;  %2430 = vst.msk [vmem:[%s6307_s1 + $0xa8] sm:$0xff] %vm2408_vm0, %v2397_v27  ;;  %v2367_v39 = vsub.f32 %v2335_v56, %v2303_v19  ;;  %v7353_v31 = vld [vmem:[#allocation98_spill] sm:$0xff]  ;;  %v2233_v23 = vpop.permute.xlu0 %2232  ;;  %v7358_v8 = vld [vmem:[#allocation132_spill] sm:$0xff] }
 0x3f1   :  { %2429 = vst.msk [vmem:[%s6307_s1 + $0xa0] sm:$0xff] %vm2408_vm0, %v2396_v4  ;;  %v2366_v21 = vsub.f32 %v2334_v30, %v2302_v17  ;;  %v2337_v34 = vmul.f32 %v2145_v53, %v2145_v53  ;;  %v2336_v15 = vmul.f32 %v2144_v61, %v2144_v61  ;;  %v2147_v55 = vadd.f32 %v7352_v45, %v1923_v63  ;;  %v7361_v30 = vld [vmem:[#allocation89_spill] sm:$0xff]  ;;  %v2543_v61 = vld [vmem:[%s6306_s0 + $0x2e0] sm:$0xff] }
 0x3f2   :  { %v2146_v0 = vadd.f32 %v7353_v31, %v1922_v26  ;;  %v2399_v43 = vmul.f32 0.5, %v2367_v39  ;;  %v2305_v44 = vadd.f32 %v2235_v12, %v7354_v59  ;;  %v2304_v14 = vadd.f32 %v2233_v23, %v7355_v41  ;;  %v2542_v53 = vld [vmem:[%s6306_s0 + $0x2f8] sm:$0xff]  ;;  %v7364_v9 = vld [vmem:[#allocation90_spill] sm:$0xff] }
 0x3f3   :  { %v2398_v22 = vmul.f32 0.5, %v2366_v21  ;;  %v1735_v51 = vadd.f32 %v7356_v54, %v1479_v7  ;;  %v1734_v62 = vadd.f32 %v7357_v47, %v1478_v29  ;;  %v1925_v36 = vadd.f32 %v2540_v16, %v1733_v32  ;;  %v2239_v1 = vpop.permute.xlu1 %2238 }
 0x3f4   :  { %v1924_v46 = vadd.f32 %v2541_v2, %v1732_v3  ;;  %2432 = vst.msk [vmem:[%s6307_s1 + $0xb8] sm:$0xff] %vm2408_vm0, %v2399_v43  ;;  %v2369_v57 = vsub.f32 %v2337_v34, %v2305_v44  ;;  %v2368_v42 = vsub.f32 %v2336_v15, %v2304_v14  ;;  %v2339_v10 = vmul.f32 %v2147_v55, %v2147_v55  ;;  %v2237_v48 = vpop.permute.xlu0 %2236  ;;  %v7365_v15 = vld [vmem:[#allocation27_spill] sm:$0xff] }
 0x3f5   :  { %2431 = vst.msk [vmem:[%s6307_s1 + $0xb0] sm:$0xff] %vm2408_vm0, %v2398_v22  ;;  %v2338_v11 = vmul.f32 %v2146_v0, %v2146_v0  ;;  %v2149_v52 = vadd.f32 %v7358_v8, %v1925_v36  ;;  %v2307_v56 = vadd.f32 %v2239_v1, %v7360_v28  ;;  %v2306_v20 = vadd.f32 %v2237_v48, %v7361_v30  ;;  %v7366_v55 = vld [vmem:[#allocation91_spill] sm:$0xff] }
 0x3f6   :  { %v2148_v37 = vadd.f32 %v7359_v5, %v1924_v46  ;;  %v2401_v24 = vmul.f32 0.5, %v2369_v57  ;;  %v2400_v33 = vmul.f32 0.5, %v2368_v42  ;;  %v1927_v18 = vadd.f32 %v2542_v53, %v1735_v51 }
 0x3f7   :  { %v1926_v49 = vadd.f32 %v2543_v61, %v1734_v62  ;;  %v2371_v13 = vsub.f32 %v2339_v10, %v2307_v56  ;;  %v2370_v27 = vsub.f32 %v2338_v11, %v2306_v20  ;;  %v2341_v4 = vmul.f32 %v2149_v52, %v2149_v52  ;;  %v2243_v40 = vpop.permute.xlu1 %2242 }
 0x3f8   :  { %2434 = vst.msk [vmem:[%s6307_s1 + $0xc8] sm:$0xff] %vm2408_vm0, %v2401_v24  ;;  %2433 = vst.msk [vmem:[%s6307_s1 + $0xc0] sm:$0xff] %vm2408_vm0, %v2400_v33  ;;  %v2340_v38 = vmul.f32 %v2148_v37, %v2148_v37  ;;  %v2151_v19 = vadd.f32 %v5928_v58, %v1927_v18  ;;  %v2241_v32 = vpop.permute.xlu0 %2240  ;;  %v2309_v63 = vadd.f32 %v2243_v40, %v7363_v50 }
 0x3f9   :  { %v2150_v17 = vadd.f32 %v7362_v25, %v1926_v49  ;;  %v2403_v6 = vmul.f32 0.5, %v2371_v13  ;;  %v2402_v3 = vmul.f32 0.5, %v2370_v27  ;;  %v2308_v26 = vadd.f32 %v2241_v32, %v7364_v9 }
 0x3fa   :  { %v2373_v58 = vsub.f32 %v2341_v4, %v2309_v63  ;;  %v2343_v7 = vmul.f32 %v2151_v19, %v2151_v19 }
 0x3fb   :  { %2436 = vst.msk [vmem:[%s6307_s1 + $0xd8] sm:$0xff] %vm2408_vm0, %v2403_v6  ;;  %2435 = vst.msk [vmem:[%s6307_s1 + $0xd0] sm:$0xff] %vm2408_vm0, %v2402_v3  ;;  %v2372_v35 = vsub.f32 %v2340_v38, %v2308_v26  ;;  %v2342_v60 = vmul.f32 %v2150_v17, %v2150_v17  ;;  %v2247_v29 = vpop.permute.xlu1 %2246 }
 0x3fc   :  { %v2245_v39 = vpop.permute.xlu0 %2244  ;;  %v2405_v21 = vmul.f32 0.5, %v2373_v58  ;;  %v2311_v45 = vadd.f32 %v2247_v29, %v7365_v15 }
 0x3fd   :  { %v2404_v34 = vmul.f32 0.5, %v2372_v35  ;;  %v2310_v31 = vadd.f32 %v2245_v39, %v7366_v55 }
 0x3fe   :  { %2438 = vst.msk [vmem:[%s6307_s1 + $0xe8] sm:$0xff] %vm2408_vm0, %v2405_v21  ;;  %v2375_v0 = vsub.f32 %v2343_v7, %v2311_v45 }
 0x3ff   :  { %2437 = vst.msk [vmem:[%s6307_s1 + $0xe0] sm:$0xff] %vm2408_vm0, %v2404_v34  ;;  %v2374_v12 = vsub.f32 %v2342_v60, %v2310_v31 }
 0x400   :  { %v2407_v23 = vmul.f32 0.5, %v2375_v0 }
 0x401   :  { %v2406_v43 = vmul.f32 0.5, %v2374_v12 }
 0x402   :  { %2440 = vst.msk [vmem:[%s6307_s1 + $0xf8] sm:$0xff] %vm2408_vm0, %v2407_v23 }
 0x403   :  { %2439 = vst.msk [vmem:[%s6307_s1 + $0xf0] sm:$0xff] %vm2408_vm0, %v2406_v43 }

</bundles_post_ra>
